<compile_context>
chip_gen: v5e
topology: v5e:2x2
jax: 0.10.0
libtpu: 0.0.40
codegen_flags: <defaults>
</compile_context>

<pallas_src>
import functools

import numpy as np
import jax
import jax.numpy as jnp
from jax import lax
from jax.experimental import pallas as pl
from jax.experimental.pallas import tpu as pltpu

H = 128          # LSTM hidden size (fixed by the PyTorch module)


def bug_classifier_kernel(S, Bp,
                          x_ref,       # [S*Bp, E]   bf16, time-major, batch-padded
                          L_ref,       # [Bp, 1]     int32 target step (-1 = empty mask)
                          wih_ref,     # [E, 8H]     bf16 (fwd gates | bwd gates)
                          bih_ref,     # [1, 8H]     f32  (b_ih + b_hh, fwd | bwd)
                          whhf_ref,    # [H, 4H]     bf16
                          whhb_ref,    # [H, 4H]     bf16
                          wfc_ref,     # [2H, Cp]    bf16
                          bfc_ref,     # [1, Cp]     f32
                          out_ref,     # [Bp, Cp]    f32
                          zxf_ref,     # VMEM [S*Bp, 4H] f32
                          zxb_ref):    # VMEM [S*Bp, 4H] f32
    # ---- fused input projection for BOTH directions, hoisted out of the loop
    zx = (jnp.dot(x_ref[...], wih_ref[...], preferred_element_type=jnp.float32)
          + bih_ref[...])                        # [S*Bp, 8H]
    zxf_ref[...] = zx[:, :4 * H]                 # lane-aligned (offset 0,   512 wide)
    zxb_ref[...] = zx[:, 4 * H:]                 # lane-aligned (offset 512, 512 wide)

    L = L_ref[...]                               # [Bp, 1] int32

    zeros = jnp.zeros((Bp, H), jnp.float32)

    def gates(z, c):
        i = jax.nn.sigmoid(z[:, 0 * H:1 * H])
        f = jax.nn.sigmoid(z[:, 1 * H:2 * H])
        g = jnp.tanh(z[:, 2 * H:3 * H])
        o = jax.nn.sigmoid(z[:, 3 * H:4 * H])
        c_new = f * c + i * g
        h_new = o * jnp.tanh(c_new)
        return h_new, c_new

    # ---- interleaved fwd / bwd recurrence with in-loop final-state selection
    def body(t, carry):
        h_f, c_f, h_b, c_b, sel_f, sel_b = carry
        tb = S - 1 - t
        row_f = pl.multiple_of(t * Bp, 8)
        row_b = pl.multiple_of(tb * Bp, 8)

        zf = zxf_ref[pl.ds(row_f, Bp), :] + jnp.dot(
            h_f.astype(jnp.bfloat16), whhf_ref[...],
            preferred_element_type=jnp.float32)
        zb = zxb_ref[pl.ds(row_b, Bp), :] + jnp.dot(
            h_b.astype(jnp.bfloat16), whhb_ref[...],
            preferred_element_type=jnp.float32)

        h_f, c_f = gates(zf, c_f)
        h_b, c_b = gates(zb, c_b)

        # PyTorch semantics: final fwd state at step L, final bwd state at the
        # same position L (bwd chain has consumed steps S-1..L at that point).
        sel_f = jnp.where(L == t, h_f, sel_f)
        sel_b = jnp.where(L == tb, h_b, sel_b)
        return (h_f, c_f, h_b, c_b, sel_f, sel_b)

    carry0 = (zeros, zeros, zeros, zeros, zeros, zeros)
    _, _, _, _, sel_f, sel_b = lax.fori_loop(0, S, body, carry0,
                                             unroll=(S <= 16))

    # ---- dropout is identity in eval; final linear layer (lane-dense output)
    sel = jnp.concatenate([sel_f, sel_b], axis=1).astype(jnp.bfloat16)  # [Bp, 2H]
    out_ref[...] = (jnp.dot(sel, wfc_ref[...],
                            preferred_element_type=jnp.float32)
                    + bfc_ref[...])


def bug_classifier_forward(input_ids, attention_mask, params):
    """Pallas implementation of BugClassifier.forward (inference)."""
    # Glue (plain JAX): embedding gather, layout, padding, dtype casts.
    emb = params["embedding"][input_ids]                       # [B, S, E] f32
    B, S, E = emb.shape
    Bp = int(np.ceil(B / 8)) * 8                               # sublane-pad batch
    C = params["wfc"].shape[1]
    Cp = int(np.ceil(C / 128)) * 128                           # lane-pad classes

    x = jnp.transpose(emb, (1, 0, 2))                          # [S, B, E]
    x = jnp.pad(x, ((0, 0), (0, Bp - B), (0, 0)))              # [S, Bp, E]
    x2d = x.reshape(S * Bp, E).astype(jnp.bfloat16)            # [S*Bp, E]

    lengths = attention_mask.astype(jnp.int32).sum(axis=1)     # [B]
    L_sel = jnp.where(lengths > 0, lengths - 1, -1)            # -1 => empty mask
    L_sel = jnp.pad(L_sel, (0, Bp - B), constant_values=-1)[:, None]  # [Bp, 1]
    L_sel = L_sel.astype(jnp.int32)

    wih = jnp.concatenate([params["wih_f"], params["wih_b"]],
                          axis=1).astype(jnp.bfloat16)          # [E, 8H]
    bih = jnp.concatenate([params["b_f"], params["b_b"]], axis=1)  # [1, 8H] f32
    whh_f = params["whh_f"].astype(jnp.bfloat16)                # [H, 4H]
    whh_b = params["whh_b"].astype(jnp.bfloat16)                # [H, 4H]
    wfc = jnp.pad(params["wfc"], ((0, 0), (0, Cp - C))).astype(jnp.bfloat16)
    bfc = jnp.pad(params["bfc"], ((0, 0), (0, Cp - C)))         # [1, Cp] f32

    kernel = functools.partial(bug_classifier_kernel, S, Bp)

    out = pl.pallas_call(
        kernel,
        out_shape=jax.ShapeDtypeStruct((Bp, Cp), jnp.float32),
        grid=(1,),
        in_specs=[
            pl.BlockSpec((S * Bp, E), lambda i: (0, 0)),   # x (time-major)
            pl.BlockSpec((Bp, 1), lambda i: (0, 0)),       # selection index
            pl.BlockSpec((E, 8 * H), lambda i: (0, 0)),    # W_ih fwd|bwd
            pl.BlockSpec((1, 8 * H), lambda i: (0, 0)),    # bias fwd|bwd
            pl.BlockSpec((H, 4 * H), lambda i: (0, 0)),    # W_hh fwd
            pl.BlockSpec((H, 4 * H), lambda i: (0, 0)),    # W_hh bwd
            pl.BlockSpec((2 * H, Cp), lambda i: (0, 0)),   # fc weight (padded)
            pl.BlockSpec((1, Cp), lambda i: (0, 0)),       # fc bias (padded)
        ],
        out_specs=pl.BlockSpec((Bp, Cp), lambda i: (0, 0)),
        scratch_shapes=[
            pltpu.VMEM((S * Bp, 4 * H), jnp.float32),      # zx forward
            pltpu.VMEM((S * Bp, 4 * H), jnp.float32),      # zx backward
        ],
        compiler_params=pltpu.CompilerParams(
            dimension_semantics=("arbitrary",)),
    )(x2d, L_sel, wih, bih, whh_f, whh_b, wfc, bfc)

    return out[:B, :C]


def reference_forward(input_ids, attention_mask, p):
    """Pure-JAX f32 reference mirroring the PyTorch forward (eval mode)."""
    emb = p["embedding"][input_ids]                    # [B, S, E]
    B, S, _ = emb.shape

    def run_dir(x_seq, wih, whh, b):
        def step(carry, x_t):
            h, c = carry
            z = x_t @ wih + h @ whh + b
            i = jax.nn.sigmoid(z[:, :H])
            f = jax.nn.sigmoid(z[:, H:2 * H])
            g = jnp.tanh(z[:, 2 * H:3 * H])
            o = jax.nn.sigmoid(z[:, 3 * H:])
            c = f * c + i * g
            h = o * jnp.tanh(c)
            return (h, c), h
        h0 = jnp.zeros((B, H), jnp.float32)
        c0 = jnp.zeros((B, H), jnp.float32)
        _, hs = lax.scan(step, (h0, c0), jnp.transpose(x_seq, (1, 0, 2)))
        return jnp.transpose(hs, (1, 0, 2))            # [B, S, H]

    hf = run_dir(emb, p["wih_f"], p["whh_f"], p["b_f"])
    hb = run_dir(emb[:, ::-1], p["wih_b"], p["whh_b"], p["b_b"])[:, ::-1]
    lstm_out = jnp.concatenate([hf, hb], axis=-1)
    lstm_out = lstm_out * attention_mask[:, :, None].astype(lstm_out.dtype)
    L = jnp.maximum(attention_mask.astype(jnp.int32).sum(axis=1) - 1, 0)
    final = lstm_out[jnp.arange(B), L]
    return final @ p["wfc"] + p["bfc"]


def init_params(key, vocab_size, embedding_dim, n_classes):
    """Deterministic synthetic parameters (PyTorch-like uniform init)."""
    def uni(k, shape, bound):
        return jax.random.uniform(k, shape, jnp.float32, -bound, bound)

    keys = jax.random.split(key, 10)
    k_lstm = 1.0 / np.sqrt(H)
    k_fc = 1.0 / np.sqrt(2 * H)
    return {
        "embedding": uni(keys[0], (vocab_size, embedding_dim), 0.1),
        # LSTM weights stored pre-transposed: [in, 4H] / [H, 4H]; bias = b_ih + b_hh.
        "wih_f": uni(keys[1], (embedding_dim, 4 * H), k_lstm),
        "whh_f": uni(keys[2], (H, 4 * H), k_lstm),
        "b_f":   uni(keys[3], (1, 4 * H), k_lstm),
        "wih_b": uni(keys[4], (embedding_dim, 4 * H), k_lstm),
        "whh_b": uni(keys[5], (H, 4 * H), k_lstm),
        "b_b":   uni(keys[6], (1, 4 * H), k_lstm),
        # fc stored pre-transposed: [2H, n_classes]
        "wfc":   uni(keys[7], (2 * H, n_classes), k_fc),
        "bfc":   uni(keys[8], (1, n_classes), k_fc),
    }


if __name__ == "__main__":
    B, S = 3, 8
    VOCAB, E, C = 64, 32, 4

    key = jax.random.PRNGKey(0)
    k_param, k_ids = jax.random.split(key)

    params = init_params(k_param, VOCAB, E, C)
    input_ids = jax.random.randint(k_ids, (B, S), 0, VOCAB, dtype=jnp.int32)
    # Prefix masks of lengths 5, 8 and 0 (exercises the all-zero-mask path).
    lengths = jnp.array([5, 8, 0], dtype=jnp.int32)
    attention_mask = (jnp.arange(S)[None, :] < lengths[:, None]).astype(jnp.int32)

    out = bug_classifier_forward(input_ids, attention_mask, params)
    out = jax.block_until_ready(out)

    ref = reference_forward(input_ids, attention_mask, params)
    # bf16 matmul inputs vs. the pure-f32 reference -> slightly looser tolerance.
    np.testing.assert_allclose(np.asarray(out), np.asarray(ref),
                               atol=1e-2, rtol=1e-2)
    print("KERNEL_OK")
</pallas_src>

<mosaic_0001>
module attributes {stable_mosaic.version = 11 : i64} {
  func.func @bug_classifier_kernel(%arg0: i32, %arg1: memref<64x32xbf16, #tpu.memory_space<vmem>>, %arg2: memref<8x1xi32, #tpu.memory_space<vmem>>, %arg3: memref<32x1024xbf16, #tpu.memory_space<vmem>>, %arg4: memref<1x1024xf32, #tpu.memory_space<vmem>>, %arg5: memref<128x512xbf16, #tpu.memory_space<vmem>>, %arg6: memref<128x512xbf16, #tpu.memory_space<vmem>>, %arg7: memref<256x128xbf16, #tpu.memory_space<vmem>>, %arg8: memref<1x128xf32, #tpu.memory_space<vmem>>, %arg9: memref<8x128xf32, #tpu.memory_space<vmem>>, %arg10: memref<64x512xf32, #tpu.memory_space<vmem>>, %arg11: memref<64x512xf32, #tpu.memory_space<vmem>>) attributes {dimension_semantics = [#tpu.dimension_semantics<arbitrary>], iteration_bounds = array<i64: 1>, scalar_prefetch = 0 : i64, scratch_operands = 2 : i64, tpu.core_type = #tpu.core_type<tc>, window_params = [{pipeline_mode = #tpu.pipeline_mode<synchronous>, transform_indices = @transform_0, window_bounds = array<i64: 64, 32>}, {pipeline_mode = #tpu.pipeline_mode<synchronous>, transform_indices = @transform_1, window_bounds = array<i64: 8, 1>}, {pipeline_mode = #tpu.pipeline_mode<synchronous>, transform_indices = @transform_2, window_bounds = array<i64: 32, 1024>}, {pipeline_mode = #tpu.pipeline_mode<synchronous>, transform_indices = @transform_3, window_bounds = array<i64: 1, 1024>}, {pipeline_mode = #tpu.pipeline_mode<synchronous>, transform_indices = @transform_4, window_bounds = array<i64: 128, 512>}, {pipeline_mode = #tpu.pipeline_mode<synchronous>, transform_indices = @transform_5, window_bounds = array<i64: 128, 512>}, {pipeline_mode = #tpu.pipeline_mode<synchronous>, transform_indices = @transform_6, window_bounds = array<i64: 256, 128>}, {pipeline_mode = #tpu.pipeline_mode<synchronous>, transform_indices = @transform_7, window_bounds = array<i64: 1, 128>}, {pipeline_mode = #tpu.pipeline_mode<synchronous>, transform_indices = @transform_8, window_bounds = array<i64: 8, 128>}]} {
    %c0 = arith.constant 0 : index
    %c0_0 = arith.constant 0 : index
    %0 = vector.load %arg1[%c0, %c0_0] : memref<64x32xbf16, #tpu.memory_space<vmem>>, vector<64x32xbf16>
    %c0_1 = arith.constant 0 : index
    %c0_2 = arith.constant 0 : index
    %1 = vector.load %arg3[%c0_1, %c0_2] : memref<32x1024xbf16, #tpu.memory_space<vmem>>, vector<32x1024xbf16>
    %cst = arith.constant dense<0.000000e+00> : vector<64x1024xf32>
    %2 = tpu.matmul %0, %1, %cst {dimension_numbers = #tpu.dot_dimension_numbers<[1], [0], [0], [1], [0, 0, 1, 1], [], []>} : vector<64x32xbf16>, vector<32x1024xbf16>, vector<64x1024xf32> -> vector<64x1024xf32>
    %c0_3 = arith.constant 0 : index
    %c0_4 = arith.constant 0 : index
    %3 = vector.load %arg4[%c0_3, %c0_4] : memref<1x1024xf32, #tpu.memory_space<vmem>>, vector<1x1024xf32>
    %4 = vector.broadcast %3 : vector<1x1024xf32> to vector<64x1024xf32>
    %5 = arith.addf %2, %4 : vector<64x1024xf32>
    %6 = vector.extract_strided_slice %5 {offsets = [0, 0], sizes = [64, 512], strides = [1, 1]} : vector<64x1024xf32> to vector<64x512xf32>
    %c0_5 = arith.constant 0 : index
    %c0_6 = arith.constant 0 : index
    %7 = vector.load %arg10[%c0_5, %c0_6] : memref<64x512xf32, #tpu.memory_space<vmem>>, vector<64x512xf32>
    tpu.vector_store %arg10[%c0_5, %c0_6], %6 {strides = array<i32>} : memref<64x512xf32, #tpu.memory_space<vmem>>, vector<64x512xf32>,
    %8 = vector.extract_strided_slice %5 {offsets = [0, 512], sizes = [64, 512], strides = [1, 1]} : vector<64x1024xf32> to vector<64x512xf32>
    %c0_7 = arith.constant 0 : index
    %c0_8 = arith.constant 0 : index
    %9 = vector.load %arg11[%c0_7, %c0_8] : memref<64x512xf32, #tpu.memory_space<vmem>>, vector<64x512xf32>
    tpu.vector_store %arg11[%c0_7, %c0_8], %8 {strides = array<i32>} : memref<64x512xf32, #tpu.memory_space<vmem>>, vector<64x512xf32>,
    %c0_9 = arith.constant 0 : index
    %c0_10 = arith.constant 0 : index
    %10 = vector.load %arg2[%c0_9, %c0_10] : memref<8x1xi32, #tpu.memory_space<vmem>>, vector<8x1xi32>
    %cst_11 = arith.constant 0.000000e+00 : f32
    %11 = vector.broadcast %cst_11 : f32 to vector<8x128xf32>
    %c0_i32 = arith.constant 0 : i32
    %c7_i32 = arith.constant 7 : i32
    %12 = arith.subi %c7_i32, %c0_i32 : i32
    %c8_i32 = arith.constant 8 : i32
    %13 = arith.muli %c0_i32, %c8_i32 : i32
    %14 = tpu.assume_multiple %13, 8 : i32
    %c8_i32_12 = arith.constant 8 : i32
    %15 = arith.muli %12, %c8_i32_12 : i32
    %16 = tpu.assume_multiple %15, 8 : i32
    %17 = arith.index_cast %14 : i32 to index
    %c0_13 = arith.constant 0 : index
    %18 = vector.load %arg10[%17, %c0_13] : memref<64x512xf32, #tpu.memory_space<vmem>>, vector<8x512xf32>
    %19 = arith.truncf %11 : vector<8x128xf32> to vector<8x128xbf16>
    %c0_14 = arith.constant 0 : index
    %c0_15 = arith.constant 0 : index
    %20 = vector.load %arg5[%c0_14, %c0_15] : memref<128x512xbf16, #tpu.memory_space<vmem>>, vector<128x512xbf16>
    %cst_16 = arith.constant dense<0.000000e+00> : vector<8x512xf32>
    %21 = tpu.matmul %19, %20, %cst_16 {dimension_numbers = #tpu.dot_dimension_numbers<[1], [0], [0], [1], [0, 0, 1, 1], [], []>} : vector<8x128xbf16>, vector<128x512xbf16>, vector<8x512xf32> -> vector<8x512xf32>
    %22 = arith.addf %18, %21 : vector<8x512xf32>
    %23 = arith.index_cast %16 : i32 to index
    %c0_17 = arith.constant 0 : index
    %24 = vector.load %arg11[%23, %c0_17] : memref<64x512xf32, #tpu.memory_space<vmem>>, vector<8x512xf32>
    %25 = arith.truncf %11 : vector<8x128xf32> to vector<8x128xbf16>
    %c0_18 = arith.constant 0 : index
    %c0_19 = arith.constant 0 : index
    %26 = vector.load %arg6[%c0_18, %c0_19] : memref<128x512xbf16, #tpu.memory_space<vmem>>, vector<128x512xbf16>
    %cst_20 = arith.constant dense<0.000000e+00> : vector<8x512xf32>
    %27 = tpu.matmul %25, %26, %cst_20 {dimension_numbers = #tpu.dot_dimension_numbers<[1], [0], [0], [1], [0, 0, 1, 1], [], []>} : vector<8x128xbf16>, vector<128x512xbf16>, vector<8x512xf32> -> vector<8x512xf32>
    %28 = arith.addf %24, %27 : vector<8x512xf32>
    %29 = vector.extract_strided_slice %22 {offsets = [0, 0], sizes = [8, 128], strides = [1, 1]} : vector<8x512xf32> to vector<8x128xf32>
    %30 = arith.negf %29 : vector<8x128xf32>
    %31 = math.exp %30 : vector<8x128xf32>
    %cst_21 = arith.constant 1.000000e+00 : f32
    %32 = vector.broadcast %cst_21 : f32 to vector<8x128xf32>
    %33 = arith.addf %32, %31 : vector<8x128xf32>
    %34 = arith.divf %32, %33 : vector<8x128xf32>
    %35 = vector.extract_strided_slice %22 {offsets = [0, 128], sizes = [8, 128], strides = [1, 1]} : vector<8x512xf32> to vector<8x128xf32>
    %36 = arith.negf %35 : vector<8x128xf32>
    %37 = math.exp %36 : vector<8x128xf32>
    %cst_22 = arith.constant 1.000000e+00 : f32
    %38 = vector.broadcast %cst_22 : f32 to vector<8x128xf32>
    %39 = arith.addf %38, %37 : vector<8x128xf32>
    %40 = arith.divf %38, %39 : vector<8x128xf32>
    %41 = vector.extract_strided_slice %22 {offsets = [0, 256], sizes = [8, 128], strides = [1, 1]} : vector<8x512xf32> to vector<8x128xf32>
    %42 = math.tanh %41 : vector<8x128xf32>
    %43 = vector.extract_strided_slice %22 {offsets = [0, 384], sizes = [8, 128], strides = [1, 1]} : vector<8x512xf32> to vector<8x128xf32>
    %44 = arith.negf %43 : vector<8x128xf32>
    %45 = math.exp %44 : vector<8x128xf32>
    %cst_23 = arith.constant 1.000000e+00 : f32
    %46 = vector.broadcast %cst_23 : f32 to vector<8x128xf32>
    %47 = arith.addf %46, %45 : vector<8x128xf32>
    %48 = arith.divf %46, %47 : vector<8x128xf32>
    %49 = arith.mulf %40, %11 : vector<8x128xf32>
    %50 = arith.mulf %34, %42 : vector<8x128xf32>
    %51 = arith.addf %49, %50 : vector<8x128xf32>
    %52 = math.tanh %51 : vector<8x128xf32>
    %53 = arith.mulf %48, %52 : vector<8x128xf32>
    %54 = vector.extract_strided_slice %28 {offsets = [0, 0], sizes = [8, 128], strides = [1, 1]} : vector<8x512xf32> to vector<8x128xf32>
    %55 = arith.negf %54 : vector<8x128xf32>
    %56 = math.exp %55 : vector<8x128xf32>
    %cst_24 = arith.constant 1.000000e+00 : f32
    %57 = vector.broadcast %cst_24 : f32 to vector<8x128xf32>
    %58 = arith.addf %57, %56 : vector<8x128xf32>
    %59 = arith.divf %57, %58 : vector<8x128xf32>
    %60 = vector.extract_strided_slice %28 {offsets = [0, 128], sizes = [8, 128], strides = [1, 1]} : vector<8x512xf32> to vector<8x128xf32>
    %61 = arith.negf %60 : vector<8x128xf32>
    %62 = math.exp %61 : vector<8x128xf32>
    %cst_25 = arith.constant 1.000000e+00 : f32
    %63 = vector.broadcast %cst_25 : f32 to vector<8x128xf32>
    %64 = arith.addf %63, %62 : vector<8x128xf32>
    %65 = arith.divf %63, %64 : vector<8x128xf32>
    %66 = vector.extract_strided_slice %28 {offsets = [0, 256], sizes = [8, 128], strides = [1, 1]} : vector<8x512xf32> to vector<8x128xf32>
    %67 = math.tanh %66 : vector<8x128xf32>
    %68 = vector.extract_strided_slice %28 {offsets = [0, 384], sizes = [8, 128], strides = [1, 1]} : vector<8x512xf32> to vector<8x128xf32>
    %69 = arith.negf %68 : vector<8x128xf32>
    %70 = math.exp %69 : vector<8x128xf32>
    %cst_26 = arith.constant 1.000000e+00 : f32
    %71 = vector.broadcast %cst_26 : f32 to vector<8x128xf32>
    %72 = arith.addf %71, %70 : vector<8x128xf32>
    %73 = arith.divf %71, %72 : vector<8x128xf32>
    %74 = arith.mulf %65, %11 : vector<8x128xf32>
    %75 = arith.mulf %59, %67 : vector<8x128xf32>
    %76 = arith.addf %74, %75 : vector<8x128xf32>
    %77 = math.tanh %76 : vector<8x128xf32>
    %78 = arith.mulf %73, %77 : vector<8x128xf32>
    %79 = vector.broadcast %c0_i32 : i32 to vector<8x1xi32>
    %80 = arith.cmpi eq, %10, %79 : vector<8x1xi32>
    %81 = vector.shape_cast %80 : vector<8x1xi1> to vector<8x1xi1>
    %82 = vector.broadcast %81 : vector<8x1xi1> to vector<8x128xi1>
    %83 = arith.select %82, %53, %11 : vector<8x128xi1>, vector<8x128xf32>
    %84 = vector.broadcast %12 : i32 to vector<8x1xi32>
    %85 = arith.cmpi eq, %10, %84 : vector<8x1xi32>
    %86 = vector.shape_cast %85 : vector<8x1xi1> to vector<8x1xi1>
    %87 = vector.broadcast %86 : vector<8x1xi1> to vector<8x128xi1>
    %88 = arith.select %87, %78, %11 : vector<8x128xi1>, vector<8x128xf32>
    %c1_i32 = arith.constant 1 : i32
    %c7_i32_27 = arith.constant 7 : i32
    %89 = arith.subi %c7_i32_27, %c1_i32 : i32
    %c8_i32_28 = arith.constant 8 : i32
    %90 = arith.muli %c1_i32, %c8_i32_28 : i32
    %91 = tpu.assume_multiple %90, 8 : i32
    %c8_i32_29 = arith.constant 8 : i32
    %92 = arith.muli %89, %c8_i32_29 : i32
    %93 = tpu.assume_multiple %92, 8 : i32
    %94 = arith.index_cast %91 : i32 to index
    %c0_30 = arith.constant 0 : index
    %95 = vector.load %arg10[%94, %c0_30] : memref<64x512xf32, #tpu.memory_space<vmem>>, vector<8x512xf32>
    %96 = arith.truncf %53 : vector<8x128xf32> to vector<8x128xbf16>
    %c0_31 = arith.constant 0 : index
    %c0_32 = arith.constant 0 : index
    %97 = vector.load %arg5[%c0_31, %c0_32] : memref<128x512xbf16, #tpu.memory_space<vmem>>, vector<128x512xbf16>
    %cst_33 = arith.constant dense<0.000000e+00> : vector<8x512xf32>
    %98 = tpu.matmul %96, %97, %cst_33 {dimension_numbers = #tpu.dot_dimension_numbers<[1], [0], [0], [1], [0, 0, 1, 1], [], []>} : vector<8x128xbf16>, vector<128x512xbf16>, vector<8x512xf32> -> vector<8x512xf32>
    %99 = arith.addf %95, %98 : vector<8x512xf32>
    %100 = arith.index_cast %93 : i32 to index
    %c0_34 = arith.constant 0 : index
    %101 = vector.load %arg11[%100, %c0_34] : memref<64x512xf32, #tpu.memory_space<vmem>>, vector<8x512xf32>
    %102 = arith.truncf %78 : vector<8x128xf32> to vector<8x128xbf16>
    %c0_35 = arith.constant 0 : index
    %c0_36 = arith.constant 0 : index
    %103 = vector.load %arg6[%c0_35, %c0_36] : memref<128x512xbf16, #tpu.memory_space<vmem>>, vector<128x512xbf16>
    %cst_37 = arith.constant dense<0.000000e+00> : vector<8x512xf32>
    %104 = tpu.matmul %102, %103, %cst_37 {dimension_numbers = #tpu.dot_dimension_numbers<[1], [0], [0], [1], [0, 0, 1, 1], [], []>} : vector<8x128xbf16>, vector<128x512xbf16>, vector<8x512xf32> -> vector<8x512xf32>
    %105 = arith.addf %101, %104 : vector<8x512xf32>
    %106 = vector.extract_strided_slice %99 {offsets = [0, 0], sizes = [8, 128], strides = [1, 1]} : vector<8x512xf32> to vector<8x128xf32>
    %107 = arith.negf %106 : vector<8x128xf32>
    %108 = math.exp %107 : vector<8x128xf32>
    %cst_38 = arith.constant 1.000000e+00 : f32
    %109 = vector.broadcast %cst_38 : f32 to vector<8x128xf32>
    %110 = arith.addf %109, %108 : vector<8x128xf32>
    %111 = arith.divf %109, %110 : vector<8x128xf32>
    %112 = vector.extract_strided_slice %99 {offsets = [0, 128], sizes = [8, 128], strides = [1, 1]} : vector<8x512xf32> to vector<8x128xf32>
    %113 = arith.negf %112 : vector<8x128xf32>
    %114 = math.exp %113 : vector<8x128xf32>
    %cst_39 = arith.constant 1.000000e+00 : f32
    %115 = vector.broadcast %cst_39 : f32 to vector<8x128xf32>
    %116 = arith.addf %115, %114 : vector<8x128xf32>
    %117 = arith.divf %115, %116 : vector<8x128xf32>
    %118 = vector.extract_strided_slice %99 {offsets = [0, 256], sizes = [8, 128], strides = [1, 1]} : vector<8x512xf32> to vector<8x128xf32>
    %119 = math.tanh %118 : vector<8x128xf32>
    %120 = vector.extract_strided_slice %99 {offsets = [0, 384], sizes = [8, 128], strides = [1, 1]} : vector<8x512xf32> to vector<8x128xf32>
    %121 = arith.negf %120 : vector<8x128xf32>
    %122 = math.exp %121 : vector<8x128xf32>
    %cst_40 = arith.constant 1.000000e+00 : f32
    %123 = vector.broadcast %cst_40 : f32 to vector<8x128xf32>
    %124 = arith.addf %123, %122 : vector<8x128xf32>
    %125 = arith.divf %123, %124 : vector<8x128xf32>
    %126 = arith.mulf %117, %51 : vector<8x128xf32>
    %127 = arith.mulf %111, %119 : vector<8x128xf32>
    %128 = arith.addf %126, %127 : vector<8x128xf32>
    %129 = math.tanh %128 : vector<8x128xf32>
    %130 = arith.mulf %125, %129 : vector<8x128xf32>
    %131 = vector.extract_strided_slice %105 {offsets = [0, 0], sizes = [8, 128], strides = [1, 1]} : vector<8x512xf32> to vector<8x128xf32>
    %132 = arith.negf %131 : vector<8x128xf32>
    %133 = math.exp %132 : vector<8x128xf32>
    %cst_41 = arith.constant 1.000000e+00 : f32
    %134 = vector.broadcast %cst_41 : f32 to vector<8x128xf32>
    %135 = arith.addf %134, %133 : vector<8x128xf32>
    %136 = arith.divf %134, %135 : vector<8x128xf32>
    %137 = vector.extract_strided_slice %105 {offsets = [0, 128], sizes = [8, 128], strides = [1, 1]} : vector<8x512xf32> to vector<8x128xf32>
    %138 = arith.negf %137 : vector<8x128xf32>
    %139 = math.exp %138 : vector<8x128xf32>
    %cst_42 = arith.constant 1.000000e+00 : f32
    %140 = vector.broadcast %cst_42 : f32 to vector<8x128xf32>
    %141 = arith.addf %140, %139 : vector<8x128xf32>
    %142 = arith.divf %140, %141 : vector<8x128xf32>
    %143 = vector.extract_strided_slice %105 {offsets = [0, 256], sizes = [8, 128], strides = [1, 1]} : vector<8x512xf32> to vector<8x128xf32>
    %144 = math.tanh %143 : vector<8x128xf32>
    %145 = vector.extract_strided_slice %105 {offsets = [0, 384], sizes = [8, 128], strides = [1, 1]} : vector<8x512xf32> to vector<8x128xf32>
    %146 = arith.negf %145 : vector<8x128xf32>
    %147 = math.exp %146 : vector<8x128xf32>
    %cst_43 = arith.constant 1.000000e+00 : f32
    %148 = vector.broadcast %cst_43 : f32 to vector<8x128xf32>
    %149 = arith.addf %148, %147 : vector<8x128xf32>
    %150 = arith.divf %148, %149 : vector<8x128xf32>
    %151 = arith.mulf %142, %76 : vector<8x128xf32>
    %152 = arith.mulf %136, %144 : vector<8x128xf32>
    %153 = arith.addf %151, %152 : vector<8x128xf32>
    %154 = math.tanh %153 : vector<8x128xf32>
    %155 = arith.mulf %150, %154 : vector<8x128xf32>
    %156 = vector.broadcast %c1_i32 : i32 to vector<8x1xi32>
    %157 = arith.cmpi eq, %10, %156 : vector<8x1xi32>
    %158 = vector.shape_cast %157 : vector<8x1xi1> to vector<8x1xi1>
    %159 = vector.broadcast %158 : vector<8x1xi1> to vector<8x128xi1>
    %160 = arith.select %159, %130, %83 : vector<8x128xi1>, vector<8x128xf32>
    %161 = vector.broadcast %89 : i32 to vector<8x1xi32>
    %162 = arith.cmpi eq, %10, %161 : vector<8x1xi32>
    %163 = vector.shape_cast %162 : vector<8x1xi1> to vector<8x1xi1>
    %164 = vector.broadcast %163 : vector<8x1xi1> to vector<8x128xi1>
    %165 = arith.select %164, %155, %88 : vector<8x128xi1>, vector<8x128xf32>
    %c2_i32 = arith.constant 2 : i32
    %c7_i32_44 = arith.constant 7 : i32
    %166 = arith.subi %c7_i32_44, %c2_i32 : i32
    %c8_i32_45 = arith.constant 8 : i32
    %167 = arith.muli %c2_i32, %c8_i32_45 : i32
    %168 = tpu.assume_multiple %167, 8 : i32
    %c8_i32_46 = arith.constant 8 : i32
    %169 = arith.muli %166, %c8_i32_46 : i32
    %170 = tpu.assume_multiple %169, 8 : i32
    %171 = arith.index_cast %168 : i32 to index
    %c0_47 = arith.constant 0 : index
    %172 = vector.load %arg10[%171, %c0_47] : memref<64x512xf32, #tpu.memory_space<vmem>>, vector<8x512xf32>
    %173 = arith.truncf %130 : vector<8x128xf32> to vector<8x128xbf16>
    %c0_48 = arith.constant 0 : index
    %c0_49 = arith.constant 0 : index
    %174 = vector.load %arg5[%c0_48, %c0_49] : memref<128x512xbf16, #tpu.memory_space<vmem>>, vector<128x512xbf16>
    %cst_50 = arith.constant dense<0.000000e+00> : vector<8x512xf32>
    %175 = tpu.matmul %173, %174, %cst_50 {dimension_numbers = #tpu.dot_dimension_numbers<[1], [0], [0], [1], [0, 0, 1, 1], [], []>} : vector<8x128xbf16>, vector<128x512xbf16>, vector<8x512xf32> -> vector<8x512xf32>
    %176 = arith.addf %172, %175 : vector<8x512xf32>
    %177 = arith.index_cast %170 : i32 to index
    %c0_51 = arith.constant 0 : index
    %178 = vector.load %arg11[%177, %c0_51] : memref<64x512xf32, #tpu.memory_space<vmem>>, vector<8x512xf32>
    %179 = arith.truncf %155 : vector<8x128xf32> to vector<8x128xbf16>
    %c0_52 = arith.constant 0 : index
    %c0_53 = arith.constant 0 : index
    %180 = vector.load %arg6[%c0_52, %c0_53] : memref<128x512xbf16, #tpu.memory_space<vmem>>, vector<128x512xbf16>
    %cst_54 = arith.constant dense<0.000000e+00> : vector<8x512xf32>
    %181 = tpu.matmul %179, %180, %cst_54 {dimension_numbers = #tpu.dot_dimension_numbers<[1], [0], [0], [1], [0, 0, 1, 1], [], []>} : vector<8x128xbf16>, vector<128x512xbf16>, vector<8x512xf32> -> vector<8x512xf32>
    %182 = arith.addf %178, %181 : vector<8x512xf32>
    %183 = vector.extract_strided_slice %176 {offsets = [0, 0], sizes = [8, 128], strides = [1, 1]} : vector<8x512xf32> to vector<8x128xf32>
    %184 = arith.negf %183 : vector<8x128xf32>
    %185 = math.exp %184 : vector<8x128xf32>
    %cst_55 = arith.constant 1.000000e+00 : f32
    %186 = vector.broadcast %cst_55 : f32 to vector<8x128xf32>
    %187 = arith.addf %186, %185 : vector<8x128xf32>
    %188 = arith.divf %186, %187 : vector<8x128xf32>
    %189 = vector.extract_strided_slice %176 {offsets = [0, 128], sizes = [8, 128], strides = [1, 1]} : vector<8x512xf32> to vector<8x128xf32>
    %190 = arith.negf %189 : vector<8x128xf32>
    %191 = math.exp %190 : vector<8x128xf32>
    %cst_56 = arith.constant 1.000000e+00 : f32
    %192 = vector.broadcast %cst_56 : f32 to vector<8x128xf32>
    %193 = arith.addf %192, %191 : vector<8x128xf32>
    %194 = arith.divf %192, %193 : vector<8x128xf32>
    %195 = vector.extract_strided_slice %176 {offsets = [0, 256], sizes = [8, 128], strides = [1, 1]} : vector<8x512xf32> to vector<8x128xf32>
    %196 = math.tanh %195 : vector<8x128xf32>
    %197 = vector.extract_strided_slice %176 {offsets = [0, 384], sizes = [8, 128], strides = [1, 1]} : vector<8x512xf32> to vector<8x128xf32>
    %198 = arith.negf %197 : vector<8x128xf32>
    %199 = math.exp %198 : vector<8x128xf32>
    %cst_57 = arith.constant 1.000000e+00 : f32
    %200 = vector.broadcast %cst_57 : f32 to vector<8x128xf32>
    %201 = arith.addf %200, %199 : vector<8x128xf32>
    %202 = arith.divf %200, %201 : vector<8x128xf32>
    %203 = arith.mulf %194, %128 : vector<8x128xf32>
    %204 = arith.mulf %188, %196 : vector<8x128xf32>
    %205 = arith.addf %203, %204 : vector<8x128xf32>
    %206 = math.tanh %205 : vector<8x128xf32>
    %207 = arith.mulf %202, %206 : vector<8x128xf32>
    %208 = vector.extract_strided_slice %182 {offsets = [0, 0], sizes = [8, 128], strides = [1, 1]} : vector<8x512xf32> to vector<8x128xf32>
    %209 = arith.negf %208 : vector<8x128xf32>
    %210 = math.exp %209 : vector<8x128xf32>
    %cst_58 = arith.constant 1.000000e+00 : f32
    %211 = vector.broadcast %cst_58 : f32 to vector<8x128xf32>
    %212 = arith.addf %211, %210 : vector<8x128xf32>
    %213 = arith.divf %211, %212 : vector<8x128xf32>
    %214 = vector.extract_strided_slice %182 {offsets = [0, 128], sizes = [8, 128], strides = [1, 1]} : vector<8x512xf32> to vector<8x128xf32>
    %215 = arith.negf %214 : vector<8x128xf32>
    %216 = math.exp %215 : vector<8x128xf32>
    %cst_59 = arith.constant 1.000000e+00 : f32
    %217 = vector.broadcast %cst_59 : f32 to vector<8x128xf32>
    %218 = arith.addf %217, %216 : vector<8x128xf32>
    %219 = arith.divf %217, %218 : vector<8x128xf32>
    %220 = vector.extract_strided_slice %182 {offsets = [0, 256], sizes = [8, 128], strides = [1, 1]} : vector<8x512xf32> to vector<8x128xf32>
    %221 = math.tanh %220 : vector<8x128xf32>
    %222 = vector.extract_strided_slice %182 {offsets = [0, 384], sizes = [8, 128], strides = [1, 1]} : vector<8x512xf32> to vector<8x128xf32>
    %223 = arith.negf %222 : vector<8x128xf32>
    %224 = math.exp %223 : vector<8x128xf32>
    %cst_60 = arith.constant 1.000000e+00 : f32
    %225 = vector.broadcast %cst_60 : f32 to vector<8x128xf32>
    %226 = arith.addf %225, %224 : vector<8x128xf32>
    %227 = arith.divf %225, %226 : vector<8x128xf32>
    %228 = arith.mulf %219, %153 : vector<8x128xf32>
    %229 = arith.mulf %213, %221 : vector<8x128xf32>
    %230 = arith.addf %228, %229 : vector<8x128xf32>
    %231 = math.tanh %230 : vector<8x128xf32>
    %232 = arith.mulf %227, %231 : vector<8x128xf32>
    %233 = vector.broadcast %c2_i32 : i32 to vector<8x1xi32>
    %234 = arith.cmpi eq, %10, %233 : vector<8x1xi32>
    %235 = vector.shape_cast %234 : vector<8x1xi1> to vector<8x1xi1>
    %236 = vector.broadcast %235 : vector<8x1xi1> to vector<8x128xi1>
    %237 = arith.select %236, %207, %160 : vector<8x128xi1>, vector<8x128xf32>
    %238 = vector.broadcast %166 : i32 to vector<8x1xi32>
    %239 = arith.cmpi eq, %10, %238 : vector<8x1xi32>
    %240 = vector.shape_cast %239 : vector<8x1xi1> to vector<8x1xi1>
    %241 = vector.broadcast %240 : vector<8x1xi1> to vector<8x128xi1>
    %242 = arith.select %241, %232, %165 : vector<8x128xi1>, vector<8x128xf32>
    %c3_i32 = arith.constant 3 : i32
    %c7_i32_61 = arith.constant 7 : i32
    %243 = arith.subi %c7_i32_61, %c3_i32 : i32
    %c8_i32_62 = arith.constant 8 : i32
    %244 = arith.muli %c3_i32, %c8_i32_62 : i32
    %245 = tpu.assume_multiple %244, 8 : i32
    %c8_i32_63 = arith.constant 8 : i32
    %246 = arith.muli %243, %c8_i32_63 : i32
    %247 = tpu.assume_multiple %246, 8 : i32
    %248 = arith.index_cast %245 : i32 to index
    %c0_64 = arith.constant 0 : index
    %249 = vector.load %arg10[%248, %c0_64] : memref<64x512xf32, #tpu.memory_space<vmem>>, vector<8x512xf32>
    %250 = arith.truncf %207 : vector<8x128xf32> to vector<8x128xbf16>
    %c0_65 = arith.constant 0 : index
    %c0_66 = arith.constant 0 : index
    %251 = vector.load %arg5[%c0_65, %c0_66] : memref<128x512xbf16, #tpu.memory_space<vmem>>, vector<128x512xbf16>
    %cst_67 = arith.constant dense<0.000000e+00> : vector<8x512xf32>
    %252 = tpu.matmul %250, %251, %cst_67 {dimension_numbers = #tpu.dot_dimension_numbers<[1], [0], [0], [1], [0, 0, 1, 1], [], []>} : vector<8x128xbf16>, vector<128x512xbf16>, vector<8x512xf32> -> vector<8x512xf32>
    %253 = arith.addf %249, %252 : vector<8x512xf32>
    %254 = arith.index_cast %247 : i32 to index
    %c0_68 = arith.constant 0 : index
    %255 = vector.load %arg11[%254, %c0_68] : memref<64x512xf32, #tpu.memory_space<vmem>>, vector<8x512xf32>
    %256 = arith.truncf %232 : vector<8x128xf32> to vector<8x128xbf16>
    %c0_69 = arith.constant 0 : index
    %c0_70 = arith.constant 0 : index
    %257 = vector.load %arg6[%c0_69, %c0_70] : memref<128x512xbf16, #tpu.memory_space<vmem>>, vector<128x512xbf16>
    %cst_71 = arith.constant dense<0.000000e+00> : vector<8x512xf32>
    %258 = tpu.matmul %256, %257, %cst_71 {dimension_numbers = #tpu.dot_dimension_numbers<[1], [0], [0], [1], [0, 0, 1, 1], [], []>} : vector<8x128xbf16>, vector<128x512xbf16>, vector<8x512xf32> -> vector<8x512xf32>
    %259 = arith.addf %255, %258 : vector<8x512xf32>
    %260 = vector.extract_strided_slice %253 {offsets = [0, 0], sizes = [8, 128], strides = [1, 1]} : vector<8x512xf32> to vector<8x128xf32>
    %261 = arith.negf %260 : vector<8x128xf32>
    %262 = math.exp %261 : vector<8x128xf32>
    %cst_72 = arith.constant 1.000000e+00 : f32
    %263 = vector.broadcast %cst_72 : f32 to vector<8x128xf32>
    %264 = arith.addf %263, %262 : vector<8x128xf32>
    %265 = arith.divf %263, %264 : vector<8x128xf32>
    %266 = vector.extract_strided_slice %253 {offsets = [0, 128], sizes = [8, 128], strides = [1, 1]} : vector<8x512xf32> to vector<8x128xf32>
    %267 = arith.negf %266 : vector<8x128xf32>
    %268 = math.exp %267 : vector<8x128xf32>
    %cst_73 = arith.constant 1.000000e+00 : f32
    %269 = vector.broadcast %cst_73 : f32 to vector<8x128xf32>
    %270 = arith.addf %269, %268 : vector<8x128xf32>
    %271 = arith.divf %269, %270 : vector<8x128xf32>
    %272 = vector.extract_strided_slice %253 {offsets = [0, 256], sizes = [8, 128], strides = [1, 1]} : vector<8x512xf32> to vector<8x128xf32>
    %273 = math.tanh %272 : vector<8x128xf32>
    %274 = vector.extract_strided_slice %253 {offsets = [0, 384], sizes = [8, 128], strides = [1, 1]} : vector<8x512xf32> to vector<8x128xf32>
    %275 = arith.negf %274 : vector<8x128xf32>
    %276 = math.exp %275 : vector<8x128xf32>
    %cst_74 = arith.constant 1.000000e+00 : f32
    %277 = vector.broadcast %cst_74 : f32 to vector<8x128xf32>
    %278 = arith.addf %277, %276 : vector<8x128xf32>
    %279 = arith.divf %277, %278 : vector<8x128xf32>
    %280 = arith.mulf %271, %205 : vector<8x128xf32>
    %281 = arith.mulf %265, %273 : vector<8x128xf32>
    %282 = arith.addf %280, %281 : vector<8x128xf32>
    %283 = math.tanh %282 : vector<8x128xf32>
    %284 = arith.mulf %279, %283 : vector<8x128xf32>
    %285 = vector.extract_strided_slice %259 {offsets = [0, 0], sizes = [8, 128], strides = [1, 1]} : vector<8x512xf32> to vector<8x128xf32>
    %286 = arith.negf %285 : vector<8x128xf32>
    %287 = math.exp %286 : vector<8x128xf32>
    %cst_75 = arith.constant 1.000000e+00 : f32
    %288 = vector.broadcast %cst_75 : f32 to vector<8x128xf32>
    %289 = arith.addf %288, %287 : vector<8x128xf32>
    %290 = arith.divf %288, %289 : vector<8x128xf32>
    %291 = vector.extract_strided_slice %259 {offsets = [0, 128], sizes = [8, 128], strides = [1, 1]} : vector<8x512xf32> to vector<8x128xf32>
    %292 = arith.negf %291 : vector<8x128xf32>
    %293 = math.exp %292 : vector<8x128xf32>
    %cst_76 = arith.constant 1.000000e+00 : f32
    %294 = vector.broadcast %cst_76 : f32 to vector<8x128xf32>
    %295 = arith.addf %294, %293 : vector<8x128xf32>
    %296 = arith.divf %294, %295 : vector<8x128xf32>
    %297 = vector.extract_strided_slice %259 {offsets = [0, 256], sizes = [8, 128], strides = [1, 1]} : vector<8x512xf32> to vector<8x128xf32>
    %298 = math.tanh %297 : vector<8x128xf32>
    %299 = vector.extract_strided_slice %259 {offsets = [0, 384], sizes = [8, 128], strides = [1, 1]} : vector<8x512xf32> to vector<8x128xf32>
    %300 = arith.negf %299 : vector<8x128xf32>
    %301 = math.exp %300 : vector<8x128xf32>
    %cst_77 = arith.constant 1.000000e+00 : f32
    %302 = vector.broadcast %cst_77 : f32 to vector<8x128xf32>
    %303 = arith.addf %302, %301 : vector<8x128xf32>
    %304 = arith.divf %302, %303 : vector<8x128xf32>
    %305 = arith.mulf %296, %230 : vector<8x128xf32>
    %306 = arith.mulf %290, %298 : vector<8x128xf32>
    %307 = arith.addf %305, %306 : vector<8x128xf32>
    %308 = math.tanh %307 : vector<8x128xf32>
    %309 = arith.mulf %304, %308 : vector<8x128xf32>
    %310 = vector.broadcast %c3_i32 : i32 to vector<8x1xi32>
    %311 = arith.cmpi eq, %10, %310 : vector<8x1xi32>
    %312 = vector.shape_cast %311 : vector<8x1xi1> to vector<8x1xi1>
    %313 = vector.broadcast %312 : vector<8x1xi1> to vector<8x128xi1>
    %314 = arith.select %313, %284, %237 : vector<8x128xi1>, vector<8x128xf32>
    %315 = vector.broadcast %243 : i32 to vector<8x1xi32>
    %316 = arith.cmpi eq, %10, %315 : vector<8x1xi32>
    %317 = vector.shape_cast %316 : vector<8x1xi1> to vector<8x1xi1>
    %318 = vector.broadcast %317 : vector<8x1xi1> to vector<8x128xi1>
    %319 = arith.select %318, %309, %242 : vector<8x128xi1>, vector<8x128xf32>
    %c4_i32 = arith.constant 4 : i32
    %c7_i32_78 = arith.constant 7 : i32
    %320 = arith.subi %c7_i32_78, %c4_i32 : i32
    %c8_i32_79 = arith.constant 8 : i32
    %321 = arith.muli %c4_i32, %c8_i32_79 : i32
    %322 = tpu.assume_multiple %321, 8 : i32
    %c8_i32_80 = arith.constant 8 : i32
    %323 = arith.muli %320, %c8_i32_80 : i32
    %324 = tpu.assume_multiple %323, 8 : i32
    %325 = arith.index_cast %322 : i32 to index
    %c0_81 = arith.constant 0 : index
    %326 = vector.load %arg10[%325, %c0_81] : memref<64x512xf32, #tpu.memory_space<vmem>>, vector<8x512xf32>
    %327 = arith.truncf %284 : vector<8x128xf32> to vector<8x128xbf16>
    %c0_82 = arith.constant 0 : index
    %c0_83 = arith.constant 0 : index
    %328 = vector.load %arg5[%c0_82, %c0_83] : memref<128x512xbf16, #tpu.memory_space<vmem>>, vector<128x512xbf16>
    %cst_84 = arith.constant dense<0.000000e+00> : vector<8x512xf32>
    %329 = tpu.matmul %327, %328, %cst_84 {dimension_numbers = #tpu.dot_dimension_numbers<[1], [0], [0], [1], [0, 0, 1, 1], [], []>} : vector<8x128xbf16>, vector<128x512xbf16>, vector<8x512xf32> -> vector<8x512xf32>
    %330 = arith.addf %326, %329 : vector<8x512xf32>
    %331 = arith.index_cast %324 : i32 to index
    %c0_85 = arith.constant 0 : index
    %332 = vector.load %arg11[%331, %c0_85] : memref<64x512xf32, #tpu.memory_space<vmem>>, vector<8x512xf32>
    %333 = arith.truncf %309 : vector<8x128xf32> to vector<8x128xbf16>
    %c0_86 = arith.constant 0 : index
    %c0_87 = arith.constant 0 : index
    %334 = vector.load %arg6[%c0_86, %c0_87] : memref<128x512xbf16, #tpu.memory_space<vmem>>, vector<128x512xbf16>
    %cst_88 = arith.constant dense<0.000000e+00> : vector<8x512xf32>
    %335 = tpu.matmul %333, %334, %cst_88 {dimension_numbers = #tpu.dot_dimension_numbers<[1], [0], [0], [1], [0, 0, 1, 1], [], []>} : vector<8x128xbf16>, vector<128x512xbf16>, vector<8x512xf32> -> vector<8x512xf32>
    %336 = arith.addf %332, %335 : vector<8x512xf32>
    %337 = vector.extract_strided_slice %330 {offsets = [0, 0], sizes = [8, 128], strides = [1, 1]} : vector<8x512xf32> to vector<8x128xf32>
    %338 = arith.negf %337 : vector<8x128xf32>
    %339 = math.exp %338 : vector<8x128xf32>
    %cst_89 = arith.constant 1.000000e+00 : f32
    %340 = vector.broadcast %cst_89 : f32 to vector<8x128xf32>
    %341 = arith.addf %340, %339 : vector<8x128xf32>
    %342 = arith.divf %340, %341 : vector<8x128xf32>
    %343 = vector.extract_strided_slice %330 {offsets = [0, 128], sizes = [8, 128], strides = [1, 1]} : vector<8x512xf32> to vector<8x128xf32>
    %344 = arith.negf %343 : vector<8x128xf32>
    %345 = math.exp %344 : vector<8x128xf32>
    %cst_90 = arith.constant 1.000000e+00 : f32
    %346 = vector.broadcast %cst_90 : f32 to vector<8x128xf32>
    %347 = arith.addf %346, %345 : vector<8x128xf32>
    %348 = arith.divf %346, %347 : vector<8x128xf32>
    %349 = vector.extract_strided_slice %330 {offsets = [0, 256], sizes = [8, 128], strides = [1, 1]} : vector<8x512xf32> to vector<8x128xf32>
    %350 = math.tanh %349 : vector<8x128xf32>
    %351 = vector.extract_strided_slice %330 {offsets = [0, 384], sizes = [8, 128], strides = [1, 1]} : vector<8x512xf32> to vector<8x128xf32>
    %352 = arith.negf %351 : vector<8x128xf32>
    %353 = math.exp %352 : vector<8x128xf32>
    %cst_91 = arith.constant 1.000000e+00 : f32
    %354 = vector.broadcast %cst_91 : f32 to vector<8x128xf32>
    %355 = arith.addf %354, %353 : vector<8x128xf32>
    %356 = arith.divf %354, %355 : vector<8x128xf32>
    %357 = arith.mulf %348, %282 : vector<8x128xf32>
    %358 = arith.mulf %342, %350 : vector<8x128xf32>
    %359 = arith.addf %357, %358 : vector<8x128xf32>
    %360 = math.tanh %359 : vector<8x128xf32>
    %361 = arith.mulf %356, %360 : vector<8x128xf32>
    %362 = vector.extract_strided_slice %336 {offsets = [0, 0], sizes = [8, 128], strides = [1, 1]} : vector<8x512xf32> to vector<8x128xf32>
    %363 = arith.negf %362 : vector<8x128xf32>
    %364 = math.exp %363 : vector<8x128xf32>
    %cst_92 = arith.constant 1.000000e+00 : f32
    %365 = vector.broadcast %cst_92 : f32 to vector<8x128xf32>
    %366 = arith.addf %365, %364 : vector<8x128xf32>
    %367 = arith.divf %365, %366 : vector<8x128xf32>
    %368 = vector.extract_strided_slice %336 {offsets = [0, 128], sizes = [8, 128], strides = [1, 1]} : vector<8x512xf32> to vector<8x128xf32>
    %369 = arith.negf %368 : vector<8x128xf32>
    %370 = math.exp %369 : vector<8x128xf32>
    %cst_93 = arith.constant 1.000000e+00 : f32
    %371 = vector.broadcast %cst_93 : f32 to vector<8x128xf32>
    %372 = arith.addf %371, %370 : vector<8x128xf32>
    %373 = arith.divf %371, %372 : vector<8x128xf32>
    %374 = vector.extract_strided_slice %336 {offsets = [0, 256], sizes = [8, 128], strides = [1, 1]} : vector<8x512xf32> to vector<8x128xf32>
    %375 = math.tanh %374 : vector<8x128xf32>
    %376 = vector.extract_strided_slice %336 {offsets = [0, 384], sizes = [8, 128], strides = [1, 1]} : vector<8x512xf32> to vector<8x128xf32>
    %377 = arith.negf %376 : vector<8x128xf32>
    %378 = math.exp %377 : vector<8x128xf32>
    %cst_94 = arith.constant 1.000000e+00 : f32
    %379 = vector.broadcast %cst_94 : f32 to vector<8x128xf32>
    %380 = arith.addf %379, %378 : vector<8x128xf32>
    %381 = arith.divf %379, %380 : vector<8x128xf32>
    %382 = arith.mulf %373, %307 : vector<8x128xf32>
    %383 = arith.mulf %367, %375 : vector<8x128xf32>
    %384 = arith.addf %382, %383 : vector<8x128xf32>
    %385 = math.tanh %384 : vector<8x128xf32>
    %386 = arith.mulf %381, %385 : vector<8x128xf32>
    %387 = vector.broadcast %c4_i32 : i32 to vector<8x1xi32>
    %388 = arith.cmpi eq, %10, %387 : vector<8x1xi32>
    %389 = vector.shape_cast %388 : vector<8x1xi1> to vector<8x1xi1>
    %390 = vector.broadcast %389 : vector<8x1xi1> to vector<8x128xi1>
    %391 = arith.select %390, %361, %314 : vector<8x128xi1>, vector<8x128xf32>
    %392 = vector.broadcast %320 : i32 to vector<8x1xi32>
    %393 = arith.cmpi eq, %10, %392 : vector<8x1xi32>
    %394 = vector.shape_cast %393 : vector<8x1xi1> to vector<8x1xi1>
    %395 = vector.broadcast %394 : vector<8x1xi1> to vector<8x128xi1>
    %396 = arith.select %395, %386, %319 : vector<8x128xi1>, vector<8x128xf32>
    %c5_i32 = arith.constant 5 : i32
    %c7_i32_95 = arith.constant 7 : i32
    %397 = arith.subi %c7_i32_95, %c5_i32 : i32
    %c8_i32_96 = arith.constant 8 : i32
    %398 = arith.muli %c5_i32, %c8_i32_96 : i32
    %399 = tpu.assume_multiple %398, 8 : i32
    %c8_i32_97 = arith.constant 8 : i32
    %400 = arith.muli %397, %c8_i32_97 : i32
    %401 = tpu.assume_multiple %400, 8 : i32
    %402 = arith.index_cast %399 : i32 to index
    %c0_98 = arith.constant 0 : index
    %403 = vector.load %arg10[%402, %c0_98] : memref<64x512xf32, #tpu.memory_space<vmem>>, vector<8x512xf32>
    %404 = arith.truncf %361 : vector<8x128xf32> to vector<8x128xbf16>
    %c0_99 = arith.constant 0 : index
    %c0_100 = arith.constant 0 : index
    %405 = vector.load %arg5[%c0_99, %c0_100] : memref<128x512xbf16, #tpu.memory_space<vmem>>, vector<128x512xbf16>
    %cst_101 = arith.constant dense<0.000000e+00> : vector<8x512xf32>
    %406 = tpu.matmul %404, %405, %cst_101 {dimension_numbers = #tpu.dot_dimension_numbers<[1], [0], [0], [1], [0, 0, 1, 1], [], []>} : vector<8x128xbf16>, vector<128x512xbf16>, vector<8x512xf32> -> vector<8x512xf32>
    %407 = arith.addf %403, %406 : vector<8x512xf32>
    %408 = arith.index_cast %401 : i32 to index
    %c0_102 = arith.constant 0 : index
    %409 = vector.load %arg11[%408, %c0_102] : memref<64x512xf32, #tpu.memory_space<vmem>>, vector<8x512xf32>
    %410 = arith.truncf %386 : vector<8x128xf32> to vector<8x128xbf16>
    %c0_103 = arith.constant 0 : index
    %c0_104 = arith.constant 0 : index
    %411 = vector.load %arg6[%c0_103, %c0_104] : memref<128x512xbf16, #tpu.memory_space<vmem>>, vector<128x512xbf16>
    %cst_105 = arith.constant dense<0.000000e+00> : vector<8x512xf32>
    %412 = tpu.matmul %410, %411, %cst_105 {dimension_numbers = #tpu.dot_dimension_numbers<[1], [0], [0], [1], [0, 0, 1, 1], [], []>} : vector<8x128xbf16>, vector<128x512xbf16>, vector<8x512xf32> -> vector<8x512xf32>
    %413 = arith.addf %409, %412 : vector<8x512xf32>
    %414 = vector.extract_strided_slice %407 {offsets = [0, 0], sizes = [8, 128], strides = [1, 1]} : vector<8x512xf32> to vector<8x128xf32>
    %415 = arith.negf %414 : vector<8x128xf32>
    %416 = math.exp %415 : vector<8x128xf32>
    %cst_106 = arith.constant 1.000000e+00 : f32
    %417 = vector.broadcast %cst_106 : f32 to vector<8x128xf32>
    %418 = arith.addf %417, %416 : vector<8x128xf32>
    %419 = arith.divf %417, %418 : vector<8x128xf32>
    %420 = vector.extract_strided_slice %407 {offsets = [0, 128], sizes = [8, 128], strides = [1, 1]} : vector<8x512xf32> to vector<8x128xf32>
    %421 = arith.negf %420 : vector<8x128xf32>
    %422 = math.exp %421 : vector<8x128xf32>
    %cst_107 = arith.constant 1.000000e+00 : f32
    %423 = vector.broadcast %cst_107 : f32 to vector<8x128xf32>
    %424 = arith.addf %423, %422 : vector<8x128xf32>
    %425 = arith.divf %423, %424 : vector<8x128xf32>
    %426 = vector.extract_strided_slice %407 {offsets = [0, 256], sizes = [8, 128], strides = [1, 1]} : vector<8x512xf32> to vector<8x128xf32>
    %427 = math.tanh %426 : vector<8x128xf32>
    %428 = vector.extract_strided_slice %407 {offsets = [0, 384], sizes = [8, 128], strides = [1, 1]} : vector<8x512xf32> to vector<8x128xf32>
    %429 = arith.negf %428 : vector<8x128xf32>
    %430 = math.exp %429 : vector<8x128xf32>
    %cst_108 = arith.constant 1.000000e+00 : f32
    %431 = vector.broadcast %cst_108 : f32 to vector<8x128xf32>
    %432 = arith.addf %431, %430 : vector<8x128xf32>
    %433 = arith.divf %431, %432 : vector<8x128xf32>
    %434 = arith.mulf %425, %359 : vector<8x128xf32>
    %435 = arith.mulf %419, %427 : vector<8x128xf32>
    %436 = arith.addf %434, %435 : vector<8x128xf32>
    %437 = math.tanh %436 : vector<8x128xf32>
    %438 = arith.mulf %433, %437 : vector<8x128xf32>
    %439 = vector.extract_strided_slice %413 {offsets = [0, 0], sizes = [8, 128], strides = [1, 1]} : vector<8x512xf32> to vector<8x128xf32>
    %440 = arith.negf %439 : vector<8x128xf32>
    %441 = math.exp %440 : vector<8x128xf32>
    %cst_109 = arith.constant 1.000000e+00 : f32
    %442 = vector.broadcast %cst_109 : f32 to vector<8x128xf32>
    %443 = arith.addf %442, %441 : vector<8x128xf32>
    %444 = arith.divf %442, %443 : vector<8x128xf32>
    %445 = vector.extract_strided_slice %413 {offsets = [0, 128], sizes = [8, 128], strides = [1, 1]} : vector<8x512xf32> to vector<8x128xf32>
    %446 = arith.negf %445 : vector<8x128xf32>
    %447 = math.exp %446 : vector<8x128xf32>
    %cst_110 = arith.constant 1.000000e+00 : f32
    %448 = vector.broadcast %cst_110 : f32 to vector<8x128xf32>
    %449 = arith.addf %448, %447 : vector<8x128xf32>
    %450 = arith.divf %448, %449 : vector<8x128xf32>
    %451 = vector.extract_strided_slice %413 {offsets = [0, 256], sizes = [8, 128], strides = [1, 1]} : vector<8x512xf32> to vector<8x128xf32>
    %452 = math.tanh %451 : vector<8x128xf32>
    %453 = vector.extract_strided_slice %413 {offsets = [0, 384], sizes = [8, 128], strides = [1, 1]} : vector<8x512xf32> to vector<8x128xf32>
    %454 = arith.negf %453 : vector<8x128xf32>
    %455 = math.exp %454 : vector<8x128xf32>
    %cst_111 = arith.constant 1.000000e+00 : f32
    %456 = vector.broadcast %cst_111 : f32 to vector<8x128xf32>
    %457 = arith.addf %456, %455 : vector<8x128xf32>
    %458 = arith.divf %456, %457 : vector<8x128xf32>
    %459 = arith.mulf %450, %384 : vector<8x128xf32>
    %460 = arith.mulf %444, %452 : vector<8x128xf32>
    %461 = arith.addf %459, %460 : vector<8x128xf32>
    %462 = math.tanh %461 : vector<8x128xf32>
    %463 = arith.mulf %458, %462 : vector<8x128xf32>
    %464 = vector.broadcast %c5_i32 : i32 to vector<8x1xi32>
    %465 = arith.cmpi eq, %10, %464 : vector<8x1xi32>
    %466 = vector.shape_cast %465 : vector<8x1xi1> to vector<8x1xi1>
    %467 = vector.broadcast %466 : vector<8x1xi1> to vector<8x128xi1>
    %468 = arith.select %467, %438, %391 : vector<8x128xi1>, vector<8x128xf32>
    %469 = vector.broadcast %397 : i32 to vector<8x1xi32>
    %470 = arith.cmpi eq, %10, %469 : vector<8x1xi32>
    %471 = vector.shape_cast %470 : vector<8x1xi1> to vector<8x1xi1>
    %472 = vector.broadcast %471 : vector<8x1xi1> to vector<8x128xi1>
    %473 = arith.select %472, %463, %396 : vector<8x128xi1>, vector<8x128xf32>
    %c6_i32 = arith.constant 6 : i32
    %c7_i32_112 = arith.constant 7 : i32
    %474 = arith.subi %c7_i32_112, %c6_i32 : i32
    %c8_i32_113 = arith.constant 8 : i32
    %475 = arith.muli %c6_i32, %c8_i32_113 : i32
    %476 = tpu.assume_multiple %475, 8 : i32
    %c8_i32_114 = arith.constant 8 : i32
    %477 = arith.muli %474, %c8_i32_114 : i32
    %478 = tpu.assume_multiple %477, 8 : i32
    %479 = arith.index_cast %476 : i32 to index
    %c0_115 = arith.constant 0 : index
    %480 = vector.load %arg10[%479, %c0_115] : memref<64x512xf32, #tpu.memory_space<vmem>>, vector<8x512xf32>
    %481 = arith.truncf %438 : vector<8x128xf32> to vector<8x128xbf16>
    %c0_116 = arith.constant 0 : index
    %c0_117 = arith.constant 0 : index
    %482 = vector.load %arg5[%c0_116, %c0_117] : memref<128x512xbf16, #tpu.memory_space<vmem>>, vector<128x512xbf16>
    %cst_118 = arith.constant dense<0.000000e+00> : vector<8x512xf32>
    %483 = tpu.matmul %481, %482, %cst_118 {dimension_numbers = #tpu.dot_dimension_numbers<[1], [0], [0], [1], [0, 0, 1, 1], [], []>} : vector<8x128xbf16>, vector<128x512xbf16>, vector<8x512xf32> -> vector<8x512xf32>
    %484 = arith.addf %480, %483 : vector<8x512xf32>
    %485 = arith.index_cast %478 : i32 to index
    %c0_119 = arith.constant 0 : index
    %486 = vector.load %arg11[%485, %c0_119] : memref<64x512xf32, #tpu.memory_space<vmem>>, vector<8x512xf32>
    %487 = arith.truncf %463 : vector<8x128xf32> to vector<8x128xbf16>
    %c0_120 = arith.constant 0 : index
    %c0_121 = arith.constant 0 : index
    %488 = vector.load %arg6[%c0_120, %c0_121] : memref<128x512xbf16, #tpu.memory_space<vmem>>, vector<128x512xbf16>
    %cst_122 = arith.constant dense<0.000000e+00> : vector<8x512xf32>
    %489 = tpu.matmul %487, %488, %cst_122 {dimension_numbers = #tpu.dot_dimension_numbers<[1], [0], [0], [1], [0, 0, 1, 1], [], []>} : vector<8x128xbf16>, vector<128x512xbf16>, vector<8x512xf32> -> vector<8x512xf32>
    %490 = arith.addf %486, %489 : vector<8x512xf32>
    %491 = vector.extract_strided_slice %484 {offsets = [0, 0], sizes = [8, 128], strides = [1, 1]} : vector<8x512xf32> to vector<8x128xf32>
    %492 = arith.negf %491 : vector<8x128xf32>
    %493 = math.exp %492 : vector<8x128xf32>
    %cst_123 = arith.constant 1.000000e+00 : f32
    %494 = vector.broadcast %cst_123 : f32 to vector<8x128xf32>
    %495 = arith.addf %494, %493 : vector<8x128xf32>
    %496 = arith.divf %494, %495 : vector<8x128xf32>
    %497 = vector.extract_strided_slice %484 {offsets = [0, 128], sizes = [8, 128], strides = [1, 1]} : vector<8x512xf32> to vector<8x128xf32>
    %498 = arith.negf %497 : vector<8x128xf32>
    %499 = math.exp %498 : vector<8x128xf32>
    %cst_124 = arith.constant 1.000000e+00 : f32
    %500 = vector.broadcast %cst_124 : f32 to vector<8x128xf32>
    %501 = arith.addf %500, %499 : vector<8x128xf32>
    %502 = arith.divf %500, %501 : vector<8x128xf32>
    %503 = vector.extract_strided_slice %484 {offsets = [0, 256], sizes = [8, 128], strides = [1, 1]} : vector<8x512xf32> to vector<8x128xf32>
    %504 = math.tanh %503 : vector<8x128xf32>
    %505 = vector.extract_strided_slice %484 {offsets = [0, 384], sizes = [8, 128], strides = [1, 1]} : vector<8x512xf32> to vector<8x128xf32>
    %506 = arith.negf %505 : vector<8x128xf32>
    %507 = math.exp %506 : vector<8x128xf32>
    %cst_125 = arith.constant 1.000000e+00 : f32
    %508 = vector.broadcast %cst_125 : f32 to vector<8x128xf32>
    %509 = arith.addf %508, %507 : vector<8x128xf32>
    %510 = arith.divf %508, %509 : vector<8x128xf32>
    %511 = arith.mulf %502, %436 : vector<8x128xf32>
    %512 = arith.mulf %496, %504 : vector<8x128xf32>
    %513 = arith.addf %511, %512 : vector<8x128xf32>
    %514 = math.tanh %513 : vector<8x128xf32>
    %515 = arith.mulf %510, %514 : vector<8x128xf32>
    %516 = vector.extract_strided_slice %490 {offsets = [0, 0], sizes = [8, 128], strides = [1, 1]} : vector<8x512xf32> to vector<8x128xf32>
    %517 = arith.negf %516 : vector<8x128xf32>
    %518 = math.exp %517 : vector<8x128xf32>
    %cst_126 = arith.constant 1.000000e+00 : f32
    %519 = vector.broadcast %cst_126 : f32 to vector<8x128xf32>
    %520 = arith.addf %519, %518 : vector<8x128xf32>
    %521 = arith.divf %519, %520 : vector<8x128xf32>
    %522 = vector.extract_strided_slice %490 {offsets = [0, 128], sizes = [8, 128], strides = [1, 1]} : vector<8x512xf32> to vector<8x128xf32>
    %523 = arith.negf %522 : vector<8x128xf32>
    %524 = math.exp %523 : vector<8x128xf32>
    %cst_127 = arith.constant 1.000000e+00 : f32
    %525 = vector.broadcast %cst_127 : f32 to vector<8x128xf32>
    %526 = arith.addf %525, %524 : vector<8x128xf32>
    %527 = arith.divf %525, %526 : vector<8x128xf32>
    %528 = vector.extract_strided_slice %490 {offsets = [0, 256], sizes = [8, 128], strides = [1, 1]} : vector<8x512xf32> to vector<8x128xf32>
    %529 = math.tanh %528 : vector<8x128xf32>
    %530 = vector.extract_strided_slice %490 {offsets = [0, 384], sizes = [8, 128], strides = [1, 1]} : vector<8x512xf32> to vector<8x128xf32>
    %531 = arith.negf %530 : vector<8x128xf32>
    %532 = math.exp %531 : vector<8x128xf32>
    %cst_128 = arith.constant 1.000000e+00 : f32
    %533 = vector.broadcast %cst_128 : f32 to vector<8x128xf32>
    %534 = arith.addf %533, %532 : vector<8x128xf32>
    %535 = arith.divf %533, %534 : vector<8x128xf32>
    %536 = arith.mulf %527, %461 : vector<8x128xf32>
    %537 = arith.mulf %521, %529 : vector<8x128xf32>
    %538 = arith.addf %536, %537 : vector<8x128xf32>
    %539 = math.tanh %538 : vector<8x128xf32>
    %540 = arith.mulf %535, %539 : vector<8x128xf32>
    %541 = vector.broadcast %c6_i32 : i32 to vector<8x1xi32>
    %542 = arith.cmpi eq, %10, %541 : vector<8x1xi32>
    %543 = vector.shape_cast %542 : vector<8x1xi1> to vector<8x1xi1>
    %544 = vector.broadcast %543 : vector<8x1xi1> to vector<8x128xi1>
    %545 = arith.select %544, %515, %468 : vector<8x128xi1>, vector<8x128xf32>
    %546 = vector.broadcast %474 : i32 to vector<8x1xi32>
    %547 = arith.cmpi eq, %10, %546 : vector<8x1xi32>
    %548 = vector.shape_cast %547 : vector<8x1xi1> to vector<8x1xi1>
    %549 = vector.broadcast %548 : vector<8x1xi1> to vector<8x128xi1>
    %550 = arith.select %549, %540, %473 : vector<8x128xi1>, vector<8x128xf32>
    %c7_i32_129 = arith.constant 7 : i32
    %c7_i32_130 = arith.constant 7 : i32
    %551 = arith.subi %c7_i32_130, %c7_i32_129 : i32
    %c8_i32_131 = arith.constant 8 : i32
    %552 = arith.muli %c7_i32_129, %c8_i32_131 : i32
    %553 = tpu.assume_multiple %552, 8 : i32
    %c8_i32_132 = arith.constant 8 : i32
    %554 = arith.muli %551, %c8_i32_132 : i32
    %555 = tpu.assume_multiple %554, 8 : i32
    %556 = arith.index_cast %553 : i32 to index
    %c0_133 = arith.constant 0 : index
    %557 = vector.load %arg10[%556, %c0_133] : memref<64x512xf32, #tpu.memory_space<vmem>>, vector<8x512xf32>
    %558 = arith.truncf %515 : vector<8x128xf32> to vector<8x128xbf16>
    %c0_134 = arith.constant 0 : index
    %c0_135 = arith.constant 0 : index
    %559 = vector.load %arg5[%c0_134, %c0_135] : memref<128x512xbf16, #tpu.memory_space<vmem>>, vector<128x512xbf16>
    %cst_136 = arith.constant dense<0.000000e+00> : vector<8x512xf32>
    %560 = tpu.matmul %558, %559, %cst_136 {dimension_numbers = #tpu.dot_dimension_numbers<[1], [0], [0], [1], [0, 0, 1, 1], [], []>} : vector<8x128xbf16>, vector<128x512xbf16>, vector<8x512xf32> -> vector<8x512xf32>
    %561 = arith.addf %557, %560 : vector<8x512xf32>
    %562 = arith.index_cast %555 : i32 to index
    %c0_137 = arith.constant 0 : index
    %563 = vector.load %arg11[%562, %c0_137] : memref<64x512xf32, #tpu.memory_space<vmem>>, vector<8x512xf32>
    %564 = arith.truncf %540 : vector<8x128xf32> to vector<8x128xbf16>
    %c0_138 = arith.constant 0 : index
    %c0_139 = arith.constant 0 : index
    %565 = vector.load %arg6[%c0_138, %c0_139] : memref<128x512xbf16, #tpu.memory_space<vmem>>, vector<128x512xbf16>
    %cst_140 = arith.constant dense<0.000000e+00> : vector<8x512xf32>
    %566 = tpu.matmul %564, %565, %cst_140 {dimension_numbers = #tpu.dot_dimension_numbers<[1], [0], [0], [1], [0, 0, 1, 1], [], []>} : vector<8x128xbf16>, vector<128x512xbf16>, vector<8x512xf32> -> vector<8x512xf32>
    %567 = arith.addf %563, %566 : vector<8x512xf32>
    %568 = vector.extract_strided_slice %561 {offsets = [0, 0], sizes = [8, 128], strides = [1, 1]} : vector<8x512xf32> to vector<8x128xf32>
    %569 = arith.negf %568 : vector<8x128xf32>
    %570 = math.exp %569 : vector<8x128xf32>
    %cst_141 = arith.constant 1.000000e+00 : f32
    %571 = vector.broadcast %cst_141 : f32 to vector<8x128xf32>
    %572 = arith.addf %571, %570 : vector<8x128xf32>
    %573 = arith.divf %571, %572 : vector<8x128xf32>
    %574 = vector.extract_strided_slice %561 {offsets = [0, 128], sizes = [8, 128], strides = [1, 1]} : vector<8x512xf32> to vector<8x128xf32>
    %575 = arith.negf %574 : vector<8x128xf32>
    %576 = math.exp %575 : vector<8x128xf32>
    %cst_142 = arith.constant 1.000000e+00 : f32
    %577 = vector.broadcast %cst_142 : f32 to vector<8x128xf32>
    %578 = arith.addf %577, %576 : vector<8x128xf32>
    %579 = arith.divf %577, %578 : vector<8x128xf32>
    %580 = vector.extract_strided_slice %561 {offsets = [0, 256], sizes = [8, 128], strides = [1, 1]} : vector<8x512xf32> to vector<8x128xf32>
    %581 = math.tanh %580 : vector<8x128xf32>
    %582 = vector.extract_strided_slice %561 {offsets = [0, 384], sizes = [8, 128], strides = [1, 1]} : vector<8x512xf32> to vector<8x128xf32>
    %583 = arith.negf %582 : vector<8x128xf32>
    %584 = math.exp %583 : vector<8x128xf32>
    %cst_143 = arith.constant 1.000000e+00 : f32
    %585 = vector.broadcast %cst_143 : f32 to vector<8x128xf32>
    %586 = arith.addf %585, %584 : vector<8x128xf32>
    %587 = arith.divf %585, %586 : vector<8x128xf32>
    %588 = arith.mulf %579, %513 : vector<8x128xf32>
    %589 = arith.mulf %573, %581 : vector<8x128xf32>
    %590 = arith.addf %588, %589 : vector<8x128xf32>
    %591 = math.tanh %590 : vector<8x128xf32>
    %592 = arith.mulf %587, %591 : vector<8x128xf32>
    %593 = vector.extract_strided_slice %567 {offsets = [0, 0], sizes = [8, 128], strides = [1, 1]} : vector<8x512xf32> to vector<8x128xf32>
    %594 = arith.negf %593 : vector<8x128xf32>
    %595 = math.exp %594 : vector<8x128xf32>
    %cst_144 = arith.constant 1.000000e+00 : f32
    %596 = vector.broadcast %cst_144 : f32 to vector<8x128xf32>
    %597 = arith.addf %596, %595 : vector<8x128xf32>
    %598 = arith.divf %596, %597 : vector<8x128xf32>
    %599 = vector.extract_strided_slice %567 {offsets = [0, 128], sizes = [8, 128], strides = [1, 1]} : vector<8x512xf32> to vector<8x128xf32>
    %600 = arith.negf %599 : vector<8x128xf32>
    %601 = math.exp %600 : vector<8x128xf32>
    %cst_145 = arith.constant 1.000000e+00 : f32
    %602 = vector.broadcast %cst_145 : f32 to vector<8x128xf32>
    %603 = arith.addf %602, %601 : vector<8x128xf32>
    %604 = arith.divf %602, %603 : vector<8x128xf32>
    %605 = vector.extract_strided_slice %567 {offsets = [0, 256], sizes = [8, 128], strides = [1, 1]} : vector<8x512xf32> to vector<8x128xf32>
    %606 = math.tanh %605 : vector<8x128xf32>
    %607 = vector.extract_strided_slice %567 {offsets = [0, 384], sizes = [8, 128], strides = [1, 1]} : vector<8x512xf32> to vector<8x128xf32>
    %608 = arith.negf %607 : vector<8x128xf32>
    %609 = math.exp %608 : vector<8x128xf32>
    %cst_146 = arith.constant 1.000000e+00 : f32
    %610 = vector.broadcast %cst_146 : f32 to vector<8x128xf32>
    %611 = arith.addf %610, %609 : vector<8x128xf32>
    %612 = arith.divf %610, %611 : vector<8x128xf32>
    %613 = arith.mulf %604, %538 : vector<8x128xf32>
    %614 = arith.mulf %598, %606 : vector<8x128xf32>
    %615 = arith.addf %613, %614 : vector<8x128xf32>
    %616 = math.tanh %615 : vector<8x128xf32>
    %617 = arith.mulf %612, %616 : vector<8x128xf32>
    %618 = vector.broadcast %c7_i32_129 : i32 to vector<8x1xi32>
    %619 = arith.cmpi eq, %10, %618 : vector<8x1xi32>
    %620 = vector.shape_cast %619 : vector<8x1xi1> to vector<8x1xi1>
    %621 = vector.broadcast %620 : vector<8x1xi1> to vector<8x128xi1>
    %622 = arith.select %621, %592, %545 : vector<8x128xi1>, vector<8x128xf32>
    %623 = vector.broadcast %551 : i32 to vector<8x1xi32>
    %624 = arith.cmpi eq, %10, %623 : vector<8x1xi32>
    %625 = vector.shape_cast %624 : vector<8x1xi1> to vector<8x1xi1>
    %626 = vector.broadcast %625 : vector<8x1xi1> to vector<8x128xi1>
    %627 = arith.select %626, %617, %550 : vector<8x128xi1>, vector<8x128xf32>
    %c8_i32_147 = arith.constant 8 : i32
    %628 = tpu.concatenate %622, %627 in 1 : vector<8x128xf32>, vector<8x128xf32> -> vector<8x256xf32>
    %629 = arith.truncf %628 : vector<8x256xf32> to vector<8x256xbf16>
    %c0_148 = arith.constant 0 : index
    %c0_149 = arith.constant 0 : index
    %630 = vector.load %arg7[%c0_148, %c0_149] : memref<256x128xbf16, #tpu.memory_space<vmem>>, vector<256x128xbf16>
    %cst_150 = arith.constant dense<0.000000e+00> : vector<8x128xf32>
    %631 = tpu.matmul %629, %630, %cst_150 {dimension_numbers = #tpu.dot_dimension_numbers<[1], [0], [0], [1], [0, 0, 1, 1], [], []>} : vector<8x256xbf16>, vector<256x128xbf16>, vector<8x128xf32> -> vector<8x128xf32>
    %c0_151 = arith.constant 0 : index
    %c0_152 = arith.constant 0 : index
    %632 = vector.load %arg8[%c0_151, %c0_152] : memref<1x128xf32, #tpu.memory_space<vmem>>, vector<1x128xf32>
    %633 = vector.broadcast %632 : vector<1x128xf32> to vector<8x128xf32>
    %634 = arith.addf %631, %633 : vector<8x128xf32>
    %c0_153 = arith.constant 0 : index
    %c0_154 = arith.constant 0 : index
    %635 = vector.load %arg9[%c0_153, %c0_154] : memref<8x128xf32, #tpu.memory_space<vmem>>, vector<8x128xf32>
    tpu.vector_store %arg9[%c0_153, %c0_154], %634 {strides = array<i32>} : memref<8x128xf32, #tpu.memory_space<vmem>>, vector<8x128xf32>,
    return
  }
  func.func @transform_0(%arg0: i32) -> (i32, i32) {
    %c0_i32 = arith.constant 0 : i32
    %c0_i32_0 = arith.constant 0 : i32
    %c0_i32_1 = arith.constant 0 : i32
    return %c0_i32, %c0_i32_0 : i32, i32
  }
  func.func @transform_1(%arg0: i32) -> (i32, i32) {
    %c0_i32 = arith.constant 0 : i32
    %c0_i32_0 = arith.constant 0 : i32
    %c0_i32_1 = arith.constant 0 : i32
    return %c0_i32, %c0_i32_0 : i32, i32
  }
  func.func @transform_2(%arg0: i32) -> (i32, i32) {
    %c0_i32 = arith.constant 0 : i32
    %c0_i32_0 = arith.constant 0 : i32
    %c0_i32_1 = arith.constant 0 : i32
    return %c0_i32, %c0_i32_0 : i32, i32
  }
  func.func @transform_3(%arg0: i32) -> (i32, i32) {
    %c0_i32 = arith.constant 0 : i32
    %c0_i32_0 = arith.constant 0 : i32
    %c0_i32_1 = arith.constant 0 : i32
    return %c0_i32, %c0_i32_0 : i32, i32
  }
  func.func @transform_4(%arg0: i32) -> (i32, i32) {
    %c0_i32 = arith.constant 0 : i32
    %c0_i32_0 = arith.constant 0 : i32
    %c0_i32_1 = arith.constant 0 : i32
    return %c0_i32, %c0_i32_0 : i32, i32
  }
  func.func @transform_5(%arg0: i32) -> (i32, i32) {
    %c0_i32 = arith.constant 0 : i32
    %c0_i32_0 = arith.constant 0 : i32
    %c0_i32_1 = arith.constant 0 : i32
    return %c0_i32, %c0_i32_0 : i32, i32
  }
  func.func @transform_6(%arg0: i32) -> (i32, i32) {
    %c0_i32 = arith.constant 0 : i32
    %c0_i32_0 = arith.constant 0 : i32
    %c0_i32_1 = arith.constant 0 : i32
    return %c0_i32, %c0_i32_0 : i32, i32
  }
  func.func @transform_7(%arg0: i32) -> (i32, i32) {
    %c0_i32 = arith.constant 0 : i32
    %c0_i32_0 = arith.constant 0 : i32
    %c0_i32_1 = arith.constant 0 : i32
    return %c0_i32, %c0_i32_0 : i32, i32
  }
  func.func @transform_8(%arg0: i32) -> (i32, i32) {
    %c0_i32 = arith.constant 0 : i32
    %c0_i32_0 = arith.constant 0 : i32
    %c0_i32_1 = arith.constant 0 : i32
    return %c0_i32, %c0_i32_0 : i32, i32
  }
}

</mosaic_0001>

<bundles_post_ra>
// kernel: tpu_custom_call.1
= control target key start
LH: loop header
LB: loop body
LE: loop exit
PB: predicated region body
PF: predicated region fallthrough
CT: control target
= control target key end

     0   :  { %13 = vsyncpa [#allocation5], 0  ;;  %s5692_s0 = inlined_call_operand.vmem [shape: bf16[64,32], index: 0, kind: input, shape index: {}]   ;;  %s5693_s1 = inlined_call_operand.vmem [shape: s32[8,1], index: 1, kind: input, shape index: {}]   ;;  %s5694_s2 = inlined_call_operand.hbm [shape: bf16[32,1024], index: 2, kind: input, shape index: {}]   ;;  %s5695_s3 = inlined_call_operand.vmem [shape: f32[1,1024], index: 3, kind: input, shape index: {}]   ;;  %s5696_s4 = inlined_call_operand.hbm [shape: bf16[128,512], index: 4, kind: input, shape index: {}]   ;;  %s5697_s5 = inlined_call_operand.hbm [shape: bf16[128,512], index: 5, kind: input, shape index: {}]   ;;  %s5698_s6 = inlined_call_operand.hbm [shape: bf16[256,128], index: 6, kind: input, shape index: {}]   ;;  %s5699_s7 = inlined_call_operand.vmem [shape: f32[1,128], index: 7, kind: input, shape index: {}]   ;;  %s5700_s8 = inlined_call_operand.hbm [shape: f32[8,128], index: 8, kind: output, shape index: {}]  }
   0x1   :  { %14 = vsyncpa [#allocation8], 0 }
   0x2   :  { %15 = vsyncpa [#allocation11], 0  ;;  %s40_s29 = sshll.u32 %s5696_s4, 4  ;;  %s41_s29 = int_to_ptr.hbm [resolvable:$true] %s40_s29 }
   0x3   :  { %16 = vsyncpa [#allocation6], 0  ;;  %s4195_s30 = smov [#allocation7]   ;;  %s25_s12 = sshll.u32 %s5694_s2, 4  ;;  %s26_s12 = int_to_ptr.hbm [resolvable:$true] %s25_s12 }
   0x4   :  { %s42_s9 = sshll.u32 %s4195_s30, 4  ;;  %s4196_s13 = smov 256   ;;  %s43_s9 = int_to_ptr.vmem [resolvable:$true] %s42_s9 }
   0x5   :  { %s4197_s14 = smov 16   ;;  %s4198_s15 = smov [#allocation4]  }
   0x6   :  { %48 = dma.hbm_to_vmem [thread:$0]  %s41_s29, 4096, %s43_s9, [#allocation8], %s4196_s13, %s4196_s13, %s4197_s14  }
   0x7   :  { %s27_s16 = sshll.u32 %s4198_s15, 4  ;;  %s4199_s17 = smov 512   ;;  %s28_s16 = int_to_ptr.vmem [resolvable:$true] %s27_s16 }
   0x8   :  { %s4200_s18 = smov 32   ;;  %s53_s20 = sshll.u32 %s5697_s5, 4  ;;  %s54_s20 = int_to_ptr.hbm [resolvable:$true] %s53_s20 }
   0x9   :  { %33 = dma.hbm_to_vmem [thread:$0]  %s26_s12, 2048, %s28_s16, [#allocation5], %s4199_s17, %s4199_s17, %s4200_s18  }
   0xa   :  { %s4201_s21 = smov [#allocation9]   ;;  %s66_s24 = sshll.u32 %s5698_s6, 4  ;;  %s67_s24 = int_to_ptr.hbm [resolvable:$true] %s66_s24 }
   0xb   :  { %s55_s22 = sshll.u32 %s4201_s21, 4  ;;  %s4202_s25 = smov [#allocation10]   ;;  %s56_s22 = int_to_ptr.vmem [resolvable:$true] %s55_s22 }
   0xc   :  { %61 = dma.hbm_to_vmem [thread:$0]  %s54_s20, 4096, %s56_s22, [#allocation8], %s4196_s13, %s4196_s13, %s4197_s14  }
   0xd   :  { %s68_s26 = sshll.u32 %s4202_s25, 4  ;;  %s4203_s27 = smov 64   ;;  %s69_s26 = int_to_ptr.vmem [resolvable:$true] %s68_s26 }
   0xe   :  { %s4204_s28 = smov 4  }
   0xf   :  { %74 = dma.hbm_to_vmem [thread:$0]  %s67_s24, 2048, %s69_s26, [#allocation11], %s4203_s27, %s4203_s27, %s4204_s28  }
  0x10   :  { %4187 = dma.done.wait [#allocation5], 2048  }
  0x11   :  { %4188 = vsyncadd [#allocation5], 4294965248 }
  0x12   :  { %4189 = dma.done.wait [#allocation8], 8192  }
  0x13   :  { %4190 = vsyncadd [#allocation8], 4294959104 }
  0x14   :  { %4191 = dma.done.wait [#allocation11], 2048  }
  0x15   :  { %4192 = vsyncadd [#allocation11], 4294965248  ;;  %v3260_v0 = vld [vmem:[#allocation4 + $0x40] sm:$0xf]  ;;  %v3702_v2 = vld [vmem:[#allocation4 + $0x44] sm:$0xf] }
  0x16   :  { %v3706_v1 = vld [vmem:[#allocation4 + $0x5c] sm:$0xf0]  ;;  %v3262_v4 = vld [vmem:[#allocation4 + $0x60] sm:$0xf0]  ;;  %v3703_v11 = vld [vmem:[#allocation4 + $0x4c] sm:$0xf] }
  0x17   :  { %v3261_v3 = vor.u32 %v3706_v1, %v3260_v0  ;;  %v3228_v5 = vld [vmem:[#allocation4] sm:$0xf]  ;;  %v3265_v7 = vor.u32 %v3702_v2, %v3262_v4  ;;  %v3694_v8 = vld [vmem:[#allocation4 + $0x4] sm:$0xf]  ;;  %v3270_v12 = vld [vmem:[#allocation4 + $0x68] sm:$0xf0] }
  0x18   :  { %v3698_v6 = vld [vmem:[#allocation4 + $0x1c] sm:$0xf0]  ;;  %v3230_v9 = vld [vmem:[#allocation4 + $0x20] sm:$0xf0]  ;;  %vm236_vm0 = vcmask 261120   ;;  %v4272_v15 = vld [vmem:[%s5692_s0 + $0x18] sm:$0xff]  ;;  %v3273_v18 = vor.u32 %v3703_v11, %v3270_v12 }
  0x19   :  { %255 = vmatpush.bf16.msra.mxu0 %v3261_v3  ;;  %3790 = vmatpush.bf16.msra.mxu2 %v3261_v3  ;;  %v3229_v10 = vor.u32 %v3698_v6, %v3228_v5  ;;  %v3233_v13 = vor.u32 %v3694_v8, %v3230_v9  ;;  %v4267_v14 = vld [vmem:[%s5692_s0] sm:$0xff]  ;;  %v3695_v16 = vld [vmem:[#allocation4 + $0xc] sm:$0xf]  ;;  %v3268_v17 = vld [vmem:[#allocation4 + $0x48] sm:$0xf]  ;;  %s4206_s18 = smov [#allocation12]  }
  0x1a   :  { %284 = vmatpush.bf16.msra.mxu1 %v3265_v7  ;;  %3792 = vmatpush.bf16.msra.mxu3 %v3265_v7  ;;  %v3238_v19 = vld [vmem:[#allocation4 + $0x28] sm:$0xf0]  ;;  %v3707_v20 = vld [vmem:[#allocation4 + $0x64] sm:$0xf0]  ;;  %v3705_v24 = vld [vmem:[#allocation4 + $0x5c] sm:$0xf] }
  0x1b   :  { %v3236_v21 = vld [vmem:[#allocation4 + $0x8] sm:$0xf]  ;;  %v3269_v22 = vor.u32 %v3707_v20, %v3268_v17  ;;  %v3286_v25 = vld [vmem:[#allocation4 + $0x78] sm:$0xf0]  ;;  %v3284_v26 = vld [vmem:[#allocation4 + $0x58] sm:$0xf]  ;;  %v3241_v29 = vor.u32 %v3695_v16, %v3238_v19 }
  0x1c   :  { %v3699_v23 = vld [vmem:[#allocation4 + $0x24] sm:$0xf0]  ;;  %v3709_v27 = vld [vmem:[#allocation4 + $0x74] sm:$0xf0]  ;;  %v3276_v28 = vld [vmem:[#allocation4 + $0x50] sm:$0xf]  ;;  %v3289_v36 = vor.u32 %v3705_v24, %v3286_v25 }
  0x1d   :  { %256 = vmatpush.bf16.msra.mxu0 %v3229_v10  ;;  %3791 = vmatpush.bf16.msra.mxu2 %v3229_v10  ;;  %v3708_v30 = vld [vmem:[#allocation4 + $0x6c] sm:$0xf0]  ;;  %v3704_v31 = vld [vmem:[#allocation4 + $0x54] sm:$0xf]  ;;  %v3237_v33 = vor.u32 %v3699_v23, %v3236_v21  ;;  %v3285_v37 = vor.u32 %v3709_v27, %v3284_v26  ;;  %v4285_v44 = vld [vmem:[%s5692_s0 + $0x8] sm:$0xff]  ;;  %s3182_s4 = sshll.u32 %s4206_s18, 4  ;;  %s3183_s4 = int_to_ptr.vmem [resolvable:$true] %s3182_s4 }
  0x1e   :  { %285 = vmatpush.bf16.msra.mxu1 %v3233_v13  ;;  %3793 = vmatpush.bf16.msra.mxu3 %v3233_v13  ;;  %v3278_v32 = vld [vmem:[#allocation4 + $0x70] sm:$0xf0]  ;;  %v3277_v34 = vor.u32 %v3708_v30, %v3276_v28  ;;  %v3244_v38 = vld [vmem:[#allocation4 + $0x10] sm:$0xf]  ;;  %v3697_v45 = vld [vmem:[#allocation4 + $0x1c] sm:$0xf] }
  0x1f   :  { %v3281_v35 = vor.u32 %v3704_v31, %v3278_v32  ;;  %v3700_v39 = vld [vmem:[#allocation4 + $0x2c] sm:$0xf0]  ;;  %v3696_v40 = vld [vmem:[#allocation4 + $0x14] sm:$0xf]  ;;  %v3254_v46 = vld [vmem:[#allocation4 + $0x38] sm:$0xf0] }
  0x20   :  { %3290 = vmatmul.msk.bf16.vlgmr.msra.gmra.mxu0 %vm236_vm0, %v4267_v14  ;;  %3293 = vmatmul.msk.bf16.vlgmr.msra.gmra.mxu2 %vm236_vm0, %v4272_v15  ;;  %v3245_v41 = vor.u32 %v3700_v39, %v3244_v38  ;;  %v3246_v42 = vld [vmem:[#allocation4 + $0x30] sm:$0xf0]  ;;  %v3252_v47 = vld [vmem:[#allocation4 + $0x18] sm:$0xf]  ;;  %v3257_v48 = vor.u32 %v3697_v45, %v3254_v46  ;;  %v3436_v52 = vld [vmem:[#allocation7 + $0xe0] sm:$0xf] }
  0x21   :  { %313 = vmatpush.bf16.msrb.mxu2 %v3269_v22  ;;  %3294 = vmatmul.msk.bf16.vlgmr.msra.gmra.mxu1 %vm236_vm0, %v4267_v14  ;;  %v3249_v43 = vor.u32 %v3696_v40, %v3246_v42  ;;  %v3701_v49 = vld [vmem:[#allocation4 + $0x34] sm:$0xf0]  ;;  %v4298_v51 = vld [vmem:[%s5692_s0 + $0x10] sm:$0xff]  ;;  %v3738_v54 = vld [vmem:[#allocation7 + $0xe4] sm:$0xf]  ;;  %s3184_s21 = sshll.u32 %s5700_s8, 4  ;;  %s3185_s21 = int_to_ptr.hbm [resolvable:$true] %s3184_s21 }
  0x22   :  { %342 = vmatpush.bf16.msrb.mxu3 %v3273_v18  ;;  %371 = vmatpush.bf16.msrb.mxu0 %v3277_v34  ;;  %v3253_v50 = vor.u32 %v3701_v49, %v3252_v47  ;;  %v3740_v53 = vld [vmem:[#allocation7 + $0xec] sm:$0xf0]  ;;  %v3438_v56 = vld [vmem:[#allocation7 + $0xf0] sm:$0xf0]  ;;  %v3420_v57 = vld [vmem:[#allocation7 + $0xc0] sm:$0xf] }
  0x23   :  { %3297 = vmatmul.msk.bf16.vlgmr.msra.gmra.mxu3 %vm236_vm0, %v4272_v15  ;;  %400 = vmatpush.bf16.msrb.mxu1 %v3281_v35  ;;  %v4308_v55 = vor.u32 %v3740_v53, %v3436_v52  ;;  %v3736_v58 = vld [vmem:[#allocation7 + $0xcc] sm:$0xf0]  ;;  %v4310_v59 = vor.u32 %v3738_v54, %v3438_v56  ;;  %v3734_v60 = vld [vmem:[#allocation7 + $0xc4] sm:$0xf]  ;;  %v3422_v61 = vld [vmem:[#allocation7 + $0xd0] sm:$0xf0] }
  0x24   :  { %v4313_v62 = vor.u32 %v3736_v58, %v3420_v57  ;;  %v4316_v63 = vor.u32 %v3734_v60, %v3422_v61  ;;  %v3404_v0 = vld [vmem:[#allocation7 + $0xa0] sm:$0xf]  ;;  %v3732_v1 = vld [vmem:[#allocation7 + $0xac] sm:$0xf0]  ;;  %v3730_v2 = vld [vmem:[#allocation7 + $0xa4] sm:$0xf] }
  0x25   :  { %314 = vmatpush.bf16.msrb.mxu2 %v3237_v33  ;;  %5812 = vst [vmem:[#allocation17_spill] sm:$0xff] %v4308_v55  ;;  %v3406_v3 = vld [vmem:[#allocation7 + $0xb0] sm:$0xf0]  ;;  %v4319_v4 = vor.u32 %v3732_v1, %v3404_v0  ;;  %v3388_v6 = vld [vmem:[#allocation7 + $0x80] sm:$0xf] }
  0x26   :  { %343 = vmatpush.bf16.msrb.mxu3 %v3241_v29  ;;  %372 = vmatpush.bf16.msrb.mxu0 %v3245_v41  ;;  %5813 = vst [vmem:[#allocation18_spill] sm:$0xff] %v4310_v59  ;;  %v4322_v5 = vor.u32 %v3730_v2, %v3406_v3  ;;  %v3728_v7 = vld [vmem:[#allocation7 + $0x8c] sm:$0xf0]  ;;  %v3726_v8 = vld [vmem:[#allocation7 + $0x84] sm:$0xf] }
  0x27   :  { %401 = vmatpush.bf16.msrb.mxu1 %v3249_v43  ;;  %5814 = vst [vmem:[#allocation19_spill] sm:$0xff] %v4313_v62  ;;  %v4326_v9 = vor.u32 %v3728_v7, %v3388_v6  ;;  %v3390_v10 = vld [vmem:[#allocation7 + $0x90] sm:$0xf0]  ;;  %v3739_v12 = vld [vmem:[#allocation7 + $0xec] sm:$0xf] }
  0x28   :  { %5815 = vst [vmem:[#allocation20_spill] sm:$0xff] %v4316_v63  ;;  %v4332_v11 = vor.u32 %v3726_v8, %v3390_v10  ;;  %v3446_v13 = vld [vmem:[#allocation7 + $0xf8] sm:$0xf0]  ;;  %v3372_v16 = vld [vmem:[#allocation7 + $0x60] sm:$0xf] }
  0x29   :  { %429 = vmatpush.bf16.msra.mxu2 %v3285_v37  ;;  %5816 = vst [vmem:[#allocation21_spill] sm:$0xff] %v4322_v5  ;;  %v4340_v17 = vor.u32 %v3739_v12, %v3446_v13  ;;  %v3724_v18 = vld [vmem:[#allocation7 + $0x6c] sm:$0xf0]  ;;  %v3722_v19 = vld [vmem:[#allocation7 + $0x64] sm:$0xf] }
  0x2a   :  { %458 = vmatpush.bf16.msra.mxu3 %v3289_v36  ;;  %745 = vmatpush.bf16.msra.mxu0 %v4308_v55  ;;  %5817 = vst [vmem:[#allocation22_spill] sm:$0xff] %v4326_v9  ;;  %v3374_v20 = vld [vmem:[#allocation7 + $0x70] sm:$0xf0]  ;;  %v4342_v21 = vor.u32 %v3724_v18, %v3372_v16  ;;  %v3356_v23 = vld [vmem:[#allocation7 + $0x40] sm:$0xf] }
  0x2b   :  { %758 = vmatpush.bf16.msra.mxu1 %v4310_v59  ;;  %5818 = vst [vmem:[#allocation23_spill] sm:$0xff] %v4332_v11  ;;  %v4344_v22 = vor.u32 %v3722_v19, %v3374_v20  ;;  %v3720_v24 = vld [vmem:[#allocation7 + $0x4c] sm:$0xf0]  ;;  %v3718_v25 = vld [vmem:[#allocation7 + $0x44] sm:$0xf] }
  0x2c   :  { %v3358_v26 = vld [vmem:[#allocation7 + $0x50] sm:$0xf0]  ;;  %v3735_v27 = vld [vmem:[#allocation7 + $0xcc] sm:$0xf]  ;;  %v3430_v28 = vld [vmem:[#allocation7 + $0xd8] sm:$0xf0]  ;;  %v4351_v32 = vor.u32 %v3720_v24, %v3356_v23 }
  0x2d   :  { %430 = vmatpush.bf16.msra.mxu2 %v3253_v50  ;;  %v4347_v29 = vor.u32 %v3735_v27, %v3430_v28  ;;  %v3444_v30 = vld [vmem:[#allocation7 + $0xe8] sm:$0xf]  ;;  %v3741_v31 = vld [vmem:[#allocation7 + $0xf4] sm:$0xf0]  ;;  %v4353_v33 = vor.u32 %v3718_v25, %v3358_v26  ;;  %v3340_v35 = vld [vmem:[#allocation7 + $0x20] sm:$0xf] }
  0x2e   :  { %459 = vmatpush.bf16.msra.mxu3 %v3257_v48  ;;  %746 = vmatpush.bf16.msra.mxu0 %v4313_v62  ;;  %v4355_v34 = vor.u32 %v3741_v31, %v3444_v30  ;;  %v3716_v36 = vld [vmem:[#allocation7 + $0x2c] sm:$0xf0]  ;;  %v3714_v37 = vld [vmem:[#allocation7 + $0x24] sm:$0xf]  ;;  %v3342_v38 = vld [vmem:[#allocation7 + $0x30] sm:$0xf0] }
  0x2f   :  { %759 = vmatpush.bf16.msra.mxu1 %v4316_v63  ;;  %v4361_v39 = vor.u32 %v3716_v36, %v3340_v35  ;;  %v4363_v40 = vor.u32 %v3714_v37, %v3342_v38  ;;  %v3324_v41 = vld [vmem:[#allocation7] sm:$0xf]  ;;  %v3712_v42 = vld [vmem:[#allocation7 + $0xc] sm:$0xf0]  ;;  %v3710_v43 = vld [vmem:[#allocation7 + $0x4] sm:$0xf] }
  0x30   :  { %3291 = vmatmul.msk.bf16.gmra.mxu0 %vm236_vm0, %v4285_v44  ;;  %3298 = vmatmul.msk.bf16.vlgmr.msrb.gmra.mxu2 %vm236_vm0, %v4267_v14  ;;  %v4367_v45 = vor.u32 %v3712_v42, %v3324_v41  ;;  %v3326_v46 = vld [vmem:[#allocation7 + $0x10] sm:$0xf0]  ;;  %v3564_v47 = vld [vmem:[#allocation9 + $0xe0] sm:$0xf]  ;;  %v3772_v48 = vld [vmem:[#allocation9 + $0xec] sm:$0xf0] }
  0x31   :  { %3295 = vmatmul.msk.bf16.gmra.mxu1 %vm236_vm0, %v4285_v44  ;;  %771 = vmatpush.bf16.msrb.mxu2 %v4355_v34  ;;  %v4373_v49 = vor.u32 %v3710_v43, %v3326_v46  ;;  %v4375_v50 = vor.u32 %v3772_v48, %v3564_v47  ;;  %v3770_v52 = vld [vmem:[#allocation9 + $0xe4] sm:$0xf]  ;;  %v3566_v53 = vld [vmem:[#allocation9 + $0xf0] sm:$0xf0]  ;;  %v3731_v54 = vld [vmem:[#allocation7 + $0xac] sm:$0xf] }
  0x32   :  { %747 = vmatpush.bf16.msra.mxu0 %v4319_v4  ;;  %v3414_v56 = vld [vmem:[#allocation7 + $0xb8] sm:$0xf0]  ;;  %v4381_v57 = vor.u32 %v3770_v52, %v3566_v53  ;;  %v3428_v58 = vld [vmem:[#allocation7 + $0xc8] sm:$0xf]  ;;  %v3737_v61 = vld [vmem:[#allocation7 + $0xd4] sm:$0xf0] }
  0x33   :  { %3302 = vmatmul.msk.bf16.vlgmr.msrb.gmra.mxu3 %vm236_vm0, %v4267_v14  ;;  %760 = vmatpush.bf16.msra.mxu1 %v4322_v5  ;;  %5819 = vst [vmem:[#allocation24_spill] sm:$0xff] %v4373_v49  ;;  %v4385_v60 = vor.u32 %v3731_v54, %v3414_v56  ;;  %v3548_v0 = vld [vmem:[#allocation9 + $0xc0] sm:$0xf]  ;;  %v3768_v1 = vld [vmem:[#allocation9 + $0xcc] sm:$0xf0]  ;;  %v4389_v2 = vor.u32 %v3737_v61, %v3428_v58 }
  0x34   :  { %784 = vmatpush.bf16.msrb.mxu3 %v4340_v17  ;;  %5820 = vst [vmem:[#allocation25_spill] sm:$0xff] %v4375_v50  ;;  %v4391_v3 = vor.u32 %v3768_v1, %v3548_v0  ;;  %v3766_v6 = vld [vmem:[#allocation9 + $0xc4] sm:$0xf]  ;;  %v3550_v7 = vld [vmem:[#allocation9 + $0xd0] sm:$0xf0] }
  0x35   :  { %5821 = vst [vmem:[#allocation26_spill] sm:$0xff] %v4381_v57  ;;  %v3727_v8 = vld [vmem:[#allocation7 + $0x8c] sm:$0xf]  ;;  %v4394_v10 = vor.u32 %v3766_v6, %v3550_v7  ;;  %v3398_v12 = vld [vmem:[#allocation7 + $0x98] sm:$0xf0]  ;;  %772 = vmatpush.bf16.msrb.mxu2 %v4389_v2  ;;  %v5701_v7 = vmov 0  }
  0x36   :  { %748 = vmatpush.bf16.msra.mxu0 %v4326_v9  ;;  %5822 = vst [vmem:[#allocation27_spill] sm:$0xff] %v4391_v3  ;;  %v3532_v13 = vld [vmem:[#allocation9 + $0xa0] sm:$0xf]  ;;  %v3764_v16 = vld [vmem:[#allocation9 + $0xac] sm:$0xf0]  ;;  %v4397_v18 = vor.u32 %v3727_v8, %v3398_v12  ;;  %3806 = vset.pattern.permute.xlu0 %v5701_v7 }
  0x37   :  { %761 = vmatpush.bf16.msra.mxu1 %v4332_v11  ;;  %5823 = vst [vmem:[#allocation28_spill] sm:$0xff] %v4394_v10  ;;  %v3762_v19 = vld [vmem:[#allocation9 + $0xa4] sm:$0xf]  ;;  %v3534_v20 = vld [vmem:[#allocation9 + $0xb0] sm:$0xf0]  ;;  %v4401_v25 = vor.u32 %v3764_v16, %v3532_v13  ;;  %3807 = vset.pattern.permute.xlu1 %v5701_v7 }
  0x38   :  { %785 = vmatpush.bf16.msrb.mxu3 %v4347_v29  ;;  %v3412_v23 = vld [vmem:[#allocation7 + $0xa8] sm:$0xf]  ;;  %v3733_v24 = vld [vmem:[#allocation7 + $0xb4] sm:$0xf0]  ;;  %v4403_v26 = vor.u32 %v3762_v19, %v3534_v20  ;;  %v3516_v28 = vld [vmem:[#allocation9 + $0x80] sm:$0xf]  ;;  %3808 = vset.pattern.permute.xlu2 %v5701_v7 }
  0x39   :  { %5824 = vst [vmem:[#allocation29_spill] sm:$0xff] %v4401_v25  ;;  %v4405_v27 = vor.u32 %v3733_v24, %v3412_v23  ;;  %v3760_v30 = vld [vmem:[#allocation9 + $0x8c] sm:$0xf0]  ;;  %v3758_v31 = vld [vmem:[#allocation9 + $0x84] sm:$0xf] }
  0x3a   :  { %749 = vmatpush.bf16.msra.mxu0 %v4342_v21  ;;  %5825 = vst [vmem:[#allocation30_spill] sm:$0xff] %v4403_v26  ;;  %v3518_v35 = vld [vmem:[#allocation9 + $0x90] sm:$0xf0]  ;;  %v4411_v36 = vor.u32 %v3760_v30, %v3516_v28  ;;  %v3396_v38 = vld [vmem:[#allocation7 + $0x88] sm:$0xf] }
  0x3b   :  { %762 = vmatpush.bf16.msra.mxu1 %v4344_v22  ;;  %773 = vmatpush.bf16.msrb.mxu2 %v4405_v27  ;;  %v4413_v37 = vor.u32 %v3758_v31, %v3518_v35  ;;  %v3729_v41 = vld [vmem:[#allocation7 + $0x94] sm:$0xf0]  ;;  %v3500_v43 = vld [vmem:[#allocation9 + $0x60] sm:$0xf]  ;;  %v3756_v46 = vld [vmem:[#allocation9 + $0x6c] sm:$0xf0] }
  0x3c   :  { %786 = vmatpush.bf16.msrb.mxu3 %v4385_v60  ;;  %5826 = vst [vmem:[#allocation31_spill] sm:$0xff] %v4411_v36  ;;  %v4417_v42 = vor.u32 %v3729_v41, %v3396_v38  ;;  %v3754_v47 = vld [vmem:[#allocation9 + $0x64] sm:$0xf]  ;;  %v4423_v48 = vor.u32 %v3756_v46, %v3500_v43  ;;  %v3502_v52 = vld [vmem:[#allocation9 + $0x70] sm:$0xf0] }
  0x3d   :  { %5827 = vst [vmem:[#allocation32_spill] sm:$0xff] %v4413_v37  ;;  %v3723_v53 = vld [vmem:[#allocation7 + $0x6c] sm:$0xf]  ;;  %v3382_v54 = vld [vmem:[#allocation7 + $0x78] sm:$0xf0]  ;;  %v4429_v56 = vor.u32 %v3754_v47, %v3502_v52 }
  0x3e   :  { %750 = vmatpush.bf16.msra.mxu0 %v4351_v32  ;;  %5828 = vst [vmem:[#allocation33_spill] sm:$0xff] %v4423_v48  ;;  %v3380_v58 = vld [vmem:[#allocation7 + $0x68] sm:$0xf]  ;;  %v4432_v61 = vor.u32 %v3723_v53, %v3382_v54  ;;  %v3725_v0 = vld [vmem:[#allocation7 + $0x74] sm:$0xf0] }
  0x3f   :  { %763 = vmatpush.bf16.msra.mxu1 %v4353_v33  ;;  %5829 = vst [vmem:[#allocation34_spill] sm:$0xff] %v4429_v56  ;;  %774 = vmatpush.bf16.msrb.mxu2 %v4417_v42  ;;  %v3484_v1 = vld [vmem:[#allocation9 + $0x40] sm:$0xf]  ;;  %v3752_v6 = vld [vmem:[#allocation9 + $0x4c] sm:$0xf0] }
  0x40   :  { %3292 = vmatmul.msk.bf16.gmra.mxu0 %vm236_vm0, %v4298_v51  ;;  %3299 = vmatmul.msk.bf16.gmra.mxu2 %vm236_vm0, %v4285_v44  ;;  %v4439_v8 = vor.u32 %v3752_v6, %v3484_v1  ;;  %v3750_v12 = vld [vmem:[#allocation9 + $0x44] sm:$0xf]  ;;  %v3486_v13 = vld [vmem:[#allocation9 + $0x50] sm:$0xf0]  ;;  %v3364_v16 = vld [vmem:[#allocation7 + $0x48] sm:$0xf] }
  0x41   :  { %3296 = vmatmul.msk.bf16.gmra.mxu1 %vm236_vm0, %v4298_v51  ;;  %787 = vmatpush.bf16.msrb.mxu3 %v4397_v18  ;;  %v4442_v19 = vor.u32 %v3750_v12, %v3486_v13  ;;  %v3721_v20 = vld [vmem:[#allocation7 + $0x54] sm:$0xf0]  ;;  %v3719_v23 = vld [vmem:[#allocation7 + $0x4c] sm:$0xf]  ;;  %v3366_v24 = vld [vmem:[#allocation7 + $0x58] sm:$0xf0] }
  0x42   :  { %751 = vmatpush.bf16.msra.mxu0 %v4361_v39  ;;  %5830 = vst [vmem:[#allocation35_spill] sm:$0xff] %v4439_v8  ;;  %v4445_v28 = vor.u32 %v3719_v23, %v3366_v24  ;;  %v3468_v30 = vld [vmem:[#allocation9 + $0x20] sm:$0xf]  ;;  %v3748_v31 = vld [vmem:[#allocation9 + $0x2c] sm:$0xf0]  ;;  %v4449_v38 = vor.u32 %v3721_v20, %v3364_v16 }
  0x43   :  { %3303 = vmatmul.msk.bf16.gmra.mxu3 %vm236_vm0, %v4285_v44  ;;  %764 = vmatpush.bf16.msra.mxu1 %v4363_v40  ;;  %5831 = vst [vmem:[#allocation36_spill] sm:$0xff] %v4442_v19  ;;  %v3746_v35 = vld [vmem:[#allocation9 + $0x24] sm:$0xf]  ;;  %v3470_v41 = vld [vmem:[#allocation9 + $0x30] sm:$0xf0]  ;;  %v4453_v46 = vor.u32 %v3748_v31, %v3468_v30 }
  0x44   :  { %v3348_v43 = vld [vmem:[#allocation7 + $0x28] sm:$0xf]  ;;  %v4455_v47 = vor.u32 %v3746_v35, %v3470_v41  ;;  %v3717_v52 = vld [vmem:[#allocation7 + $0x34] sm:$0xf0]  ;;  %v3715_v53 = vld [vmem:[#allocation7 + $0x2c] sm:$0xf] }
  0x45   :  { %788 = vmatpush.bf16.msrb.mxu3 %v4432_v61  ;;  %5832 = vst [vmem:[#allocation37_spill] sm:$0xff] %v4453_v46  ;;  %v3350_v54 = vld [vmem:[#allocation7 + $0x38] sm:$0xf0]  ;;  %v3452_v1 = vld [vmem:[#allocation9] sm:$0xf] }
  0x46   :  { %752 = vmatpush.bf16.msra.mxu0 %v4367_v45  ;;  %5833 = vst [vmem:[#allocation38_spill] sm:$0xff] %v4455_v47  ;;  %v3744_v6 = vld [vmem:[#allocation9 + $0xc] sm:$0xf0]  ;;  %v3742_v12 = vld [vmem:[#allocation9 + $0x4] sm:$0xf] }
  0x47   :  { %765 = vmatpush.bf16.msra.mxu1 %v4373_v49  ;;  %v4466_v13 = vor.u32 %v3744_v6, %v3452_v1  ;;  %v3454_v16 = vld [vmem:[#allocation9 + $0x10] sm:$0xf0]  ;;  %v3332_v23 = vld [vmem:[#allocation7 + $0x8] sm:$0xf]  ;;  %v3713_v24 = vld [vmem:[#allocation7 + $0x14] sm:$0xf0] }
  0x48   :  { %v4468_v20 = vor.u32 %v3742_v12, %v3454_v16  ;;  %v4473_v30 = vor.u32 %v3713_v24, %v3332_v23  ;;  %v3711_v31 = vld [vmem:[#allocation7 + $0xc] sm:$0xf]  ;;  %v3334_v35 = vld [vmem:[#allocation7 + $0x18] sm:$0xf0]  ;;  %v3572_v41 = vld [vmem:[#allocation9 + $0xe8] sm:$0xf] }
  0x49   :  { %789 = vmatpush.bf16.msrb.mxu3 %v4445_v28  ;;  %5834 = vst [vmem:[#allocation39_spill] sm:$0xff] %v4466_v13  ;;  %v3556_v12 = vld [vmem:[#allocation9 + $0xc8] sm:$0xf]  ;;  %v3769_v16 = vld [vmem:[#allocation9 + $0xd4] sm:$0xf0] }
  0x4a   :  { %5835 = vst [vmem:[#allocation40_spill] sm:$0xff] %v4468_v20  ;;  %v3767_v23 = vld [vmem:[#allocation9 + $0xcc] sm:$0xf]  ;;  %v4493_v24 = vor.u32 %v3769_v16, %v3556_v12  ;;  %v3524_v12 = vld [vmem:[#allocation9 + $0x88] sm:$0xf] }
  0x4b   :  { %5836 = vst [vmem:[#allocation41_spill] sm:$0xff] %v4473_v30  ;;  %v3761_v16 = vld [vmem:[#allocation9 + $0x94] sm:$0xf0] }
  0x4c   :  { %5840 = vst [vmem:[#allocation45_spill] sm:$0xff] %v4493_v24 }
  0x50   :  { %3300 = vmatmul.msk.bf16.gmra.mxu2 %vm236_vm0, %v4298_v51  ;;  %3306 = vmatmul.msk.bf16.vlgmr.msrb.gmra.mxu0 %vm236_vm0, %v4267_v14 }
  0x51   :  { %3310 = vmatmul.msk.bf16.vlgmr.msrb.gmra.mxu1 %vm236_vm0, %v4267_v14  ;;  %1000 = vmatpush.bf16.msrb.mxu0 %v4375_v50 }
  0x52   :  { %1013 = vmatpush.bf16.msrb.mxu1 %v4381_v57 }
  0x53   :  { %3304 = vmatmul.msk.bf16.gmra.mxu3 %vm236_vm0, %v4298_v51 }
  0x55   :  { %1001 = vmatpush.bf16.msrb.mxu0 %v4391_v3 }
  0x56   :  { %1014 = vmatpush.bf16.msrb.mxu1 %v4394_v10 }
  0x59   :  { %1002 = vmatpush.bf16.msrb.mxu0 %v4401_v25 }
  0x5a   :  { %1015 = vmatpush.bf16.msrb.mxu1 %v4403_v26 }
  0x5d   :  { %1003 = vmatpush.bf16.msrb.mxu0 %v4411_v36 }
  0x5e   :  { %1016 = vmatpush.bf16.msrb.mxu1 %v4413_v37 }
  0x60   :  { %3301 = vmatmul.msk.bf16.gmra.mxu2 %vm236_vm0, %v4272_v15  ;;  %3307 = vmatmul.msk.bf16.gmra.mxu0 %vm236_vm0, %v4285_v44 }
  0x61   :  { %3311 = vmatmul.msk.bf16.gmra.mxu1 %vm236_vm0, %v4285_v44  ;;  %1004 = vmatpush.bf16.msrb.mxu0 %v4423_v48 }
  0x62   :  { %1017 = vmatpush.bf16.msrb.mxu1 %v4429_v56 }
  0x63   :  { %3305 = vmatmul.msk.bf16.gmra.mxu3 %vm236_vm0, %v4272_v15 }
  0x65   :  { %1005 = vmatpush.bf16.msrb.mxu0 %v4439_v8 }
  0x66   :  { %1018 = vmatpush.bf16.msrb.mxu1 %v4442_v19 }
  0x69   :  { %1006 = vmatpush.bf16.msrb.mxu0 %v4453_v46 }
  0x6a   :  { %1019 = vmatpush.bf16.msrb.mxu1 %v4455_v47 }
  0x6d   :  { %1007 = vmatpush.bf16.msrb.mxu0 %v4466_v13 }
  0x6e   :  { %1020 = vmatpush.bf16.msrb.mxu1 %v4468_v20 }
  0x70   :  { %3308 = vmatmul.msk.bf16.gmra.mxu0 %vm236_vm0, %v4298_v51  ;;  %3314 = vmatmul.msk.bf16.vlgmr.msra.gmra.mxu2 %vm236_vm0, %v4267_v14 }
  0x71   :  { %3312 = vmatmul.msk.bf16.gmra.mxu1 %vm236_vm0, %v4298_v51 }
  0x73   :  { %3318 = vmatmul.msk.bf16.vlgmr.msra.gmra.mxu3 %vm236_vm0, %v4267_v14  ;;  %v4437_v14 = vor.u32 %v3725_v0, %v3380_v58  ;;  %v4458_v58 = vor.u32 %v3715_v53, %v3350_v54  ;;  %v4461_v0 = vor.u32 %v3717_v52, %v3348_v43  ;;  %v4479_v43 = vor.u32 %v3711_v31, %v3334_v35  ;;  %v3773_v52 = vld [vmem:[#allocation9 + $0xf4] sm:$0xf0]  ;;  %v3771_v53 = vld [vmem:[#allocation9 + $0xec] sm:$0xf]  ;;  %v3574_v54 = vld [vmem:[#allocation9 + $0xf8] sm:$0xf0] }
  0x74   :  { %v4485_v1 = vor.u32 %v3773_v52, %v3572_v41  ;;  %v4487_v6 = vor.u32 %v3771_v53, %v3574_v54  ;;  %v3558_v31 = vld [vmem:[#allocation9 + $0xd8] sm:$0xf0]  ;;  %v3765_v41 = vld [vmem:[#allocation9 + $0xb4] sm:$0xf0]  ;;  %v3763_v52 = vld [vmem:[#allocation9 + $0xac] sm:$0xf] }
  0x75   :  { %775 = vmatpush.bf16.msrb.mxu2 %v4437_v14  ;;  %790 = vmatpush.bf16.msrb.mxu3 %v4458_v58  ;;  %5837 = vst [vmem:[#allocation42_spill] sm:$0xff] %v4479_v43  ;;  %v4495_v35 = vor.u32 %v3767_v23, %v3558_v31  ;;  %v3542_v54 = vld [vmem:[#allocation9 + $0xb8] sm:$0xf0]  ;;  %v3759_v23 = vld [vmem:[#allocation9 + $0x8c] sm:$0xf]  ;;  %v4505_v31 = vor.u32 %v3761_v16, %v3524_v12 }
  0x76   :  { %5838 = vst [vmem:[#allocation43_spill] sm:$0xff] %v4485_v1  ;;  %v4501_v7 = vor.u32 %v3763_v52, %v3542_v54  ;;  %v3755_v52 = vld [vmem:[#allocation9 + $0x6c] sm:$0xf]  ;;  %v5846_v54 = vmov 0   ;;  %v3492_v12 = vld [vmem:[#allocation9 + $0x48] sm:$0xf] }
  0x77   :  { %5839 = vst [vmem:[#allocation44_spill] sm:$0xff] %v4487_v6  ;;  %v3753_v16 = vld [vmem:[#allocation9 + $0x54] sm:$0xf0] }
  0x78   :  { %5841 = vst [vmem:[#allocation46_spill] sm:$0xff] %v4495_v35 }
  0x79   :  { %776 = vmatpush.bf16.msrb.mxu2 %v4449_v38  ;;  %791 = vmatpush.bf16.msrb.mxu3 %v4479_v43  ;;  %5843 = vst [vmem:[#allocation48_spill] sm:$0xff] %v4501_v7 }
  0x7a   :  { %5844 = vst [vmem:[#allocation49_spill] sm:$0xff] %v4505_v31 }
  0x7d   :  { %777 = vmatpush.bf16.msrb.mxu2 %v4461_v0  ;;  %1039 = vmatpush.bf16.msra.mxu3 %v4487_v6 }
  0x80   :  { %3309 = vmatmul.msk.bf16.gmra.mxu0 %vm236_vm0, %v4272_v15  ;;  %3315 = vmatmul.msk.bf16.gmra.mxu2 %vm236_vm0, %v4285_v44 }
  0x81   :  { %3313 = vmatmul.msk.bf16.gmra.mxu1 %vm236_vm0, %v4272_v15  ;;  %778 = vmatpush.bf16.msrb.mxu2 %v4473_v30 }
  0x82   :  { %1040 = vmatpush.bf16.msra.mxu3 %v4495_v35 }
  0x83   :  { %3319 = vmatmul.msk.bf16.gmra.mxu3 %vm236_vm0, %v4285_v44  ;;  %v3540_v44 = vld [vmem:[#allocation9 + $0xa8] sm:$0xf] }
  0x84   :  { %v4499_v53 = vor.u32 %v3765_v41, %v3540_v44  ;;  %v3508_v44 = vld [vmem:[#allocation9 + $0x68] sm:$0xf]  ;;  %v3757_v41 = vld [vmem:[#allocation9 + $0x74] sm:$0xf0] }
  0x85   :  { %1026 = vmatpush.bf16.msra.mxu2 %v4485_v1 }
  0x86   :  { %5842 = vst [vmem:[#allocation47_spill] sm:$0xff] %v4499_v53  ;;  %1041 = vmatpush.bf16.msra.mxu3 %v4501_v7  ;;  %v4514_v7 = vor.u32 %v3757_v41, %v3508_v44  ;;  %v3751_v44 = vld [vmem:[#allocation9 + $0x4c] sm:$0xf]  ;;  %v3494_v41 = vld [vmem:[#allocation9 + $0x58] sm:$0xf0] }
  0x88   :  { %5847 = vst [vmem:[#allocation51_spill] sm:$0xff] %v4514_v7 }
  0x89   :  { %1027 = vmatpush.bf16.msra.mxu2 %v4493_v24  ;;  %v3526_v24 = vld [vmem:[#allocation9 + $0x98] sm:$0xf0] }
  0x8a   :  { %v4507_v6 = vor.u32 %v3759_v23, %v3526_v24  ;;  %v4525_v23 = vor.u32 %v3753_v16, %v3492_v12  ;;  %v3460_v16 = vld [vmem:[#allocation9 + $0x8] sm:$0xf] }
  0x8c   :  { %5845 = vst [vmem:[#allocation50_spill] sm:$0xff] %v4507_v6  ;;  %1042 = vmatpush.bf16.msra.mxu3 %v4507_v6  ;;  %v4527_v6 = vor.u32 %v3751_v44, %v3494_v41  ;;  %v3745_v44 = vld [vmem:[#allocation9 + $0x14] sm:$0xf0]  ;;  %v3743_v41 = vld [vmem:[#allocation9 + $0xc] sm:$0xf] }
  0x8d   :  { %1028 = vmatpush.bf16.msra.mxu2 %v4499_v53  ;;  %v3510_v53 = vld [vmem:[#allocation9 + $0x78] sm:$0xf0]  ;;  %5849 = vst [vmem:[#allocation53_spill] sm:$0xff] %v4525_v23 }
  0x8e   :  { %v4519_v24 = vor.u32 %v3755_v52, %v3510_v53  ;;  %5850 = vst [vmem:[#allocation54_spill] sm:$0xff] %v4527_v6  ;;  %v3749_v53 = vld [vmem:[#allocation9 + $0x34] sm:$0xf0]  ;;  %v3747_v52 = vld [vmem:[#allocation9 + $0x2c] sm:$0xf] }
  0x90   :  { %3316 = vmatmul.msk.bf16.gmra.mxu2 %vm236_vm0, %v4298_v51  ;;  %753 = vmatmul.bf16.vlgmr.msra.gmra.mxu0 %v5846_v54  ;;  %5848 = vst [vmem:[#allocation52_spill] sm:$0xff] %v4519_v24 }
  0x91   :  { %1029 = vmatpush.bf16.msra.mxu2 %v4505_v31  ;;  %766 = vmatmul.bf16.vlgmr.msra.gmra.mxu1 %v5846_v54 }
  0x92   :  { %1204 = vmatpush.bf16.msra.mxu0 %v4308_v55  ;;  %1217 = vmatpush.bf16.msra.mxu1 %v4310_v59  ;;  %v3478_v55 = vld [vmem:[#allocation9 + $0x38] sm:$0xf0] }
  0x93   :  { %3320 = vmatmul.msk.bf16.gmra.mxu3 %vm236_vm0, %v4298_v51  ;;  %v3476_v51 = vld [vmem:[#allocation9 + $0x28] sm:$0xf]  ;;  %v4535_v12 = vor.u32 %v3747_v52, %v3478_v55  ;;  %v4550_v55 = vld [vmem:[%s5695_s3] sm:$0xff] }
  0x94   :  { %1043 = vmatpush.bf16.msra.mxu3 %v4519_v24  ;;  %v4533_v59 = vor.u32 %v3749_v53, %v3476_v51  ;;  %v4559_v52 = vperm.slane %v4550_v55, 0 }
  0x95   :  { %1030 = vmatpush.bf16.msra.mxu2 %v4514_v7  ;;  %5852 = vst [vmem:[#allocation56_spill] sm:$0xff] %v4535_v12 }
  0x96   :  { %1205 = vmatpush.bf16.msra.mxu0 %v4313_v62  ;;  %1218 = vmatpush.bf16.msra.mxu1 %v4316_v63  ;;  %5851 = vst [vmem:[#allocation55_spill] sm:$0xff] %v4533_v59  ;;  %v4541_v63 = vor.u32 %v3745_v44, %v3460_v16  ;;  %v3462_v62 = vld [vmem:[#allocation9 + $0x18] sm:$0xf0] }
  0x97   :  { %v4545_v51 = vor.u32 %v3743_v41, %v3462_v62  ;;  %5855 = vst [vmem:[#allocation59_spill] sm:$0xff] %v4559_v52  ;;  %v4565_v62 = vperm.slane %v4550_v55, 1 }
  0x98   :  { %1044 = vmatpush.bf16.msra.mxu3 %v4527_v6  ;;  %5853 = vst [vmem:[#allocation57_spill] sm:$0xff] %v4541_v63 }
  0x99   :  { %1031 = vmatpush.bf16.msra.mxu2 %v4525_v23  ;;  %5854 = vst [vmem:[#allocation58_spill] sm:$0xff] %v4545_v51 }
  0x9a   :  { %1206 = vmatpush.bf16.msra.mxu0 %v4319_v4  ;;  %1219 = vmatpush.bf16.msra.mxu1 %v4322_v5  ;;  %5856 = vst [vmem:[#allocation60_spill] sm:$0xff] %v4565_v62 }
  0x9c   :  { %1045 = vmatpush.bf16.msra.mxu3 %v4535_v12 }
  0x9d   :  { %1032 = vmatpush.bf16.msra.mxu2 %v4533_v59  ;;  %v4543_v6 = vpop.f32.mrf.mxu0 }
  0x9e   :  { %v4552_v53 = vpop.f32.mrf.mxu1  ;;  %1207 = vmatpush.bf16.msra.mxu0 %v4326_v9  ;;  %1220 = vmatpush.bf16.msra.mxu1 %v4332_v11 }
  0xa0   :  { %1046 = vmatpush.bf16.msra.mxu3 %v4545_v51  ;;  %3317 = vmatmul.msk.bf16.gmra.mxu2 %vm236_vm0, %v4272_v15 }
  0xa1   :  { %1033 = vmatpush.bf16.msra.mxu2 %v4541_v63  ;;  %1008 = vmatmul.bf16.vlgmr.msrb.gmra.mxu0 %v5846_v54 }
  0xa2   :  { %1021 = vmatmul.bf16.vlgmr.msrb.gmra.mxu1 %v5846_v54  ;;  %1208 = vmatpush.bf16.msra.mxu0 %v4342_v21 }
  0xa3   :  { %3321 = vmatmul.msk.bf16.gmra.mxu3 %vm236_vm0, %v4272_v15  ;;  %1221 = vmatpush.bf16.msra.mxu1 %v4344_v22  ;;  %v273_v16 = vpop.f32.mrf.mxu2 }
  0xa4   :  { %v4573_v44 = vadd.f32 %v273_v16, %v4559_v52 }
  0xa5   :  { %v4578_v9 = vpop.f32.mrf.mxu0 }
  0xa6   :  { %5857 = vst [vmem:[#allocation61_spill] sm:$0xff] %v4573_v44  ;;  %v302_v41 = vpop.f32.mrf.mxu3  ;;  %v4580_v5 = vpop.f32.mrf.mxu1  ;;  %1209 = vmatpush.bf16.msra.mxu0 %v4351_v32 }
  0xa7   :  { %v4576_v11 = vadd.f32 %v302_v41, %v4565_v62  ;;  %5859 = vst [vmem:[#allocation63_spill] sm:$0xff] %v4578_v9  ;;  %1222 = vmatpush.bf16.msra.mxu1 %v4353_v33 }
  0xa8   :  { %5860 = vst [vmem:[#allocation64_spill] sm:$0xff] %v4580_v5 }
  0xa9   :  { %5858 = vst [vmem:[#allocation62_spill] sm:$0xff] %v4576_v11 }
  0xaa   :  { %1210 = vmatpush.bf16.msra.mxu0 %v4361_v39 }
  0xab   :  { %1223 = vmatpush.bf16.msra.mxu1 %v4363_v40  ;;  %v4586_v15 = vpop.f32.mrf.mxu2 }
  0xac   :  { %5861 = vst [vmem:[#allocation65_spill] sm:$0xff] %v4586_v15 }
  0xad   :  { %v263_v44 = vpop.f32.mrf.mxu0 }
  0xae   :  { %v4588_v16 = vpop.f32.mrf.mxu3  ;;  %v4591_v41 = vadd.f32 %v263_v44, %v4559_v52  ;;  %v292_v11 = vpop.f32.mrf.mxu1  ;;  %1211 = vmatpush.bf16.msra.mxu0 %v4367_v45 }
  0xaf   :  { %5862 = vst [vmem:[#allocation66_spill] sm:$0xff] %v4588_v16  ;;  %1224 = vmatpush.bf16.msra.mxu1 %v4373_v49  ;;  %v4596_v5 = vadd.f32 %v292_v11, %v4565_v62 }
  0xb0   :  { %5863 = vst [vmem:[#allocation67_spill] sm:$0xff] %v4591_v41  ;;  %779 = vmatmul.bf16.vlgmr.msrb.gmra.mxu2 %v5846_v54 }
  0xb1   :  { %5864 = vst [vmem:[#allocation68_spill] sm:$0xff] %v4596_v5  ;;  %1230 = vmatpush.bf16.msrb.mxu2 %v4355_v34 }
  0xb2   :  { %1268 = vmatpush.bf16.msrb.mxu0 %v4375_v50 }
  0xb3   :  { %1281 = vmatpush.bf16.msrb.mxu1 %v4381_v57  ;;  %792 = vmatmul.bf16.vlgmr.msrb.gmra.mxu3 %v5846_v54  ;;  %v4604_v44 = vpop.f32.mrf.mxu2 }
  0xb4   :  { %1243 = vmatpush.bf16.msrb.mxu3 %v4340_v17 }
  0xb5   :  { %v4610_v16 = vpop.f32.mrf.mxu0  ;;  %1231 = vmatpush.bf16.msrb.mxu2 %v4389_v2 }
  0xb6   :  { %1269 = vmatpush.bf16.msrb.mxu0 %v4391_v3  ;;  %v4608_v11 = vpop.f32.mrf.mxu3  ;;  %5865 = vst [vmem:[#allocation69_spill] sm:$0xff] %v4610_v16  ;;  %v4613_v15 = vpop.f32.mrf.mxu1 }
  0xb7   :  { %1282 = vmatpush.bf16.msrb.mxu1 %v4394_v10  ;;  %5866 = vst [vmem:[#allocation70_spill] sm:$0xff] %v4613_v15 }
  0xb8   :  { %1244 = vmatpush.bf16.msrb.mxu3 %v4347_v29 }
  0xb9   :  { %1232 = vmatpush.bf16.msrb.mxu2 %v4405_v27 }
  0xba   :  { %1270 = vmatpush.bf16.msrb.mxu0 %v4401_v25  ;;  %v5892_v25 = vld [vmem:[#allocation50_spill] sm:$0xff] }
  0xbb   :  { %1283 = vmatpush.bf16.msrb.mxu1 %v4403_v26  ;;  %v4620_v5 = vpop.f32.mrf.mxu2  ;;  %v4633_v26 = vld [vmem:[%s5693_s1] sm:$0xff] }
  0xbc   :  { %1245 = vmatpush.bf16.msrb.mxu3 %v4385_v60  ;;  %5867 = vst [vmem:[#allocation71_spill] sm:$0xff] %v4620_v5  ;;  %vm1182_vm1 = vcmp.eq.s32.totalorder %v4633_v26, 0  ;;  %vm1189_vm2 = vcmp.eq.s32.totalorder %v4633_v26, 7  ;;  %vm1450_vm11 = vcmp.eq.s32.totalorder %v4633_v26, 1  ;;  %vm1457_vm15 = vcmp.eq.s32.totalorder %v4633_v26, 6 }
  0xbd   :  { %v268_v41 = vpop.f32.mrf.mxu0  ;;  %1233 = vmatpush.bf16.msrb.mxu2 %v4417_v42 }
  0xbe   :  { %1271 = vmatpush.bf16.msrb.mxu0 %v4411_v36  ;;  %v4624_v16 = vpop.f32.mrf.mxu3  ;;  %v4628_v15 = vadd.f32 %v268_v41, %v4559_v52  ;;  %v297_v9 = vpop.f32.mrf.mxu1  ;;  %v1183_v41 = vsel %vm1182_vm1, 1, %v5846_v54  ;;  %v5890_v36 = vld [vmem:[#allocation48_spill] sm:$0xff] }
  0xbf   :  { %1284 = vmatpush.bf16.msrb.mxu1 %v4413_v37  ;;  %5868 = vst [vmem:[#allocation72_spill] sm:$0xff] %v4624_v16  ;;  %v4637_v5 = vadd.f32 %v297_v9, %v4565_v62  ;;  %1185 = vperm.xlu0 %3806, %v1183_v41   ;;  %v4651_v9 = vperm.slane %v4550_v55, 3 }
  0xc0   :  { %5869 = vst [vmem:[#allocation73_spill] sm:$0xff] %v4628_v15  ;;  %1246 = vmatpush.bf16.msrb.mxu3 %v4397_v18  ;;  %1034 = vmatmul.bf16.vlgmr.msra.gmra.mxu2 %v5846_v54  ;;  %v4646_v15 = vperm.slane %v4550_v55, 2 }
  0xc1   :  { %5870 = vst [vmem:[#allocation74_spill] sm:$0xff] %v4637_v5  ;;  %1234 = vmatpush.bf16.msrb.mxu2 %v4437_v14 }
  0xc2   :  { %1272 = vmatpush.bf16.msrb.mxu0 %v4423_v48  ;;  %5871 = vst [vmem:[#allocation75_spill] sm:$0xff] %v4646_v15 }
  0xc3   :  { %1285 = vmatpush.bf16.msrb.mxu1 %v4429_v56  ;;  %1047 = vmatmul.bf16.vlgmr.msra.gmra.mxu3 %v5846_v54  ;;  %5872 = vst [vmem:[#allocation76_spill] sm:$0xff] %v4651_v9  ;;  %v321_v5 = vpop.f32.mrf.mxu2 }
  0xc4   :  { %1247 = vmatpush.bf16.msrb.mxu3 %v4432_v61  ;;  %v4656_v16 = vadd.f32 %v321_v5, %v4646_v15 }
  0xc5   :  { %v4661_v48 = vpop.f32.mrf.mxu0  ;;  %1235 = vmatpush.bf16.msrb.mxu2 %v4449_v38 }
  0xc6   :  { %1273 = vmatpush.bf16.msrb.mxu0 %v4439_v8  ;;  %5873 = vst [vmem:[#allocation77_spill] sm:$0xff] %v4656_v16  ;;  %v350_v56 = vpop.f32.mrf.mxu3  ;;  %v4663_v37 = vpop.f32.mrf.mxu1  ;;  %v5889_v8 = vld [vmem:[#allocation47_spill] sm:$0xff] }
  0xc7   :  { %1286 = vmatpush.bf16.msrb.mxu1 %v4442_v19  ;;  %v4659_v41 = vadd.f32 %v350_v56, %v4651_v9  ;;  %5875 = vst [vmem:[#allocation79_spill] sm:$0xff] %v4661_v48  ;;  %v4670_v19 = vperm.slane %v4550_v55, 4  ;;  %v4677_v56 = vperm.slane %v4550_v55, 5 }
  0xc8   :  { %5876 = vst [vmem:[#allocation80_spill] sm:$0xff] %v4663_v37  ;;  %1248 = vmatpush.bf16.msrb.mxu3 %v4445_v28 }
  0xc9   :  { %5874 = vst [vmem:[#allocation78_spill] sm:$0xff] %v4659_v41  ;;  %1236 = vmatpush.bf16.msrb.mxu2 %v4461_v0 }
  0xca   :  { %1274 = vmatpush.bf16.msrb.mxu0 %v4453_v46  ;;  %5877 = vst [vmem:[#allocation81_spill] sm:$0xff] %v4670_v19 }
  0xcb   :  { %1287 = vmatpush.bf16.msrb.mxu1 %v4455_v47  ;;  %v4674_v5 = vpop.f32.mrf.mxu2  ;;  %5879 = vst [vmem:[#allocation83_spill] sm:$0xff] %v4677_v56 }
  0xcc   :  { %1249 = vmatpush.bf16.msrb.mxu3 %v4458_v58  ;;  %5878 = vst [vmem:[#allocation82_spill] sm:$0xff] %v4674_v5 }
  0xcd   :  { %v374_v48 = vpop.f32.mrf.mxu0  ;;  %1237 = vmatpush.bf16.msrb.mxu2 %v4473_v30 }
  0xce   :  { %1275 = vmatpush.bf16.msrb.mxu0 %v4466_v13  ;;  %v4681_v37 = vpop.f32.mrf.mxu3  ;;  %v4684_v16 = vadd.f32 %v374_v48, %v4670_v19  ;;  %v403_v41 = vpop.f32.mrf.mxu1  ;;  %v5883_v13 = vld [vmem:[#allocation44_spill] sm:$0xff]  ;;  %v5884_v48 = vld [vmem:[#allocation45_spill] sm:$0xff] }
  0xcf   :  { %1288 = vmatpush.bf16.msrb.mxu1 %v4468_v20  ;;  %5880 = vst [vmem:[#allocation84_spill] sm:$0xff] %v4681_v37  ;;  %v4689_v5 = vadd.f32 %v403_v41, %v4677_v56  ;;  %v1190_v37 = vsel %vm1189_vm2, 1, %v5846_v54 }
  0xd0   :  { %5881 = vst [vmem:[#allocation85_spill] sm:$0xff] %v4684_v16  ;;  %1250 = vmatpush.bf16.msrb.mxu3 %v4479_v43  ;;  %1192 = vperm.xlu0 %3806, %v1190_v37  }
  0xd1   :  { %5882 = vst [vmem:[#allocation86_spill] sm:$0xff] %v4689_v5  ;;  %1294 = vmatpush.bf16.msra.mxu2 %v4485_v1 }
  0xd3   :  { %v326_v20 = vpop.f32.mrf.mxu2 }
  0xd4   :  { %1307 = vmatpush.bf16.msra.mxu3 %v5883_v13  ;;  %v4698_v16 = vadd.f32 %v326_v20, %v4646_v15 }
  0xd5   :  { %1295 = vmatpush.bf16.msra.mxu2 %v5884_v48  ;;  %v4703_v5 = vpop.f32.mrf.mxu0 }
  0xd6   :  { %5885 = vst [vmem:[#allocation87_spill] sm:$0xff] %v4698_v16  ;;  %v355_v47 = vpop.f32.mrf.mxu3  ;;  %v4705_v46 = vpop.f32.mrf.mxu1 }
  0xd7   :  { %v4701_v41 = vadd.f32 %v355_v47, %v4651_v9  ;;  %5887 = vst [vmem:[#allocation89_spill] sm:$0xff] %v4703_v5 }
  0xd8   :  { %1308 = vmatpush.bf16.msra.mxu3 %v4495_v35  ;;  %5888 = vst [vmem:[#allocation90_spill] sm:$0xff] %v4705_v46 }
  0xd9   :  { %5886 = vst [vmem:[#allocation88_spill] sm:$0xff] %v4701_v41  ;;  %1296 = vmatpush.bf16.msra.mxu2 %v5889_v8 }
  0xdb   :  { %v4709_v37 = vpop.f32.mrf.mxu2 }
  0xdc   :  { %1309 = vmatpush.bf16.msra.mxu3 %v5890_v36  ;;  %5891 = vst [vmem:[#allocation91_spill] sm:$0xff] %v4709_v37  ;;  %v5896_v37 = vld [vmem:[#allocation54_spill] sm:$0xff] }
  0xdd   :  { %1297 = vmatpush.bf16.msra.mxu2 %v4505_v31  ;;  %v379_v16 = vpop.f32.mrf.mxu0 }
  0xde   :  { %v4713_v20 = vpop.f32.mrf.mxu3  ;;  %v4716_v47 = vadd.f32 %v379_v16, %v4670_v19  ;;  %v408_v41 = vpop.f32.mrf.mxu1 }
  0xdf   :  { %5893 = vst [vmem:[#allocation92_spill] sm:$0xff] %v4713_v20  ;;  %v4719_v5 = vadd.f32 %v408_v41, %v4677_v56 }
  0xe0   :  { %1310 = vmatpush.bf16.msra.mxu3 %v5892_v25  ;;  %5894 = vst [vmem:[#allocation93_spill] sm:$0xff] %v4716_v47 }
  0xe1   :  { %5895 = vst [vmem:[#allocation94_spill] sm:$0xff] %v4719_v5  ;;  %1298 = vmatpush.bf16.msra.mxu2 %v4514_v7 }
  0xe3   :  { %v331_v46 = vpop.f32.mrf.mxu2 }
  0xe4   :  { %1311 = vmatpush.bf16.msra.mxu3 %v4519_v24  ;;  %v4726_v25 = vadd.f32 %v331_v46, %v4646_v15 }
  0xe5   :  { %1299 = vmatpush.bf16.msra.mxu2 %v4525_v23  ;;  %v4731_v47 = vpop.f32.mrf.mxu0 }
  0xe6   :  { %5897 = vst [vmem:[#allocation95_spill] sm:$0xff] %v4726_v25  ;;  %v360_v20 = vpop.f32.mrf.mxu3  ;;  %v4733_v41 = vpop.f32.mrf.mxu1 }
  0xe7   :  { %v4729_v16 = vadd.f32 %v360_v20, %v4651_v9  ;;  %5899 = vst [vmem:[#allocation97_spill] sm:$0xff] %v4731_v47 }
  0xe8   :  { %1312 = vmatpush.bf16.msra.mxu3 %v5896_v37  ;;  %5900 = vst [vmem:[#allocation98_spill] sm:$0xff] %v4733_v41  ;;  %v4750_v41 = vperm.slane %v4550_v55, 6 }
  0xe9   :  { %5898 = vst [vmem:[#allocation96_spill] sm:$0xff] %v4729_v16  ;;  %1300 = vmatpush.bf16.msra.mxu2 %v4533_v59 }
  0xea   :  { %5905 = vst [vmem:[#allocation103_spill] sm:$0xff] %v4750_v41 }
  0xeb   :  { %v4737_v5 = vpop.f32.mrf.mxu2 }
  0xec   :  { %1313 = vmatpush.bf16.msra.mxu3 %v4535_v12  ;;  %5901 = vst [vmem:[#allocation99_spill] sm:$0xff] %v4737_v5  ;;  %v4753_v12 = vperm.slane %v4550_v55, 7 }
  0xed   :  { %1301 = vmatpush.bf16.msra.mxu2 %v4541_v63  ;;  %v384_v25 = vpop.f32.mrf.mxu0 }
  0xee   :  { %v4741_v46 = vpop.f32.mrf.mxu3  ;;  %v4744_v20 = vadd.f32 %v384_v25, %v4670_v19  ;;  %v413_v16 = vpop.f32.mrf.mxu1  ;;  %5906 = vst [vmem:[#allocation104_spill] sm:$0xff] %v4753_v12 }
  0xef   :  { %5902 = vst [vmem:[#allocation100_spill] sm:$0xff] %v4741_v46  ;;  %v4747_v47 = vadd.f32 %v413_v16, %v4677_v56 }
  0xf0   :  { %1314 = vmatpush.bf16.msra.mxu3 %v4545_v51  ;;  %5903 = vst [vmem:[#allocation101_spill] sm:$0xff] %v4744_v20 }
  0xf1   :  { %5904 = vst [vmem:[#allocation102_spill] sm:$0xff] %v4747_v47 }
  0xf3   :  { %v432_v5 = vpop.f32.mrf.mxu2 }
  0xf4   :  { %v4756_v63 = vadd.f32 %v432_v5, %v4750_v41 }
  0xf5   :  { %v4761_v25 = vpop.f32.mrf.mxu0 }
  0xf6   :  { %5907 = vst [vmem:[#allocation105_spill] sm:$0xff] %v4756_v63  ;;  %v461_v51 = vpop.f32.mrf.mxu3  ;;  %v4763_v20 = vpop.f32.mrf.mxu1 }
  0xf7   :  { %v4759_v46 = vadd.f32 %v461_v51, %v4753_v12  ;;  %5909 = vst [vmem:[#allocation107_spill] sm:$0xff] %v4761_v25 }
  0xf8   :  { %5910 = vst [vmem:[#allocation108_spill] sm:$0xff] %v4763_v20 }
  0xf9   :  { %5908 = vst [vmem:[#allocation106_spill] sm:$0xff] %v4759_v46 }
  0xfb   :  { %v4765_v16 = vpop.f32.mrf.mxu2 }
  0xfc   :  { %5911 = vst [vmem:[#allocation109_spill] sm:$0xff] %v4765_v16 }
  0xfd   :  { %v389_v59 = vpop.f32.mrf.mxu0 }
  0xfe   :  { %v4767_v47 = vpop.f32.mrf.mxu3  ;;  %v4770_v55 = vadd.f32 %v389_v59, %v4670_v19  ;;  %v418_v37 = vpop.f32.mrf.mxu1  ;;  %v259_v59 = vadd.f32 %v4543_v6, %v4559_v52 }
  0xff   :  { %5912 = vst [vmem:[#allocation110_spill] sm:$0xff] %v4767_v47  ;;  %v4773_v5 = vadd.f32 %v418_v37, %v4677_v56  ;;  %v288_v37 = vadd.f32 %v4552_v53, %v4565_v62 }
 0x100   :  { %5913 = vst [vmem:[#allocation111_spill] sm:$0xff] %v4770_v55 }
 0x101   :  { %5914 = vst [vmem:[#allocation112_spill] sm:$0xff] %v4773_v5 }
 0x103   :  { %v437_v63 = vpop.f32.mrf.mxu2 }
 0x104   :  { %v4776_v51 = vadd.f32 %v437_v63, %v4750_v41 }
 0x105   :  { %v391_v20 = vpop.f32.mrf.mxu0 }
 0x106   :  { %5915 = vst [vmem:[#allocation113_spill] sm:$0xff] %v4776_v51  ;;  %v466_v46 = vpop.f32.mrf.mxu3  ;;  %v420_v16 = vpop.f32.mrf.mxu1 }
 0x107   :  { %v4779_v25 = vadd.f32 %v466_v46, %v4753_v12 }
 0x109   :  { %5916 = vst [vmem:[#allocation114_spill] sm:$0xff] %v4779_v25 }
 0x10b   :  { %v4781_v23 = vpop.f32.mrf.mxu2 }
 0x10c   :  { %5917 = vst [vmem:[#allocation115_spill] sm:$0xff] %v4781_v23 }
 0x10d   :  { %v754_v5 = vpop.f32.mrf.mxu0 }
 0x10e   :  { %v4785_v47 = vpop.f32.mrf.mxu3  ;;  %v797_v55 = vadd.f32 %v754_v5, %v259_v59  ;;  %v767_v63 = vpop.f32.mrf.mxu1 }
 0x10f   :  { %5918 = vst [vmem:[#allocation116_spill] sm:$0xff] %v4785_v47  ;;  %v798_v51 = vadd.f32 %v767_v63, %v288_v37  ;;  %v421_v37 = vadd.f32 %v420_v16, %v4677_v56 }
 0x110   :  { %v3578_v24 = vmul.f32 -1.442695, %v797_v55 }
 0x111   :  { %v3579_v7 = vmul.f32 -1.442695, %v798_v51 }
 0x112   :  { %3810 = vpow2.f32 %v3578_v24  ;;  %v392_v24 = vadd.f32 %v391_v20, %v4670_v19 }
 0x113   :  { %3812 = vpow2.f32 %v3579_v7  ;;  %v442_v46 = vpop.f32.mrf.mxu2 }
 0x114   :  { %v4790_v25 = vadd.f32 %v442_v46, %v4750_v41 }
 0x115   :  { %v756_v47 = vpop.f32.mrf.mxu0 }
 0x116   :  { %5919 = vst [vmem:[#allocation117_spill] sm:$0xff] %v4790_v25  ;;  %v471_v23 = vpop.f32.mrf.mxu3  ;;  %v769_v52 = vpop.f32.mrf.mxu1 }
 0x117   :  { %v4793_v6 = vadd.f32 %v471_v23, %v4753_v12 }
 0x118   :  { %v3811_v31 = vpop.eup %3810 }
 0x119   :  { %5920 = vst [vmem:[#allocation118_spill] sm:$0xff] %v4793_v6  ;;  %v3813_v53 = vpop.eup %3812  ;;  %v4797_v59 = vadd.f32 1.0, %v3811_v31 }
 0x11a   :  { %v1078_v62 = vadd.f32 1.0, %v3813_v53 }
 0x11b   :  { %v4795_v5 = vpop.f32.mrf.mxu2  ;;  %vm1065_vm6 = vweird.f32 %v4797_v59 }
 0x11c   :  { %5921 = vst [vmem:[#allocation119_spill] sm:$0xff] %v4795_v5  ;;  %3814 = vrcp.f32 %v1078_v62  ;;  %vm1084_vm4 = vweird.f32 %v1078_v62 }
 0x11d   :  { %3816 = vrcp.f32 %v4797_v59 }
 0x11e   :  { %v4799_v55 = vpop.f32.mrf.mxu3  ;;  %v1009_v7 = vpop.f32.mrf.mxu0 }
 0x11f   :  { %5922 = vst [vmem:[#allocation120_spill] sm:$0xff] %v4799_v55  ;;  %v1022_v51 = vpop.f32.mrf.mxu1  ;;  %v1052_v23 = vadd.f32 %v1009_v7, %v392_v24 }
 0x120   :  { %v1053_v52 = vadd.f32 %v1022_v51, %v421_v37 }
 0x121   :  { %v3581_v46 = vmul.f32 -1.442695, %v1052_v23 }
 0x122   :  { %v3815_v63 = vpop.eup %3814  ;;  %v3582_v5 = vmul.f32 -1.442695, %v1053_v52 }
 0x123   :  { %v447_v47 = vpop.f32.mrf.mxu2  ;;  %v3817_v20 = vpop.eup %3816  ;;  %v1080_v19 = vmul.f32 %v3815_v63, %v1078_v62  ;;  %3818 = vpow2.f32 %v3581_v46  ;;  %vm1085_vm3 = vweird.f32 %v3815_v63 }
 0x124   :  { %v4805_v53 = vadd.f32 %v447_v47, %v4750_v41  ;;  %v1061_v16 = vmul.f32 %v3817_v20, %v4797_v59  ;;  %3820 = vpow2.f32 %v3582_v5  ;;  %vm1066_vm5 = vweird.f32 %v3817_v20  ;;  %vm1086_vm7 = vmor %vm1084_vm4, %vm1085_vm3 }
 0x125   :  { %v1081_v7 = vsub.f32 1.0, %v1080_v19  ;;  %v1090_v19 = vand.u32 2147483648, %v1078_v62  ;;  %vm1067_vm8 = vmor %vm1065_vm6, %vm1066_vm5 }
 0x126   :  { %5923 = vst [vmem:[#allocation121_spill] sm:$0xff] %v4805_v53  ;;  %v476_v31 = vpop.f32.mrf.mxu3  ;;  %v1011_v6 = vpop.f32.mrf.mxu0  ;;  %v1062_v37 = vsub.f32 1.0, %v1061_v16 }
 0x127   :  { %v4808_v25 = vadd.f32 %v476_v31, %v4753_v12  ;;  %v1024_v55 = vpop.f32.mrf.mxu1  ;;  %v1082_v47 = vmul.f32 %v3815_v63, %v1081_v7  ;;  %v317_v6 = vadd.f32 %v4604_v44, %v4646_v15  ;;  %v1071_v44 = vand.u32 2147483648, %v4797_v59 }
 0x128   :  { %v1063_v31 = vmul.f32 %v3817_v20, %v1062_v37  ;;  %v346_v55 = vadd.f32 %v4608_v11, %v4651_v9  ;;  %v1069_v11 = vand.u32 2147483647, %v4797_v59 }
 0x129   :  { %5924 = vst [vmem:[#allocation122_spill] sm:$0xff] %v4808_v25  ;;  %v3819_v23 = vpop.eup %3818  ;;  %v1083_v5 = vadd.f32 %v3815_v63, %v1082_v47  ;;  %v1088_v25 = vand.u32 2147483647, %v1078_v62 }
 0x12a   :  { %v3821_v56 = vpop.eup %3820  ;;  %v4811_v53 = vadd.f32 1.0, %v3819_v23  ;;  %v1064_v23 = vadd.f32 %v3817_v20, %v1063_v31  ;;  %v1072_v31 = vor.u32 1.1754944e-38, %v1071_v44  ;;  %vm1070_vm10 = vcmp.eq.f32.partialorder %v1069_v11, 8.507059e+37 }
 0x12b   :  { %v449_v24 = vpop.f32.mrf.mxu2  ;;  %v4817_v52 = vadd.f32 1.0, %v3821_v56  ;;  %v1087_v56 = vsel %vm1086_vm7, %v3815_v63, %v1083_v5  ;;  %vm1089_vm9 = vcmp.eq.f32.partialorder %v1088_v25, 8.507059e+37 }
 0x12c   :  { %3822 = vrcp.f32 %v4811_v53  ;;  %v1068_v62 = vsel %vm1067_vm8, %v3817_v20, %v1064_v23  ;;  %vm1128_vm12 = vweird.f32 %v4811_v53 }
 0x12d   :  { %v1073_v9 = vsel %vm1070_vm10, %v1072_v31, %v1068_v62  ;;  %vm1147_vm1 = vweird.f32 %v4817_v52 }
 0x12e   :  { %v478_v51 = vpop.f32.mrf.mxu3 }
 0x133   :  { %v780_v46 = vpop.f32.mrf.mxu2 }
 0x134   :  { %v799_v16 = vadd.f32 %v780_v46, %v317_v6  ;;  %v1091_v6 = vor.u32 1.1754944e-38, %v1090_v19 }
 0x136   :  { %v793_v7 = vpop.f32.mrf.mxu3  ;;  %3824 = vtanh.f32 %v799_v16  ;;  %v1092_v46 = vsel %vm1089_vm9, %v1091_v6, %v1087_v56 }
 0x137   :  { %v800_v37 = vadd.f32 %v793_v7, %v346_v55  ;;  %3826 = vrcp.f32 %v4817_v52  ;;  %v4824_v55 = vpop.eup %3822  ;;  %v1114_v8 = vmul.f32 0.0, %v1092_v46 }
 0x138   :  { %v1124_v5 = vmul.f32 %v4824_v55, %v4811_v53  ;;  %vm1129_vm13 = vweird.f32 %v4824_v55 }
 0x139   :  { %v3580_v47 = vmul.f32 -1.442695, %v800_v37  ;;  %v479_v37 = vadd.f32 %v478_v51, %v4753_v12  ;;  %v1153_v51 = vand.u32 2147483648, %v4817_v52  ;;  %vm4854_vm2 = vmor %vm1128_vm12, %vm1129_vm13  ;;  %v5953_v12 = vld [vmem:[#allocation38_spill] sm:$0xff] }
 0x13a   :  { %v1125_v23 = vsub.f32 1.0, %v1124_v5 }
 0x13b   :  { %3828 = vpow2.f32 %v3580_v47  ;;  %v782_v7 = vpop.f32.mrf.mxu2  ;;  %v450_v47 = vadd.f32 %v449_v24, %v4750_v41  ;;  %v5952_v41 = vld [vmem:[#allocation37_spill] sm:$0xff] }
 0x13c   :  { %v3825_v15 = vpop.eup %3824  ;;  %v1126_v6 = vmul.f32 %v4824_v55, %v1125_v23  ;;  %v1451_v7 = vsel %vm1450_vm11, 1, %v5846_v54  ;;  %v1134_v23 = vand.u32 2147483648, %v4811_v53 }
 0x13d   :  { %v4826_v36 = vpop.eup %3826  ;;  %v1115_v59 = vmul.f32 %v3825_v15, %v1073_v9  ;;  %1453 = vperm.xlu1 %3807, %v1451_v7  }
 0x13e   :  { %v795_v16 = vpop.f32.mrf.mxu3  ;;  %v1143_v25 = vmul.f32 %v4826_v36, %v4817_v52  ;;  %v1127_v24 = vadd.f32 %v4824_v55, %v1126_v6  ;;  %vm1148_vm14 = vweird.f32 %v4826_v36 }
 0x13f   :  { %v4830_v20 = vadd.f32 %v1115_v59, %v1114_v8  ;;  %vm4862_vm3 = vmor %vm1147_vm1, %vm1148_vm14 }
 0x140   :  { %v1144_v11 = vsub.f32 1.0, %v1143_v25 }
 0x141   :  { %v3829_v63 = vpop.eup %3828 }
 0x142   :  { %v1098_v19 = vadd.f32 1.0, %v3829_v63  ;;  %v1145_v31 = vmul.f32 %v4826_v36, %v1144_v11 }
 0x143   :  { %v1035_v44 = vpop.f32.mrf.mxu2 }
 0x144   :  { %3830 = vrcp.f32 %v1098_v19  ;;  %v1054_v9 = vadd.f32 %v1035_v44, %v450_v47  ;;  %v1146_v63 = vadd.f32 %v4826_v36, %v1145_v31  ;;  %v1110_v25 = vand.u32 2147483648, %v1098_v19 }
 0x145   :  { %v1108_v44 = vand.u32 2147483647, %v1098_v19  ;;  %v1151_v47 = vand.u32 2147483647, %v4817_v52  ;;  %vm1104_vm4 = vweird.f32 %v1098_v19  ;;  %v1131_v31 = vsel %vm4854_vm2, %v4824_v55, %v1127_v24 }
 0x146   :  { %v1048_v56 = vpop.f32.mrf.mxu3 }
 0x147   :  { %v1055_v15 = vadd.f32 %v1048_v56, %v479_v37  ;;  %v1132_v56 = vand.u32 2147483647, %v4811_v53  ;;  %v1150_v53 = vsel %vm4862_vm3, %v4826_v36, %v1146_v63  ;;  %vm1109_vm6 = vcmp.eq.f32.partialorder %v1108_v44, 8.507059e+37  ;;  %v5930_v44 = vld [vmem:[#allocation18_spill] sm:$0xff] }
 0x148   :  { %vm1152_vm8 = vcmp.eq.f32.partialorder %v1151_v47, 8.507059e+37 }
 0x149   :  { %v3583_v62 = vmul.f32 -1.442695, %v1055_v15  ;;  %vm1133_vm7 = vcmp.eq.f32.partialorder %v1132_v56, 8.507059e+37 }
 0x14a   :  { %v3831_v8 = vpop.eup %3830 }
 0x14b   :  { %3832 = vpow2.f32 %v3583_v62  ;;  %v1100_v46 = vmul.f32 %v3831_v8, %v1098_v19  ;;  %v1037_v16 = vpop.f32.mrf.mxu2  ;;  %vm1105_vm0 = vweird.f32 %v3831_v8  ;;  %v1458_v62 = vsel %vm1457_vm15, 1, %v5846_v54 }
 0x14c   :  { %3834 = vtanh.f32 %v1054_v9  ;;  %vm1106_vm5 = vmor %vm1104_vm4, %vm1105_vm0  ;;  %v1154_v16 = vor.u32 1.1754944e-38, %v1153_v51  ;;  %1460 = vperm.xlu1 %3807, %v1458_v62   ;;  %v5931_v62 = vld [vmem:[#allocation19_spill] sm:$0xff] }
 0x14d   :  { %v1101_v59 = vsub.f32 1.0, %v1100_v46  ;;  %3836 = vtanh.f32 %v4830_v20  ;;  %v1111_v46 = vor.u32 1.1754944e-38, %v1110_v25 }
 0x14e   :  { %v1050_v5 = vpop.f32.mrf.mxu3  ;;  %v1155_v55 = vsel %vm1152_vm8, %v1154_v16, %v1150_v53  ;;  %v5933_v16 = vld [vmem:[#allocation21_spill] sm:$0xff] }
 0x14f   :  { %v1102_v37 = vmul.f32 %v3831_v8, %v1101_v59  ;;  %v1135_v59 = vor.u32 1.1754944e-38, %v1134_v23  ;;  %v1177_v63 = vmul.f32 0.0, %v1155_v55  ;;  %v5929_v23 = vld [vmem:[#allocation17_spill] sm:$0xff] }
 0x150   :  { %v5936_v55 = vld [vmem:[#allocation29_spill] sm:$0xff] }
 0x151   :  { %v3833_v15 = vpop.eup %3832  ;;  %v1103_v6 = vadd.f32 %v3831_v8, %v1102_v37  ;;  %v1136_v11 = vsel %vm1133_vm7, %v1135_v59, %v1131_v31  ;;  %v5932_v31 = vld [vmem:[#allocation20_spill] sm:$0xff] }
 0x152   :  { %v1161_v52 = vadd.f32 1.0, %v3833_v15  ;;  %v3835_v7 = vpop.eup %3834 }
 0x153   :  { %v1107_v5 = vsel %vm1106_vm5, %v3831_v8, %v1103_v6  ;;  %v3837_v37 = vpop.eup %3836  ;;  %v1178_v9 = vmul.f32 %v3835_v7, %v1136_v11  ;;  %v5935_v11 = vld [vmem:[#allocation23_spill] sm:$0xff] }
 0x154   :  { %3838 = vrcp.f32 %v1161_v52  ;;  %v1112_v19 = vsel %vm1109_vm6, %v1111_v46, %v1107_v5  ;;  %v1173_v47 = vand.u32 2147483648, %v1161_v52  ;;  %v1171_v6 = vand.u32 2147483647, %v1161_v52 }
 0x155   :  { %v4873_v24 = vmul.f32 %v3837_v37, %v1112_v19  ;;  %v4877_v8 = vadd.f32 %v1178_v9, %v1177_v63  ;;  %vm1167_vm10 = vweird.f32 %v1161_v52  ;;  %v5937_v9 = vld [vmem:[#allocation30_spill] sm:$0xff]  ;;  %v5939_v63 = vld [vmem:[#allocation48_spill] sm:$0xff]  ;;  %vm1718_vm6 = vcmp.eq.s32.totalorder %v4633_v26, 2 }
 0x156   :  { %v1174_v46 = vor.u32 1.1754944e-38, %v1173_v47  ;;  %vm1172_vm12 = vcmp.eq.f32.partialorder %v1171_v6, 8.507059e+37  ;;  %v5943_v47 = vld [vmem:[#allocation50_spill] sm:$0xff] }
 0x157   :  { %v1203_v36 = vpack.c.bf16 %v4873_v24, %v4873_v24  ;;  %3840 = vtanh.f32 %v4877_v8  ;;  %v5945_v6 = vld [vmem:[#allocation34_spill] sm:$0xff] }
 0x159   :  { %1212 = vmatmul.bf16.vlgmr.msra.gmra.mxu0 %v1203_v36  ;;  %1225 = vmatmul.bf16.vlgmr.msra.gmra.mxu1 %v1203_v36 }
 0x15a   :  { %v3839_v51 = vpop.eup %3838  ;;  %1238 = vmatmul.bf16.vlgmr.msrb.gmra.mxu2 %v1203_v36  ;;  %1251 = vmatmul.bf16.vlgmr.msrb.gmra.mxu3 %v1203_v36  ;;  %v5938_v36 = vld [vmem:[#allocation47_spill] sm:$0xff] }
 0x15b   :  { %v1163_v25 = vmul.f32 %v3839_v51, %v1161_v52  ;;  %1472 = vmatpush.bf16.msra.mxu0 %v5929_v23  ;;  %1485 = vmatpush.bf16.msra.mxu1 %v5930_v44  ;;  %vm1168_vm9 = vweird.f32 %v3839_v51  ;;  %v5934_v52 = vld [vmem:[#allocation22_spill] sm:$0xff] }
 0x15c   :  { %1498 = vmatpush.bf16.msrb.mxu2 %v4355_v34  ;;  %1511 = vmatpush.bf16.msrb.mxu3 %v4340_v17  ;;  %vm1169_vm11 = vmor %vm1167_vm10, %vm1168_vm9 }
 0x15d   :  { %v1164_v56 = vsub.f32 1.0, %v1163_v25  ;;  %v3841_v59 = vpop.eup %3840  ;;  %v5941_v25 = vld [vmem:[#allocation32_spill] sm:$0xff] }
 0x15f   :  { %v1165_v15 = vmul.f32 %v3839_v51, %v1164_v56  ;;  %1473 = vmatpush.bf16.msra.mxu0 %v5931_v62  ;;  %1486 = vmatpush.bf16.msra.mxu1 %v5932_v31  ;;  %v5942_v56 = vld [vmem:[#allocation49_spill] sm:$0xff] }
 0x160   :  { %1499 = vmatpush.bf16.msrb.mxu2 %v4389_v2  ;;  %1512 = vmatpush.bf16.msrb.mxu3 %v4347_v29 }
 0x161   :  { %v1166_v53 = vadd.f32 %v3839_v51, %v1165_v15  ;;  %v5944_v15 = vld [vmem:[#allocation33_spill] sm:$0xff] }
 0x163   :  { %v1170_v7 = vsel %vm1169_vm11, %v3839_v51, %v1166_v53  ;;  %1474 = vmatpush.bf16.msra.mxu0 %v4319_v4  ;;  %1487 = vmatpush.bf16.msra.mxu1 %v5933_v16  ;;  %v5940_v51 = vld [vmem:[#allocation31_spill] sm:$0xff]  ;;  %vm1725_vm11 = vcmp.eq.s32.totalorder %v4633_v26, 5 }
 0x164   :  { %v1175_v5 = vsel %vm1172_vm12, %v1174_v46, %v1170_v7  ;;  %1500 = vmatpush.bf16.msrb.mxu2 %v4405_v27  ;;  %1513 = vmatpush.bf16.msrb.mxu3 %v4385_v60  ;;  %v5946_v53 = vld [vmem:[#allocation51_spill] sm:$0xff]  ;;  %v5947_v46 = vld [vmem:[#allocation52_spill] sm:$0xff] }
 0x165   :  { %v4892_v37 = vmul.f32 %v3841_v59, %v1175_v5  ;;  %v5948_v7 = vld [vmem:[#allocation35_spill] sm:$0xff]  ;;  %v5949_v59 = vld [vmem:[#allocation36_spill] sm:$0xff]  ;;  %v5950_v5 = vld [vmem:[#allocation53_spill] sm:$0xff] }
 0x167   :  { %v1267_v19 = vpack.c.bf16 %v4892_v37, %v4892_v37  ;;  %1475 = vmatpush.bf16.msra.mxu0 %v5934_v52  ;;  %1488 = vmatpush.bf16.msra.mxu1 %v5935_v11 }
 0x168   :  { %1501 = vmatpush.bf16.msrb.mxu2 %v4417_v42  ;;  %1514 = vmatpush.bf16.msrb.mxu3 %v4397_v18 }
 0x169   :  { %1276 = vmatmul.bf16.vlgmr.msrb.gmra.mxu0 %v1267_v19  ;;  %1289 = vmatmul.bf16.vlgmr.msrb.gmra.mxu1 %v1267_v19 }
 0x16a   :  { %1302 = vmatmul.bf16.vlgmr.msra.gmra.mxu2 %v1267_v19  ;;  %1315 = vmatmul.bf16.vlgmr.msra.gmra.mxu3 %v1267_v19  ;;  %v5951_v19 = vld [vmem:[#allocation54_spill] sm:$0xff] }
 0x16b   :  { %1476 = vmatpush.bf16.msra.mxu0 %v4342_v21  ;;  %1489 = vmatpush.bf16.msra.mxu1 %v4344_v22 }
 0x16c   :  { %1502 = vmatpush.bf16.msrb.mxu2 %v4437_v14  ;;  %1515 = vmatpush.bf16.msrb.mxu3 %v4432_v61 }
 0x16f   :  { %1477 = vmatpush.bf16.msra.mxu0 %v4351_v32  ;;  %1490 = vmatpush.bf16.msra.mxu1 %v4353_v33 }
 0x170   :  { %1503 = vmatpush.bf16.msrb.mxu2 %v4449_v38  ;;  %1516 = vmatpush.bf16.msrb.mxu3 %v4445_v28 }
 0x173   :  { %1478 = vmatpush.bf16.msra.mxu0 %v4361_v39  ;;  %1491 = vmatpush.bf16.msra.mxu1 %v4363_v40 }
 0x174   :  { %1504 = vmatpush.bf16.msrb.mxu2 %v4461_v0  ;;  %1517 = vmatpush.bf16.msrb.mxu3 %v4458_v58 }
 0x177   :  { %1479 = vmatpush.bf16.msra.mxu0 %v4367_v45  ;;  %1492 = vmatpush.bf16.msra.mxu1 %v4373_v49 }
 0x178   :  { %1505 = vmatpush.bf16.msrb.mxu2 %v4473_v30  ;;  %1518 = vmatpush.bf16.msrb.mxu3 %v4479_v43 }
 0x17b   :  { %1536 = vmatpush.bf16.msrb.mxu0 %v4375_v50  ;;  %1549 = vmatpush.bf16.msrb.mxu1 %v4381_v57 }
 0x17c   :  { %1562 = vmatpush.bf16.msra.mxu2 %v4485_v1  ;;  %1575 = vmatpush.bf16.msra.mxu3 %v5883_v13 }
 0x17f   :  { %1537 = vmatpush.bf16.msrb.mxu0 %v4391_v3  ;;  %1550 = vmatpush.bf16.msrb.mxu1 %v4394_v10 }
 0x180   :  { %1563 = vmatpush.bf16.msra.mxu2 %v5884_v48  ;;  %1576 = vmatpush.bf16.msra.mxu3 %v4495_v35 }
 0x183   :  { %1538 = vmatpush.bf16.msrb.mxu0 %v5936_v55  ;;  %1551 = vmatpush.bf16.msrb.mxu1 %v5937_v9  ;;  %v5965_v9 = vld [vmem:[#allocation72_spill] sm:$0xff] }
 0x184   :  { %1564 = vmatpush.bf16.msra.mxu2 %v5938_v36  ;;  %1577 = vmatpush.bf16.msra.mxu3 %v5939_v63 }
 0x187   :  { %1539 = vmatpush.bf16.msrb.mxu0 %v5940_v51  ;;  %1552 = vmatpush.bf16.msrb.mxu1 %v5941_v25  ;;  %v5963_v25 = vld [vmem:[#allocation64_spill] sm:$0xff] }
 0x188   :  { %1565 = vmatpush.bf16.msra.mxu2 %v5942_v56  ;;  %1578 = vmatpush.bf16.msra.mxu3 %v5943_v47  ;;  %v5954_v47 = vld [vmem:[#allocation55_spill] sm:$0xff] }
 0x18b   :  { %1540 = vmatpush.bf16.msrb.mxu0 %v5944_v15  ;;  %1553 = vmatpush.bf16.msrb.mxu1 %v5945_v6  ;;  %v5955_v15 = vld [vmem:[#allocation56_spill] sm:$0xff]  ;;  %v5956_v6 = vld [vmem:[#allocation39_spill] sm:$0xff] }
 0x18c   :  { %1566 = vmatpush.bf16.msra.mxu2 %v5946_v53  ;;  %1579 = vmatpush.bf16.msra.mxu3 %v5947_v46  ;;  %v5957_v53 = vld [vmem:[#allocation40_spill] sm:$0xff]  ;;  %v5958_v46 = vld [vmem:[#allocation57_spill] sm:$0xff] }
 0x18f   :  { %1541 = vmatpush.bf16.msrb.mxu0 %v5948_v7  ;;  %1554 = vmatpush.bf16.msrb.mxu1 %v5949_v59  ;;  %v5959_v7 = vld [vmem:[#allocation58_spill] sm:$0xff]  ;;  %v5960_v59 = vld [vmem:[#allocation59_spill] sm:$0xff] }
 0x190   :  { %1567 = vmatpush.bf16.msra.mxu2 %v5950_v5  ;;  %1580 = vmatpush.bf16.msra.mxu3 %v5951_v19  ;;  %v5961_v5 = vld [vmem:[#allocation63_spill] sm:$0xff]  ;;  %v5962_v19 = vld [vmem:[#allocation60_spill] sm:$0xff] }
 0x191   :  { %v261_v56 = vadd.f32 %v5961_v5, %v5960_v59 }
 0x193   :  { %1542 = vmatpush.bf16.msrb.mxu0 %v5952_v41  ;;  %1555 = vmatpush.bf16.msrb.mxu1 %v5953_v12  ;;  %v290_v41 = vadd.f32 %v5963_v25, %v5962_v19 }
 0x194   :  { %1568 = vmatpush.bf16.msra.mxu2 %v5954_v47  ;;  %1581 = vmatpush.bf16.msra.mxu3 %v5955_v15 }
 0x197   :  { %1543 = vmatpush.bf16.msrb.mxu0 %v5956_v6  ;;  %1556 = vmatpush.bf16.msrb.mxu1 %v5957_v53  ;;  %v5964_v6 = vld [vmem:[#allocation76_spill] sm:$0xff] }
 0x198   :  { %1569 = vmatpush.bf16.msra.mxu2 %v5958_v46  ;;  %1582 = vmatpush.bf16.msra.mxu3 %v5959_v7  ;;  %v348_v53 = vadd.f32 %v5965_v9, %v5964_v6 }
 0x1d6   :  { %v1213_v51 = vpop.f32.mrf.mxu0  ;;  %v1226_v12 = vpop.f32.mrf.mxu1 }
 0x1d7   :  { %v1256_v63 = vadd.f32 %v1213_v51, %v261_v56  ;;  %v1257_v47 = vadd.f32 %v1226_v12, %v290_v41  ;;  %v5966_v51 = vld [vmem:[#allocation111_spill] sm:$0xff]  ;;  %v5967_v56 = vld [vmem:[#allocation112_spill] sm:$0xff] }
 0x1d9   :  { %v3584_v36 = vmul.f32 -1.442695, %v1256_v63  ;;  %v3585_v15 = vmul.f32 -1.442695, %v1257_v47 }
 0x1db   :  { %3842 = vpow2.f32 %v3584_v36 }
 0x1dc   :  { %3844 = vpow2.f32 %v3585_v15 }
 0x1dd   :  { %v1239_v46 = vpop.f32.mrf.mxu2  ;;  %v1252_v55 = vpop.f32.mrf.mxu3 }
 0x1de   :  { %v1259_v7 = vadd.f32 %v1252_v55, %v348_v53  ;;  %v1215_v35 = vpop.f32.mrf.mxu0  ;;  %v1228_v48 = vpop.f32.mrf.mxu1  ;;  %v5968_v55 = vld [vmem:[#allocation75_spill] sm:$0xff] }
 0x1df   :  { %v5969_v35 = vld [vmem:[#allocation71_spill] sm:$0xff] }
 0x1e0   :  { %v3586_v5 = vmul.f32 -1.442695, %v1259_v7  ;;  %v319_v48 = vadd.f32 %v5969_v35, %v5968_v55 }
 0x1e1   :  { %v3843_v59 = vpop.eup %3842 }
 0x1e2   :  { %v3845_v10 = vpop.eup %3844  ;;  %v1327_v25 = vadd.f32 1.0, %v3843_v59  ;;  %3846 = vpow2.f32 %v3586_v5 }
 0x1e3   :  { %v1346_v19 = vadd.f32 1.0, %v3845_v10  ;;  %v1258_v10 = vadd.f32 %v1239_v46, %v319_v48 }
 0x1e4   :  { %3848 = vrcp.f32 %v1327_v25  ;;  %v1339_v13 = vand.u32 2147483648, %v1327_v25  ;;  %vm1333_vm0 = vweird.f32 %v1327_v25 }
 0x1e5   :  { %3850 = vrcp.f32 %v1346_v19  ;;  %v1241_v12 = vpop.f32.mrf.mxu2  ;;  %v1254_v41 = vpop.f32.mrf.mxu3  ;;  %v1358_v55 = vand.u32 2147483648, %v1346_v19  ;;  %v1356_v48 = vand.u32 2147483647, %v1346_v19  ;;  %vm1352_vm15 = vweird.f32 %v1346_v19 }
 0x1e6   :  { %v1277_v36 = vpop.f32.mrf.mxu0  ;;  %v1290_v63 = vpop.f32.mrf.mxu1 }
 0x1e7   :  { %v1320_v9 = vadd.f32 %v1277_v36, %v5966_v51  ;;  %v1321_v47 = vadd.f32 %v1290_v63, %v5967_v56  ;;  %v1337_v36 = vand.u32 2147483647, %v1327_v25  ;;  %vm1357_vm4 = vcmp.eq.f32.partialorder %v1356_v48, 8.507059e+37 }
 0x1e8   :  { %v3847_v15 = vpop.eup %3846 }
 0x1e9   :  { %v4958_v53 = vadd.f32 1.0, %v3847_v15  ;;  %v3587_v7 = vmul.f32 -1.442695, %v1320_v9  ;;  %v3588_v59 = vmul.f32 -1.442695, %v1321_v47  ;;  %v5970_v15 = vld [vmem:[#allocation122_spill] sm:$0xff] }
 0x1ea   :  { %v3849_v5 = vpop.eup %3848  ;;  %vm1338_vm1 = vcmp.eq.f32.partialorder %v1337_v36, 8.507059e+37 }
 0x1eb   :  { %v3851_v6 = vpop.eup %3850  ;;  %v1329_v3 = vmul.f32 %v3849_v5, %v1327_v25  ;;  %3852 = vrcp.f32 %v4958_v53  ;;  %vm1334_vm13 = vweird.f32 %v3849_v5  ;;  %vm1372_vm8 = vweird.f32 %v4958_v53 }
 0x1ec   :  { %v1348_v12 = vmul.f32 %v3851_v6, %v1346_v19  ;;  %3854 = vpow2.f32 %v3587_v7  ;;  %vm1353_vm14 = vweird.f32 %v3851_v6  ;;  %vm1335_vm2 = vmor %vm1333_vm0, %vm1334_vm13  ;;  %v4968_v19 = vpop.permute.xlu0 %1185 }
 0x1ed   :  { %v1330_v41 = vsub.f32 1.0, %v1329_v3  ;;  %3856 = vpow2.f32 %v3588_v59  ;;  %v1303_v63 = vpop.f32.mrf.mxu2  ;;  %v1316_v51 = vpop.f32.mrf.mxu3  ;;  %vm1354_vm3 = vmor %vm1352_vm15, %vm1353_vm14  ;;  %5971 = vst [vmem:[#allocation17_spill] sm:$0xff] %v4968_v19  ;;  %vm1187_vm5 = vcmp.eq.s32.totalorder %v4968_v19, 1  ;;  %v6001_v19 = vld [vmem:[#allocation54_spill] sm:$0xff] }
 0x1ee   :  { %v1349_v56 = vsub.f32 1.0, %v1348_v12  ;;  %3858 = vtanh.f32 %v1258_v10  ;;  %v1323_v35 = vadd.f32 %v1316_v51, %v5970_v15  ;;  %v1279_v9 = vpop.f32.mrf.mxu0  ;;  %v1292_v47 = vpop.f32.mrf.mxu1  ;;  %v1340_v10 = vor.u32 1.1754944e-38, %v1339_v13 }
 0x1ef   :  { %v1331_v46 = vmul.f32 %v3849_v5, %v1330_v41  ;;  %v1359_v15 = vor.u32 1.1754944e-38, %v1358_v55 }
 0x1f0   :  { %v1350_v1 = vmul.f32 %v3851_v6, %v1349_v56  ;;  %v3589_v57 = vmul.f32 -1.442695, %v1323_v35 }
 0x1f1   :  { %v4962_v7 = vpop.eup %3852  ;;  %v1332_v3 = vadd.f32 %v3849_v5, %v1331_v46 }
 0x1f2   :  { %v3855_v59 = vpop.eup %3854  ;;  %v1351_v12 = vadd.f32 %v3851_v6, %v1350_v1  ;;  %v1368_v51 = vmul.f32 %v4962_v7, %v4958_v53  ;;  %3860 = vpow2.f32 %v3589_v57  ;;  %vm1373_vm7 = vweird.f32 %v4962_v7 }
 0x1f3   :  { %v3857_v41 = vpop.eup %3856  ;;  %v1336_v56 = vsel %vm1335_vm2, %v3849_v5, %v1332_v3  ;;  %v4966_v35 = vadd.f32 1.0, %v3855_v59  ;;  %v1376_v59 = vand.u32 2147483647, %v4958_v53  ;;  %vm4999_vm9 = vmor %vm1372_vm8, %vm1373_vm7 }
 0x1f4   :  { %v3859_v9 = vpop.eup %3858  ;;  %v1341_v25 = vsel %vm1338_vm1, %v1340_v10, %v1336_v56  ;;  %v1355_v36 = vsel %vm1354_vm3, %v3851_v6, %v1351_v12  ;;  %v1369_v47 = vsub.f32 1.0, %v1368_v51  ;;  %v4970_v46 = vadd.f32 1.0, %v3857_v41  ;;  %v4987_v12 = vpop.permute.xlu1 %1453 }
 0x1f5   :  { %v1360_v13 = vsel %vm1357_vm4, %v1359_v15, %v1355_v36  ;;  %v1383_v1 = vmul.f32 %v3859_v9, %v1341_v25  ;;  %3862 = vrcp.f32 %v4966_v35  ;;  %v1305_v57 = vpop.f32.mrf.mxu2  ;;  %v1318_v50 = vpop.f32.mrf.mxu3  ;;  %5973 = vst [vmem:[#allocation18_spill] sm:$0xff] %v4987_v12  ;;  %v1719_v41 = vsel %vm1718_vm6, 1, %v5846_v54 }
 0x1f6   :  { %v1382_v55 = vmul.f32 %v1360_v13, %v4830_v20  ;;  %3864 = vrcp.f32 %v4970_v46  ;;  %v1370_v5 = vmul.f32 %v4962_v7, %v1369_v47  ;;  %v1378_v50 = vand.u32 2147483648, %v4958_v53  ;;  %v5972_v20 = vld [vmem:[#allocation121_spill] sm:$0xff]  ;;  %1721 = vperm.xlu2 %3808, %v1719_v41  }
 0x1f7   :  { %v1322_v10 = vadd.f32 %v1303_v63, %v5972_v20  ;;  %v1188_v9 = vsel %vm1187_vm5, %v4873_v24, 0.0  ;;  %vm1455_vm10 = vcmp.eq.s32.totalorder %v4987_v12, 1  ;;  %vm1377_vm12 = vcmp.eq.f32.partialorder %v1376_v59, 8.507059e+37  ;;  %v6003_v12 = vld [vmem:[#allocation38_spill] sm:$0xff] }
 0x1f8   :  { %v3861_v48 = vpop.eup %3860  ;;  %v4977_v3 = vadd.f32 %v1383_v1, %v1382_v55  ;;  %v1371_v51 = vadd.f32 %v4962_v7, %v1370_v5  ;;  %v1379_v24 = vor.u32 1.1754944e-38, %v1378_v50  ;;  %v1421_v1 = vand.u32 2147483648, %v4970_v46 }
 0x1f9   :  { %v4980_v6 = vadd.f32 1.0, %v3861_v48  ;;  %v1400_v57 = vand.u32 2147483647, %v4966_v35  ;;  %v1402_v55 = vand.u32 2147483648, %v4966_v35  ;;  %v1419_v26 = vand.u32 2147483647, %v4970_v46 }
 0x1fa   :  { %3866 = vtanh.f32 %v4977_v3  ;;  %v1375_v53 = vsel %vm4999_vm9, %v4962_v7, %v1371_v51  ;;  %v1726_v7 = vsel %vm1725_vm11, 1, %v5846_v54  ;;  %vm1415_vm15 = vweird.f32 %v4970_v46 }
 0x1fb   :  { %v3863_v15 = vpop.eup %3862  ;;  %3868 = vrcp.f32 %v4980_v6  ;;  %v1380_v20 = vsel %vm1377_vm12, %v1379_v24, %v1375_v53  ;;  %vm1396_vm0 = vweird.f32 %v4966_v35  ;;  %v1422_v24 = vor.u32 1.1754944e-38, %v1421_v1 }
 0x1fc   :  { %v3865_v56 = vpop.eup %3864  ;;  %v1392_v25 = vmul.f32 %v3863_v15, %v4966_v35  ;;  %3870 = vtanh.f32 %v1322_v10  ;;  %vm1397_vm13 = vweird.f32 %v3863_v15  ;;  %vm1401_vm3 = vcmp.eq.f32.partialorder %v1400_v57, 8.507059e+37  ;;  %v5036_v57 = vpop.permute.xlu0 %1192 }
 0x1fd   :  { %v1411_v36 = vmul.f32 %v3865_v56, %v4970_v46  ;;  %vm1416_vm14 = vweird.f32 %v3865_v56  ;;  %vm1398_vm1 = vmor %vm1396_vm0, %vm1397_vm13  ;;  %vm1420_vm4 = vcmp.eq.f32.partialorder %v1419_v26, 8.507059e+37  ;;  %v1441_v1 = vand.u32 2147483648, %v4980_v6  ;;  %5976 = vst [vmem:[#allocation19_spill] sm:$0xff] %v5036_v57 }
 0x1fe   :  { %v1393_v47 = vsub.f32 1.0, %v1392_v25  ;;  %v1403_v25 = vor.u32 1.1754944e-38, %v1402_v55  ;;  %1728 = vperm.xlu2 %3808, %v1726_v7   ;;  %vm1417_vm2 = vmor %vm1415_vm15, %vm1416_vm14  ;;  %vm1435_vm7 = vweird.f32 %v4980_v6  ;;  %v5038_v7 = vpop.permute.xlu1 %1460  ;;  %vm1194_vm9 = vcmp.eq.s32.totalorder %v5036_v57, 1  ;;  %v6002_v57 = vld [vmem:[#allocation37_spill] sm:$0xff] }
 0x1ff   :  { %v1412_v13 = vsub.f32 1.0, %v1411_v36  ;;  %5977 = vst [vmem:[#allocation20_spill] sm:$0xff] %v5038_v7  ;;  %v1442_v26 = vor.u32 1.1754944e-38, %v1441_v1  ;;  %vm1462_vm12 = vcmp.eq.s32.totalorder %v5038_v7, 1  ;;  %v5992_v1 = vld [vmem:[#allocation49_spill] sm:$0xff]  ;;  %v6004_v7 = vld [vmem:[#allocation55_spill] sm:$0xff] }
 0x200   :  { %v3867_v5 = vpop.eup %3866  ;;  %v1394_v48 = vmul.f32 %v3863_v15, %v1393_v47 }
 0x201   :  { %v3869_v51 = vpop.eup %3868  ;;  %v1413_v41 = vmul.f32 %v3865_v56, %v1412_v13  ;;  %v1386_v59 = vmul.f32 %v3867_v5, %v1380_v20 }
 0x202   :  { %v1395_v50 = vadd.f32 %v3863_v15, %v1394_v48  ;;  %v1431_v10 = vmul.f32 %v3869_v51, %v4980_v6  ;;  %v3871_v47 = vpop.eup %3870  ;;  %vm1436_vm6 = vweird.f32 %v3869_v51 }
 0x203   :  { %v1414_v63 = vadd.f32 %v3865_v56, %v1413_v41  ;;  %v5019_v36 = vsel %vm1455_vm10, %v1386_v59, %v1188_v9  ;;  %v1471_v53 = vpack.c.bf16 %v1386_v59, %v1386_v59  ;;  %vm1437_vm8 = vmor %vm1435_vm7, %vm1436_vm6 }
 0x204   :  { %v1399_v13 = vsel %vm1398_vm1, %v3863_v15, %v1395_v50  ;;  %v1432_v46 = vsub.f32 1.0, %v1431_v10 }
 0x205   :  { %v1404_v5 = vsel %vm1401_vm3, %v1403_v25, %v1399_v13  ;;  %v1418_v48 = vsel %vm1417_vm2, %v3865_v56, %v1414_v63  ;;  %1480 = vmatmul.bf16.vlgmr.msra.gmra.mxu0 %v1471_v53  ;;  %1493 = vmatmul.bf16.vlgmr.msra.gmra.mxu1 %v1471_v53  ;;  %v5979_v63 = vld [vmem:[#allocation26_spill] sm:$0xff]  ;;  %v5983_v13 = vld [vmem:[#allocation28_spill] sm:$0xff] }
 0x206   :  { %v1423_v35 = vsel %vm1420_vm4, %v1422_v24, %v1418_v48  ;;  %v1446_v55 = vmul.f32 %v3871_v47, %v1404_v5  ;;  %1506 = vmatmul.bf16.vlgmr.msrb.gmra.mxu2 %v1471_v53  ;;  %1519 = vmatmul.bf16.vlgmr.msrb.gmra.mxu3 %v1471_v53  ;;  %v1433_v20 = vmul.f32 %v3869_v51, %v1432_v46  ;;  %v5980_v53 = vld [vmem:[#allocation43_spill] sm:$0xff]  ;;  %v5981_v47 = vld [vmem:[#allocation44_spill] sm:$0xff]  ;;  %v5984_v46 = vld [vmem:[#allocation45_spill] sm:$0xff] }
 0x207   :  { %v1445_v9 = vmul.f32 %v1423_v35, %v4877_v8  ;;  %1740 = vmatpush.bf16.msra.mxu0 %v5929_v23  ;;  %1753 = vmatpush.bf16.msra.mxu1 %v5930_v44  ;;  %v1439_v8 = vand.u32 2147483647, %v4980_v6  ;;  %v5982_v24 = vld [vmem:[#allocation27_spill] sm:$0xff]  ;;  %v5985_v5 = vld [vmem:[#allocation46_spill] sm:$0xff]  ;;  %v5986_v48 = vld [vmem:[#allocation29_spill] sm:$0xff] }
 0x208   :  { %1766 = vmatpush.bf16.msrb.mxu2 %v4355_v34  ;;  %1779 = vmatpush.bf16.msrb.mxu3 %v4340_v17  ;;  %v1434_v56 = vadd.f32 %v3869_v51, %v1433_v20  ;;  %v5987_v35 = vld [vmem:[#allocation30_spill] sm:$0xff]  ;;  %v5989_v20 = vld [vmem:[#allocation48_spill] sm:$0xff] }
 0x209   :  { %v5026_v15 = vadd.f32 %v1446_v55, %v1445_v9  ;;  %vm1440_vm11 = vcmp.eq.f32.partialorder %v1439_v8, 8.507059e+37  ;;  %v5988_v55 = vld [vmem:[#allocation47_spill] sm:$0xff]  ;;  %v5993_v8 = vld [vmem:[#allocation50_spill] sm:$0xff] }
 0x20a   :  { %v1438_v41 = vsel %vm1437_vm8, %v3869_v51, %v1434_v56  ;;  %v1195_v51 = vsel %vm1194_vm9, %v4892_v37, 0.0  ;;  %v5978_v37 = vld [vmem:[#allocation25_spill] sm:$0xff]  ;;  %v5990_v9 = vld [vmem:[#allocation31_spill] sm:$0xff]  ;;  %v5991_v56 = vld [vmem:[#allocation32_spill] sm:$0xff] }
 0x20b   :  { %3872 = vtanh.f32 %v5026_v15  ;;  %1741 = vmatpush.bf16.msra.mxu0 %v5931_v62  ;;  %1754 = vmatpush.bf16.msra.mxu1 %v5932_v31  ;;  %v1443_v59 = vsel %vm1440_vm11, %v1442_v26, %v1438_v41  ;;  %v5994_v41 = vld [vmem:[#allocation33_spill] sm:$0xff]  ;;  %v5995_v26 = vld [vmem:[#allocation34_spill] sm:$0xff] }
 0x20c   :  { %1767 = vmatpush.bf16.msrb.mxu2 %v4389_v2  ;;  %1780 = vmatpush.bf16.msrb.mxu3 %v4347_v29 }
 0x20f   :  { %1742 = vmatpush.bf16.msra.mxu0 %v4319_v4  ;;  %1755 = vmatpush.bf16.msra.mxu1 %v5933_v16 }
 0x210   :  { %1768 = vmatpush.bf16.msrb.mxu2 %v4405_v27  ;;  %1781 = vmatpush.bf16.msrb.mxu3 %v4385_v60 }
 0x211   :  { %v3873_v6 = vpop.eup %3872 }
 0x212   :  { %v1449_v50 = vmul.f32 %v3873_v6, %v1443_v59  ;;  %v5996_v6 = vld [vmem:[#allocation51_spill] sm:$0xff]  ;;  %v5997_v59 = vld [vmem:[#allocation52_spill] sm:$0xff] }
 0x213   :  { %1743 = vmatpush.bf16.msra.mxu0 %v5934_v52  ;;  %1756 = vmatpush.bf16.msra.mxu1 %v5935_v11 }
 0x214   :  { %v5053_v10 = vsel %vm1462_vm12, %v1449_v50, %v1195_v51  ;;  %v1535_v25 = vpack.c.bf16 %v1449_v50, %v1449_v50  ;;  %1769 = vmatpush.bf16.msrb.mxu2 %v4417_v42  ;;  %1782 = vmatpush.bf16.msrb.mxu3 %v4397_v18  ;;  %v5998_v50 = vld [vmem:[#allocation35_spill] sm:$0xff]  ;;  %v5999_v51 = vld [vmem:[#allocation36_spill] sm:$0xff] }
 0x216   :  { %1544 = vmatmul.bf16.vlgmr.msrb.gmra.mxu0 %v1535_v25  ;;  %1557 = vmatmul.bf16.vlgmr.msrb.gmra.mxu1 %v1535_v25 }
 0x217   :  { %1570 = vmatmul.bf16.vlgmr.msra.gmra.mxu2 %v1535_v25  ;;  %1583 = vmatmul.bf16.vlgmr.msra.gmra.mxu3 %v1535_v25  ;;  %v6000_v25 = vld [vmem:[#allocation53_spill] sm:$0xff] }
 0x218   :  { %1744 = vmatpush.bf16.msra.mxu0 %v4342_v21  ;;  %1757 = vmatpush.bf16.msra.mxu1 %v4344_v22 }
 0x219   :  { %1770 = vmatpush.bf16.msrb.mxu2 %v4437_v14  ;;  %1783 = vmatpush.bf16.msrb.mxu3 %v4432_v61 }
 0x21c   :  { %1745 = vmatpush.bf16.msra.mxu0 %v4351_v32  ;;  %1758 = vmatpush.bf16.msra.mxu1 %v4353_v33 }
 0x21d   :  { %1771 = vmatpush.bf16.msrb.mxu2 %v4449_v38  ;;  %1784 = vmatpush.bf16.msrb.mxu3 %v4445_v28 }
 0x220   :  { %1746 = vmatpush.bf16.msra.mxu0 %v4361_v39  ;;  %1759 = vmatpush.bf16.msra.mxu1 %v4363_v40 }
 0x221   :  { %1772 = vmatpush.bf16.msrb.mxu2 %v4461_v0  ;;  %1785 = vmatpush.bf16.msrb.mxu3 %v4458_v58 }
 0x224   :  { %1747 = vmatpush.bf16.msra.mxu0 %v4367_v45  ;;  %1760 = vmatpush.bf16.msra.mxu1 %v4373_v49 }
 0x225   :  { %1773 = vmatpush.bf16.msrb.mxu2 %v4473_v30  ;;  %1786 = vmatpush.bf16.msrb.mxu3 %v4479_v43 }
 0x228   :  { %1804 = vmatpush.bf16.msrb.mxu0 %v5978_v37  ;;  %1817 = vmatpush.bf16.msrb.mxu1 %v5979_v63 }
 0x229   :  { %1830 = vmatpush.bf16.msra.mxu2 %v5980_v53  ;;  %1843 = vmatpush.bf16.msra.mxu3 %v5981_v47 }
 0x22c   :  { %1805 = vmatpush.bf16.msrb.mxu0 %v5982_v24  ;;  %1818 = vmatpush.bf16.msrb.mxu1 %v5983_v13 }
 0x22d   :  { %1831 = vmatpush.bf16.msra.mxu2 %v5984_v46  ;;  %1844 = vmatpush.bf16.msra.mxu3 %v5985_v5 }
 0x230   :  { %1806 = vmatpush.bf16.msrb.mxu0 %v5986_v48  ;;  %1819 = vmatpush.bf16.msrb.mxu1 %v5987_v35 }
 0x231   :  { %1832 = vmatpush.bf16.msra.mxu2 %v5988_v55  ;;  %1845 = vmatpush.bf16.msra.mxu3 %v5989_v20 }
 0x234   :  { %1807 = vmatpush.bf16.msrb.mxu0 %v5990_v9  ;;  %1820 = vmatpush.bf16.msrb.mxu1 %v5991_v56  ;;  %v6012_v9 = vld [vmem:[#allocation78_spill] sm:$0xff] }
 0x235   :  { %1833 = vmatpush.bf16.msra.mxu2 %v5992_v1  ;;  %1846 = vmatpush.bf16.msra.mxu3 %v5993_v8  ;;  %v6010_v8 = vld [vmem:[#allocation67_spill] sm:$0xff]  ;;  %v6011_v1 = vld [vmem:[#allocation68_spill] sm:$0xff] }
 0x238   :  { %1808 = vmatpush.bf16.msrb.mxu0 %v5994_v41  ;;  %1821 = vmatpush.bf16.msrb.mxu1 %v5995_v26  ;;  %v6005_v41 = vld [vmem:[#allocation56_spill] sm:$0xff]  ;;  %v6006_v26 = vld [vmem:[#allocation39_spill] sm:$0xff] }
 0x239   :  { %1834 = vmatpush.bf16.msra.mxu2 %v5996_v6  ;;  %1847 = vmatpush.bf16.msra.mxu3 %v5997_v59  ;;  %v6007_v6 = vld [vmem:[#allocation40_spill] sm:$0xff]  ;;  %v6008_v59 = vld [vmem:[#allocation57_spill] sm:$0xff] }
 0x23c   :  { %1809 = vmatpush.bf16.msrb.mxu0 %v5998_v50  ;;  %1822 = vmatpush.bf16.msrb.mxu1 %v5999_v51  ;;  %v6009_v50 = vld [vmem:[#allocation58_spill] sm:$0xff] }
 0x23d   :  { %1835 = vmatpush.bf16.msra.mxu2 %v6000_v25  ;;  %1848 = vmatpush.bf16.msra.mxu3 %v6001_v19 }
 0x240   :  { %1810 = vmatpush.bf16.msrb.mxu0 %v6002_v57  ;;  %1823 = vmatpush.bf16.msrb.mxu1 %v6003_v12 }
 0x241   :  { %1836 = vmatpush.bf16.msra.mxu2 %v6004_v7  ;;  %1849 = vmatpush.bf16.msra.mxu3 %v6005_v41 }
 0x244   :  { %1811 = vmatpush.bf16.msrb.mxu0 %v6006_v26  ;;  %1824 = vmatpush.bf16.msrb.mxu1 %v6007_v6 }
 0x245   :  { %1837 = vmatpush.bf16.msra.mxu2 %v6008_v59  ;;  %1850 = vmatpush.bf16.msra.mxu3 %v6009_v50 }
 0x282   :  { %v1481_v51 = vpop.f32.mrf.mxu0  ;;  %v1494_v25 = vpop.f32.mrf.mxu1 }
 0x283   :  { %v1524_v19 = vadd.f32 %v1481_v51, %v6010_v8  ;;  %v1525_v57 = vadd.f32 %v1494_v25, %v6011_v1  ;;  %v6016_v51 = vld [vmem:[#allocation108_spill] sm:$0xff] }
 0x285   :  { %v3590_v56 = vmul.f32 -1.442695, %v1524_v19  ;;  %v3591_v12 = vmul.f32 -1.442695, %v1525_v57  ;;  %v6013_v19 = vld [vmem:[#allocation81_spill] sm:$0xff]  ;;  %v6014_v57 = vld [vmem:[#allocation107_spill] sm:$0xff] }
 0x287   :  { %3874 = vpow2.f32 %v3590_v56  ;;  %v387_v56 = vadd.f32 %v6014_v57, %v6013_v19  ;;  %v6018_v19 = vld [vmem:[#allocation104_spill] sm:$0xff] }
 0x288   :  { %3876 = vpow2.f32 %v3591_v12  ;;  %v6015_v12 = vld [vmem:[#allocation83_spill] sm:$0xff] }
 0x289   :  { %v1507_v7 = vpop.f32.mrf.mxu2  ;;  %v1520_v41 = vpop.f32.mrf.mxu3  ;;  %v416_v25 = vadd.f32 %v6016_v51, %v6015_v12  ;;  %v6019_v51 = vld [vmem:[#allocation120_spill] sm:$0xff] }
 0x28a   :  { %v1527_v26 = vadd.f32 %v1520_v41, %v6012_v9  ;;  %v1483_v20 = vpop.f32.mrf.mxu0  ;;  %v1496_v6 = vpop.f32.mrf.mxu1  ;;  %v474_v12 = vadd.f32 %v6019_v51, %v6018_v19  ;;  %v6052_v19 = vld [vmem:[#allocation56_spill] sm:$0xff] }
 0x28c   :  { %v3592_v55 = vmul.f32 -1.442695, %v1527_v26 }
 0x28d   :  { %v3875_v59 = vpop.eup %3874 }
 0x28e   :  { %v3877_v35 = vpop.eup %3876  ;;  %v1595_v50 = vadd.f32 1.0, %v3875_v59  ;;  %3878 = vpow2.f32 %v3592_v55  ;;  %v6017_v55 = vld [vmem:[#allocation77_spill] sm:$0xff] }
 0x28f   :  { %v1614_v48 = vadd.f32 1.0, %v3877_v35  ;;  %v1526_v35 = vadd.f32 %v1507_v7, %v6017_v55 }
 0x290   :  { %3880 = vrcp.f32 %v1595_v50  ;;  %v1605_v47 = vand.u32 2147483647, %v1595_v50  ;;  %vm1601_vm15 = vweird.f32 %v1595_v50 }
 0x291   :  { %3882 = vrcp.f32 %v1614_v48  ;;  %v1509_v8 = vpop.f32.mrf.mxu2  ;;  %v1522_v1 = vpop.f32.mrf.mxu3  ;;  %vm1620_vm0 = vweird.f32 %v1614_v48 }
 0x292   :  { %vm1606_vm1 = vcmp.eq.f32.partialorder %v1605_v47, 8.507059e+37 }
 0x293   :  { %v1545_v5 = vpop.f32.mrf.mxu0  ;;  %v1558_v9 = vpop.f32.mrf.mxu1 }
 0x294   :  { %v3879_v20 = vpop.eup %3878  ;;  %v1588_v41 = vadd.f32 %v1545_v5, %v387_v56  ;;  %v1589_v26 = vadd.f32 %v1558_v9, %v416_v25  ;;  %v1626_v56 = vand.u32 2147483648, %v1614_v48  ;;  %v1607_v25 = vand.u32 2147483648, %v1595_v50 }
 0x295   :  { %v5112_v6 = vadd.f32 1.0, %v3879_v20 }
 0x296   :  { %v3881_v59 = vpop.eup %3880  ;;  %v3593_v46 = vmul.f32 -1.442695, %v1588_v41  ;;  %v3594_v13 = vmul.f32 -1.442695, %v1589_v26  ;;  %v1624_v41 = vand.u32 2147483647, %v1614_v48 }
 0x297   :  { %v3883_v8 = vpop.eup %3882  ;;  %v1597_v1 = vmul.f32 %v3881_v59, %v1595_v50  ;;  %3884 = vrcp.f32 %v5112_v6  ;;  %vm1602_vm13 = vweird.f32 %v3881_v59  ;;  %v1627_v51 = vor.u32 1.1754944e-38, %v1626_v56 }
 0x298   :  { %v1616_v57 = vmul.f32 %v3883_v8, %v1614_v48  ;;  %3886 = vpow2.f32 %v3593_v46  ;;  %vm1621_vm14 = vweird.f32 %v3883_v8  ;;  %vm1603_vm2 = vmor %vm1601_vm15, %vm1602_vm13  ;;  %vm1625_vm4 = vcmp.eq.f32.partialorder %v1624_v41, 8.507059e+37 }
 0x299   :  { %v1598_v24 = vsub.f32 1.0, %v1597_v1  ;;  %3888 = vpow2.f32 %v3594_v13  ;;  %vm1622_vm3 = vmor %vm1620_vm0, %vm1621_vm14  ;;  %vm1640_vm11 = vweird.f32 %v5112_v6 }
 0x29a   :  { %v1617_v5 = vsub.f32 1.0, %v1616_v57  ;;  %3890 = vtanh.f32 %v1526_v35  ;;  %v1571_v9 = vpop.f32.mrf.mxu2  ;;  %v1584_v7 = vpop.f32.mrf.mxu3  ;;  %v1608_v35 = vor.u32 1.1754944e-38, %v1607_v25 }
 0x29b   :  { %v1599_v20 = vmul.f32 %v3881_v59, %v1598_v24  ;;  %v1591_v26 = vadd.f32 %v1584_v7, %v474_v12  ;;  %v1547_v55 = vpop.f32.mrf.mxu0  ;;  %v1560_v53 = vpop.f32.mrf.mxu1 }
 0x29c   :  { %v1618_v63 = vmul.f32 %v3883_v8, %v1617_v5 }
 0x29d   :  { %v5118_v46 = vpop.eup %3884  ;;  %v1600_v1 = vadd.f32 %v3881_v59, %v1599_v20  ;;  %v3595_v13 = vmul.f32 -1.442695, %v1591_v26 }
 0x29e   :  { %v3887_v57 = vpop.eup %3886  ;;  %v1619_v24 = vadd.f32 %v3883_v8, %v1618_v63  ;;  %v1636_v12 = vmul.f32 %v5118_v46, %v5112_v6  ;;  %vm1641_vm8 = vweird.f32 %v5118_v46 }
 0x29f   :  { %v3889_v7 = vpop.eup %3888  ;;  %v1604_v53 = vsel %vm1603_vm2, %v3881_v59, %v1600_v1  ;;  %v5123_v50 = vadd.f32 1.0, %v3887_v57  ;;  %3892 = vpow2.f32 %v3595_v13  ;;  %v6020_v57 = vld [vmem:[#allocation103_spill] sm:$0xff]  ;;  %vm5154_vm13 = vmor %vm1640_vm11, %vm1641_vm8 }
 0x2a0   :  { %v3891_v48 = vpop.eup %3890  ;;  %v1609_v5 = vsel %vm1606_vm1, %v1608_v35, %v1604_v53  ;;  %v1623_v47 = vsel %vm1622_vm3, %v3883_v8, %v1619_v24  ;;  %v1637_v20 = vsub.f32 1.0, %v1636_v12  ;;  %v5125_v26 = vadd.f32 1.0, %v3889_v7  ;;  %v4066_v8 = vld [vmem:[%s5693_s1] sm:$0xff] }
 0x2a1   :  { %v1628_v56 = vsel %vm1625_vm4, %v1627_v51, %v1623_v47  ;;  %v1651_v55 = vmul.f32 %v3891_v48, %v1609_v5  ;;  %3894 = vrcp.f32 %v5123_v50  ;;  %vm1986_vm6 = vcmp.eq.s32.totalorder %v4066_v8, 3  ;;  %v6021_v51 = vld [vmem:[#allocation119_spill] sm:$0xff]  ;;  %v5146_v47 = vpop.permute.xlu2 %1721 }
 0x2a2   :  { %v1650_v63 = vmul.f32 %v1628_v56, %v4977_v3  ;;  %3896 = vrcp.f32 %v5125_v26  ;;  %v1573_v25 = vpop.f32.mrf.mxu2  ;;  %v1586_v59 = vpop.f32.mrf.mxu3  ;;  %v1638_v41 = vmul.f32 %v5118_v46, %v1637_v20  ;;  %vm1993_vm7 = vcmp.eq.s32.totalorder %v4066_v8, 4  ;;  %6022 = vst [vmem:[#allocation21_spill] sm:$0xff] %v5146_v47 }
 0x2a3   :  { %v445_v35 = vadd.f32 %v6021_v51, %v6020_v57  ;;  %v1646_v24 = vand.u32 2147483648, %v5112_v6  ;;  %v1987_v7 = vsel %vm1986_vm6, 1, %v5846_v54  ;;  %v1994_v53 = vsel %vm1993_vm7, 1, %v5846_v54  ;;  %v6051_v57 = vld [vmem:[#allocation55_spill] sm:$0xff] }
 0x2a4   :  { %v5131_v1 = vadd.f32 %v1651_v55, %v1650_v63  ;;  %v1639_v3 = vadd.f32 %v5118_v46, %v1638_v41  ;;  %v1644_v20 = vand.u32 2147483647, %v5112_v6  ;;  %1989 = vperm.xlu0 %3806, %v1987_v7   ;;  %1996 = vperm.xlu1 %3807, %v1994_v53   ;;  %v1670_v25 = vand.u32 2147483648, %v5123_v50 }
 0x2a5   :  { %v3893_v13 = vpop.eup %3892  ;;  %v1590_v5 = vadd.f32 %v1571_v9, %v445_v35  ;;  %v1647_v59 = vor.u32 1.1754944e-38, %v1646_v24  ;;  %vm1723_vm14 = vcmp.eq.s32.totalorder %v5146_v47, 1  ;;  %v1689_v8 = vand.u32 2147483648, %v5125_v26  ;;  %v6049_v47 = vld [vmem:[#allocation37_spill] sm:$0xff] }
 0x2a6   :  { %3898 = vtanh.f32 %v5131_v1  ;;  %v5142_v12 = vadd.f32 1.0, %v3893_v13  ;;  %v1643_v9 = vsel %vm5154_vm13, %v5118_v46, %v1639_v3  ;;  %vm1645_vm15 = vcmp.eq.f32.partialorder %v1644_v20, 8.507059e+37 }
 0x2a7   :  { %v3895_v48 = vpop.eup %3894  ;;  %v1668_v35 = vand.u32 2147483647, %v5123_v50  ;;  %v1648_v7 = vsel %vm1645_vm15, %v1647_v59, %v1643_v9  ;;  %v1687_v46 = vand.u32 2147483647, %v5125_v26  ;;  %vm1683_vm2 = vweird.f32 %v5125_v26 }
 0x2a8   :  { %v3897_v56 = vpop.eup %3896  ;;  %v1660_v55 = vmul.f32 %v3895_v48, %v5123_v50  ;;  %3900 = vrcp.f32 %v5142_v12  ;;  %vm1665_vm0 = vweird.f32 %v3895_v48  ;;  %vm1664_vm3 = vweird.f32 %v5123_v50 }
 0x2a9   :  { %v1679_v54 = vmul.f32 %v3897_v56, %v5125_v26  ;;  %3902 = vtanh.f32 %v1590_v5  ;;  %vm1684_vm1 = vweird.f32 %v3897_v56  ;;  %v1671_v63 = vor.u32 1.1754944e-38, %v1670_v25  ;;  %vm1666_vm4 = vmor %vm1664_vm3, %vm1665_vm0 }
 0x2aa   :  { %v1661_v6 = vsub.f32 1.0, %v1660_v55  ;;  %vm1685_vm6 = vmor %vm1683_vm2, %vm1684_vm1  ;;  %vm1669_vm7 = vcmp.eq.f32.partialorder %v1668_v35, 8.507059e+37  ;;  %vm1688_vm8 = vcmp.eq.f32.partialorder %v1687_v46, 8.507059e+37  ;;  %vm1703_vm13 = vweird.f32 %v5142_v12  ;;  %v5190_v35 = vpop.permute.xlu2 %1728 }
 0x2ab   :  { %v1680_v41 = vsub.f32 1.0, %v1679_v54  ;;  %6025 = vst [vmem:[#allocation22_spill] sm:$0xff] %v5190_v35  ;;  %vm1730_vm1 = vcmp.eq.s32.totalorder %v5190_v35, 1  ;;  %v6050_v35 = vld [vmem:[#allocation38_spill] sm:$0xff] }
 0x2ac   :  { %v3899_v13 = vpop.eup %3898  ;;  %v1662_v51 = vmul.f32 %v3895_v48, %v1661_v6  ;;  %v1690_v6 = vor.u32 1.1754944e-38, %v1689_v8  ;;  %v1709_v8 = vand.u32 2147483648, %v5142_v12 }
 0x2ad   :  { %v1681_v53 = vmul.f32 %v3897_v56, %v1680_v41  ;;  %v1654_v3 = vmul.f32 %v3899_v13, %v1648_v7 }
 0x2ae   :  { %v3901_v55 = vpop.eup %3900  ;;  %v1663_v24 = vadd.f32 %v3895_v48, %v1662_v51  ;;  %v1710_v46 = vor.u32 1.1754944e-38, %v1709_v8  ;;  %v6041_v8 = vld [vmem:[#allocation33_spill] sm:$0xff] }
 0x2af   :  { %v1682_v5 = vadd.f32 %v3897_v56, %v1681_v53  ;;  %v1699_v20 = vmul.f32 %v3901_v55, %v5142_v12  ;;  %v5173_v54 = vsel %vm1723_vm14, %v1654_v3, %v5019_v36  ;;  %v1739_v9 = vpack.c.bf16 %v1654_v3, %v1654_v3  ;;  %v3903_v41 = vpop.eup %3902 }
 0x2b0   :  { %v1667_v59 = vsel %vm1666_vm4, %v3895_v48, %v1663_v24  ;;  %vm1704_vm11 = vweird.f32 %v3901_v55 }
 0x2b1   :  { %v1672_v26 = vsel %vm1669_vm7, %v1671_v63, %v1667_v59  ;;  %v1686_v13 = vsel %vm1685_vm6, %v3897_v56, %v1682_v5  ;;  %v1700_v50 = vsub.f32 1.0, %v1699_v20  ;;  %1748 = vmatmul.bf16.vlgmr.msra.gmra.mxu0 %v1739_v9  ;;  %1761 = vmatmul.bf16.vlgmr.msra.gmra.mxu1 %v1739_v9  ;;  %vm1705_vm15 = vmor %vm1703_vm13, %vm1704_vm11  ;;  %v6027_v5 = vld [vmem:[#allocation43_spill] sm:$0xff]  ;;  %v6028_v20 = vld [vmem:[#allocation44_spill] sm:$0xff] }
 0x2b2   :  { %v1691_v25 = vsel %vm1688_vm8, %v1690_v6, %v1686_v13  ;;  %v1714_v51 = vmul.f32 %v3903_v41, %v1672_v26  ;;  %1774 = vmatmul.bf16.vlgmr.msrb.gmra.mxu2 %v1739_v9  ;;  %1787 = vmatmul.bf16.vlgmr.msrb.gmra.mxu3 %v1739_v9  ;;  %v6029_v9 = vld [vmem:[#allocation27_spill] sm:$0xff]  ;;  %v6030_v6 = vld [vmem:[#allocation28_spill] sm:$0xff]  ;;  %v6031_v59 = vld [vmem:[#allocation45_spill] sm:$0xff] }
 0x2b3   :  { %v1713_v7 = vmul.f32 %v1691_v25, %v5026_v15  ;;  %v1701_v36 = vmul.f32 %v3901_v55, %v1700_v50  ;;  %2007 = vmatpush.bf16.msra.mxu0 %v5929_v23  ;;  %2020 = vmatpush.bf16.msra.mxu1 %v5930_v44  ;;  %v1707_v15 = vand.u32 2147483647, %v5142_v12  ;;  %v6032_v41 = vld [vmem:[#allocation46_spill] sm:$0xff]  ;;  %v6033_v26 = vld [vmem:[#allocation29_spill] sm:$0xff]  ;;  %v6035_v50 = vld [vmem:[#allocation47_spill] sm:$0xff] }
 0x2b4   :  { %2033 = vmatpush.bf16.msrb.mxu2 %v4355_v34  ;;  %2046 = vmatpush.bf16.msrb.mxu3 %v4340_v17  ;;  %v6034_v13 = vld [vmem:[#allocation30_spill] sm:$0xff]  ;;  %v6036_v25 = vld [vmem:[#allocation48_spill] sm:$0xff] }
 0x2b5   :  { %v5180_v48 = vadd.f32 %v1714_v51, %v1713_v7  ;;  %v1702_v56 = vadd.f32 %v3901_v55, %v1701_v36  ;;  %vm1708_vm0 = vcmp.eq.f32.partialorder %v1707_v15, 8.507059e+37  ;;  %v6037_v51 = vld [vmem:[#allocation31_spill] sm:$0xff]  ;;  %v6038_v7 = vld [vmem:[#allocation32_spill] sm:$0xff]  ;;  %v6039_v36 = vld [vmem:[#allocation49_spill] sm:$0xff] }
 0x2b6   :  { %v6042_v15 = vld [vmem:[#allocation34_spill] sm:$0xff] }
 0x2b7   :  { %3904 = vtanh.f32 %v5180_v48  ;;  %2008 = vmatpush.bf16.msra.mxu0 %v5931_v62  ;;  %2021 = vmatpush.bf16.msra.mxu1 %v5932_v31  ;;  %v1706_v53 = vsel %vm1705_vm15, %v3901_v55, %v1702_v56  ;;  %v6040_v56 = vld [vmem:[#allocation50_spill] sm:$0xff] }
 0x2b8   :  { %2034 = vmatpush.bf16.msrb.mxu2 %v4389_v2  ;;  %2047 = vmatpush.bf16.msrb.mxu3 %v4347_v29  ;;  %v1711_v12 = vsel %vm1708_vm0, %v1710_v46, %v1706_v53  ;;  %v6043_v53 = vld [vmem:[#allocation51_spill] sm:$0xff]  ;;  %v6044_v46 = vld [vmem:[#allocation52_spill] sm:$0xff] }
 0x2bb   :  { %2009 = vmatpush.bf16.msra.mxu0 %v4319_v4  ;;  %2022 = vmatpush.bf16.msra.mxu1 %v5933_v16 }
 0x2bc   :  { %2035 = vmatpush.bf16.msrb.mxu2 %v4405_v27  ;;  %2048 = vmatpush.bf16.msrb.mxu3 %v4385_v60 }
 0x2bd   :  { %v3905_v3 = vpop.eup %3904 }
 0x2be   :  { %v1717_v24 = vmul.f32 %v3905_v3, %v1711_v12  ;;  %v6045_v3 = vld [vmem:[#allocation35_spill] sm:$0xff]  ;;  %v6046_v12 = vld [vmem:[#allocation36_spill] sm:$0xff] }
 0x2bf   :  { %2010 = vmatpush.bf16.msra.mxu0 %v5934_v52  ;;  %2023 = vmatpush.bf16.msra.mxu1 %v5935_v11 }
 0x2c0   :  { %v5202_v55 = vsel %vm1730_vm1, %v1717_v24, %v5053_v10  ;;  %v1803_v63 = vpack.c.bf16 %v1717_v24, %v1717_v24  ;;  %2036 = vmatpush.bf16.msrb.mxu2 %v4417_v42  ;;  %2049 = vmatpush.bf16.msrb.mxu3 %v4397_v18  ;;  %v6026_v10 = vld [vmem:[#allocation26_spill] sm:$0xff]  ;;  %v6047_v24 = vld [vmem:[#allocation53_spill] sm:$0xff] }
 0x2c2   :  { %1812 = vmatmul.bf16.vlgmr.msrb.gmra.mxu0 %v1803_v63  ;;  %1825 = vmatmul.bf16.vlgmr.msrb.gmra.mxu1 %v1803_v63 }
 0x2c3   :  { %1838 = vmatmul.bf16.vlgmr.msra.gmra.mxu2 %v1803_v63  ;;  %1851 = vmatmul.bf16.vlgmr.msra.gmra.mxu3 %v1803_v63  ;;  %v6048_v63 = vld [vmem:[#allocation54_spill] sm:$0xff] }
 0x2c4   :  { %2011 = vmatpush.bf16.msra.mxu0 %v4342_v21  ;;  %2024 = vmatpush.bf16.msra.mxu1 %v4344_v22 }
 0x2c5   :  { %2037 = vmatpush.bf16.msrb.mxu2 %v4437_v14  ;;  %2050 = vmatpush.bf16.msrb.mxu3 %v4432_v61 }
 0x2c8   :  { %2012 = vmatpush.bf16.msra.mxu0 %v4351_v32  ;;  %2025 = vmatpush.bf16.msra.mxu1 %v4353_v33 }
 0x2c9   :  { %2038 = vmatpush.bf16.msrb.mxu2 %v4449_v38  ;;  %2051 = vmatpush.bf16.msrb.mxu3 %v4445_v28 }
 0x2cc   :  { %2013 = vmatpush.bf16.msra.mxu0 %v4361_v39  ;;  %2026 = vmatpush.bf16.msra.mxu1 %v4363_v40 }
 0x2cd   :  { %2039 = vmatpush.bf16.msrb.mxu2 %v4461_v0  ;;  %2052 = vmatpush.bf16.msrb.mxu3 %v4458_v58 }
 0x2d0   :  { %2014 = vmatpush.bf16.msra.mxu0 %v4367_v45  ;;  %2027 = vmatpush.bf16.msra.mxu1 %v4373_v49 }
 0x2d1   :  { %2040 = vmatpush.bf16.msrb.mxu2 %v4473_v30  ;;  %2053 = vmatpush.bf16.msrb.mxu3 %v4479_v43 }
 0x2d4   :  { %2070 = vmatpush.bf16.msrb.mxu0 %v5978_v37  ;;  %2083 = vmatpush.bf16.msrb.mxu1 %v6026_v10 }
 0x2d5   :  { %2096 = vmatpush.bf16.msra.mxu2 %v6027_v5  ;;  %2109 = vmatpush.bf16.msra.mxu3 %v6028_v20 }
 0x2d8   :  { %2071 = vmatpush.bf16.msrb.mxu0 %v6029_v9  ;;  %2084 = vmatpush.bf16.msrb.mxu1 %v6030_v6 }
 0x2d9   :  { %2097 = vmatpush.bf16.msra.mxu2 %v6031_v59  ;;  %2110 = vmatpush.bf16.msra.mxu3 %v6032_v41 }
 0x2dc   :  { %2072 = vmatpush.bf16.msrb.mxu0 %v6033_v26  ;;  %2085 = vmatpush.bf16.msrb.mxu1 %v6034_v13 }
 0x2dd   :  { %2098 = vmatpush.bf16.msra.mxu2 %v6035_v50  ;;  %2111 = vmatpush.bf16.msra.mxu3 %v6036_v25  ;;  %v6062_v25 = vld [vmem:[#allocation84_spill] sm:$0xff] }
 0x2e0   :  { %2073 = vmatpush.bf16.msrb.mxu0 %v6037_v51  ;;  %2086 = vmatpush.bf16.msrb.mxu1 %v6038_v7 }
 0x2e1   :  { %2099 = vmatpush.bf16.msra.mxu2 %v6039_v36  ;;  %2112 = vmatpush.bf16.msra.mxu3 %v6040_v56  ;;  %v6060_v56 = vld [vmem:[#allocation70_spill] sm:$0xff] }
 0x2e4   :  { %2074 = vmatpush.bf16.msrb.mxu0 %v6041_v8  ;;  %2087 = vmatpush.bf16.msrb.mxu1 %v6042_v15  ;;  %v6053_v15 = vld [vmem:[#allocation39_spill] sm:$0xff] }
 0x2e5   :  { %2100 = vmatpush.bf16.msra.mxu2 %v6043_v53  ;;  %2113 = vmatpush.bf16.msra.mxu3 %v6044_v46  ;;  %v6054_v53 = vld [vmem:[#allocation40_spill] sm:$0xff]  ;;  %v6055_v46 = vld [vmem:[#allocation57_spill] sm:$0xff] }
 0x2e8   :  { %2075 = vmatpush.bf16.msrb.mxu0 %v6045_v3  ;;  %2088 = vmatpush.bf16.msrb.mxu1 %v6046_v12  ;;  %v6056_v3 = vld [vmem:[#allocation58_spill] sm:$0xff]  ;;  %v6057_v12 = vld [vmem:[#allocation59_spill] sm:$0xff] }
 0x2e9   :  { %2101 = vmatpush.bf16.msra.mxu2 %v6047_v24  ;;  %2114 = vmatpush.bf16.msra.mxu3 %v6048_v63  ;;  %v6058_v24 = vld [vmem:[#allocation69_spill] sm:$0xff]  ;;  %v6059_v63 = vld [vmem:[#allocation60_spill] sm:$0xff] }
 0x2ea   :  { %v266_v8 = vadd.f32 %v6058_v24, %v6057_v12 }
 0x2ec   :  { %2076 = vmatpush.bf16.msrb.mxu0 %v6049_v47  ;;  %2089 = vmatpush.bf16.msrb.mxu1 %v6050_v35  ;;  %v295_v47 = vadd.f32 %v6060_v56, %v6059_v63 }
 0x2ed   :  { %2102 = vmatpush.bf16.msra.mxu2 %v6051_v57  ;;  %2115 = vmatpush.bf16.msra.mxu3 %v6052_v19 }
 0x2f0   :  { %2077 = vmatpush.bf16.msrb.mxu0 %v6053_v15  ;;  %2090 = vmatpush.bf16.msrb.mxu1 %v6054_v53  ;;  %v6061_v15 = vld [vmem:[#allocation76_spill] sm:$0xff] }
 0x2f1   :  { %2103 = vmatpush.bf16.msra.mxu2 %v6055_v46  ;;  %2116 = vmatpush.bf16.msra.mxu3 %v6056_v3  ;;  %v353_v53 = vadd.f32 %v6062_v25, %v6061_v15  ;;  %v6063_v25 = vld [vmem:[#allocation75_spill] sm:$0xff] }
 0x32e   :  { %v1749_v36 = vpop.f32.mrf.mxu0  ;;  %v1762_v35 = vpop.f32.mrf.mxu1 }
 0x32f   :  { %v1792_v7 = vadd.f32 %v1749_v36, %v266_v8  ;;  %v1793_v57 = vadd.f32 %v1762_v35, %v295_v47  ;;  %v6065_v8 = vld [vmem:[#allocation101_spill] sm:$0xff] }
 0x331   :  { %v3596_v51 = vmul.f32 -1.442695, %v1792_v7  ;;  %v3597_v19 = vmul.f32 -1.442695, %v1793_v57 }
 0x333   :  { %3906 = vpow2.f32 %v3596_v51 }
 0x334   :  { %3908 = vpow2.f32 %v3597_v19  ;;  %v6064_v19 = vld [vmem:[#allocation82_spill] sm:$0xff] }
 0x335   :  { %v1775_v46 = vpop.f32.mrf.mxu2  ;;  %v1788_v50 = vpop.f32.mrf.mxu3  ;;  %v324_v36 = vadd.f32 %v6064_v19, %v6063_v25 }
 0x336   :  { %v1795_v3 = vadd.f32 %v1788_v50, %v353_v53  ;;  %v1751_v13 = vpop.f32.mrf.mxu0  ;;  %v1764_v26 = vpop.f32.mrf.mxu1 }
 0x337   :  { %v6066_v13 = vld [vmem:[#allocation102_spill] sm:$0xff] }
 0x338   :  { %v3598_v24 = vmul.f32 -1.442695, %v1795_v3 }
 0x339   :  { %v3907_v12 = vpop.eup %3906 }
 0x33a   :  { %v3909_v41 = vpop.eup %3908  ;;  %v1863_v56 = vadd.f32 1.0, %v3907_v12  ;;  %3910 = vpow2.f32 %v3598_v24  ;;  %v1794_v12 = vadd.f32 %v1775_v46, %v324_v36  ;;  %v6067_v36 = vld [vmem:[#allocation118_spill] sm:$0xff] }
 0x33b   :  { %v1882_v63 = vadd.f32 1.0, %v3909_v41 }
 0x33c   :  { %3912 = vrcp.f32 %v1863_v56  ;;  %v1873_v6 = vand.u32 2147483647, %v1863_v56  ;;  %vm1869_vm4 = vweird.f32 %v1863_v56 }
 0x33d   :  { %3914 = vrcp.f32 %v1882_v63  ;;  %v1777_v47 = vpop.f32.mrf.mxu2  ;;  %v1790_v57 = vpop.f32.mrf.mxu3  ;;  %v1894_v25 = vand.u32 2147483648, %v1882_v63  ;;  %v1892_v46 = vand.u32 2147483647, %v1882_v63  ;;  %vm1888_vm6 = vweird.f32 %v1882_v63 }
 0x33e   :  { %vm1874_vm7 = vcmp.eq.f32.partialorder %v1873_v6, 8.507059e+37 }
 0x33f   :  { %v1813_v35 = vpop.f32.mrf.mxu0  ;;  %v1826_v51 = vpop.f32.mrf.mxu1  ;;  %v1895_v20 = vor.u32 1.1754944e-38, %v1894_v25  ;;  %vm1893_vm13 = vcmp.eq.f32.partialorder %v1892_v46, 8.507059e+37 }
 0x340   :  { %v3911_v7 = vpop.eup %3910  ;;  %v1856_v50 = vadd.f32 %v1813_v35, %v6065_v8  ;;  %v1857_v26 = vadd.f32 %v1826_v51, %v6066_v13  ;;  %v1875_v35 = vand.u32 2147483648, %v1863_v56 }
 0x341   :  { %v5264_v53 = vadd.f32 1.0, %v3911_v7 }
 0x342   :  { %v3913_v3 = vpop.eup %3912  ;;  %v3599_v24 = vmul.f32 -1.442695, %v1856_v50  ;;  %v3600_v41 = vmul.f32 -1.442695, %v1857_v26 }
 0x343   :  { %v3915_v15 = vpop.eup %3914  ;;  %v1865_v59 = vmul.f32 %v3913_v3, %v1863_v56  ;;  %3916 = vrcp.f32 %v5264_v53  ;;  %vm1870_vm2 = vweird.f32 %v3913_v3  ;;  %vm1908_vm0 = vweird.f32 %v5264_v53 }
 0x344   :  { %v1884_v47 = vmul.f32 %v3915_v15, %v1882_v63  ;;  %3918 = vpow2.f32 %v3599_v24  ;;  %vm1889_vm3 = vweird.f32 %v3915_v15  ;;  %vm1871_vm8 = vmor %vm1869_vm4, %vm1870_vm2 }
 0x345   :  { %v1866_v57 = vsub.f32 1.0, %v1865_v59  ;;  %3920 = vpow2.f32 %v3600_v41  ;;  %vm1890_vm11 = vmor %vm1888_vm6, %vm1889_vm3 }
 0x346   :  { %v1885_v19 = vsub.f32 1.0, %v1884_v47  ;;  %3922 = vtanh.f32 %v1794_v12  ;;  %v1839_v51 = vpop.f32.mrf.mxu2  ;;  %v1852_v7 = vpop.f32.mrf.mxu3  ;;  %v1876_v12 = vor.u32 1.1754944e-38, %v1875_v35 }
 0x347   :  { %v1867_v8 = vmul.f32 %v3913_v3, %v1866_v57  ;;  %v1859_v50 = vadd.f32 %v1852_v7, %v6067_v36  ;;  %v1815_v13 = vpop.f32.mrf.mxu0  ;;  %v1828_v26 = vpop.f32.mrf.mxu1 }
 0x348   :  { %v1886_v9 = vmul.f32 %v3915_v15, %v1885_v19 }
 0x349   :  { %v3917_v24 = vpop.eup %3916  ;;  %v1868_v59 = vadd.f32 %v3913_v3, %v1867_v8  ;;  %v3601_v41 = vmul.f32 -1.442695, %v1859_v50 }
 0x34a   :  { %v3919_v47 = vpop.eup %3918  ;;  %v1887_v57 = vadd.f32 %v3915_v15, %v1886_v9  ;;  %v1904_v5 = vmul.f32 %v3917_v24, %v5264_v53  ;;  %vm1909_vm15 = vweird.f32 %v3917_v24 }
 0x34b   :  { %v3921_v10 = vpop.eup %3920  ;;  %v1872_v7 = vsel %vm1871_vm8, %v3913_v3, %v1868_v59  ;;  %v5270_v19 = vadd.f32 1.0, %v3919_v47  ;;  %3924 = vpow2.f32 %v3601_v41  ;;  %v5281_v47 = vpop.permute.xlu0 %1989  ;;  %vm5287_vm2 = vmor %vm1908_vm0, %vm1909_vm15 }
 0x34c   :  { %v3923_v56 = vpop.eup %3922  ;;  %v1877_v63 = vsel %vm1874_vm7, %v1876_v12, %v1872_v7  ;;  %v1891_v8 = vsel %vm1890_vm11, %v3915_v15, %v1887_v57  ;;  %v1905_v6 = vsub.f32 1.0, %v1904_v5  ;;  %v1945_v36 = vadd.f32 1.0, %v3921_v10 }
 0x34d   :  { %v1896_v50 = vsel %vm1893_vm13, %v1895_v20, %v1891_v8  ;;  %v1919_v25 = vmul.f32 %v3923_v56, %v1877_v63  ;;  %3926 = vrcp.f32 %v5270_v19  ;;  %v1914_v10 = vand.u32 2147483648, %v5264_v53  ;;  %v6068_v20 = vld [vmem:[#allocation117_spill] sm:$0xff] }
 0x34e   :  { %v1918_v9 = vmul.f32 %v1896_v50, %v5131_v1  ;;  %3928 = vrcp.f32 %v1945_v36  ;;  %v1841_v35 = vpop.f32.mrf.mxu2  ;;  %v1854_v13 = vpop.f32.mrf.mxu3  ;;  %v1906_v26 = vmul.f32 %v3917_v24, %v1905_v6  ;;  %v1858_v41 = vadd.f32 %v1839_v51, %v6068_v20 }
 0x34f   :  { %v1912_v1 = vand.u32 2147483647, %v5264_v53  ;;  %v1938_v8 = vand.u32 2147483648, %v5270_v19  ;;  %v1915_v6 = vor.u32 1.1754944e-38, %v1914_v10  ;;  %vm1991_vm3 = vcmp.eq.s32.totalorder %v5281_v47, 1  ;;  %v6114_v47 = vld [vmem:[#allocation24_spill] sm:$0xff] }
 0x350   :  { %v5274_v3 = vadd.f32 %v1919_v25, %v1918_v9  ;;  %v1907_v59 = vadd.f32 %v3917_v24, %v1906_v26  ;;  %v1957_v50 = vand.u32 2147483648, %v1945_v36  ;;  %v1936_v35 = vand.u32 2147483647, %v5270_v19 }
 0x351   :  { %v3925_v46 = vpop.eup %3924  ;;  %vm1913_vm4 = vcmp.eq.f32.partialorder %v1912_v1, 8.507059e+37  ;;  %vm1951_vm8 = vweird.f32 %v1945_v36  ;;  %vm1932_vm11 = vweird.f32 %v5270_v19  ;;  %v1939_v10 = vor.u32 1.1754944e-38, %v1938_v8 }
 0x352   :  { %3930 = vtanh.f32 %v5274_v3  ;;  %v5277_v15 = vadd.f32 1.0, %v3925_v46  ;;  %v1911_v63 = vsel %vm5287_vm2, %v3917_v24, %v1907_v59  ;;  %v1955_v46 = vand.u32 2147483647, %v1945_v36 }
 0x353   :  { %v3927_v5 = vpop.eup %3926  ;;  %v1916_v13 = vsel %vm1913_vm4, %v1915_v6, %v1911_v63  ;;  %vm1937_vm0 = vcmp.eq.f32.partialorder %v1936_v35, 8.507059e+37 }
 0x354   :  { %v3929_v12 = vpop.eup %3928  ;;  %v1928_v57 = vmul.f32 %v3927_v5, %v5270_v19  ;;  %3932 = vrcp.f32 %v5277_v15  ;;  %vm1933_vm6 = vweird.f32 %v3927_v5  ;;  %vm1956_vm2 = vcmp.eq.f32.partialorder %v1955_v46, 8.507059e+37 }
 0x355   :  { %v1947_v56 = vmul.f32 %v3929_v12, %v1945_v36  ;;  %3934 = vtanh.f32 %v1858_v41  ;;  %vm1952_vm7 = vweird.f32 %v3929_v12  ;;  %vm1934_vm13 = vmor %vm1932_vm11, %vm1933_vm6  ;;  %vm1971_vm6 = vweird.f32 %v5277_v15 }
 0x356   :  { %v1929_v51 = vsub.f32 1.0, %v1928_v57  ;;  %vm1953_vm15 = vmor %vm1951_vm8, %vm1952_vm7 }
 0x357   :  { %v1948_v53 = vsub.f32 1.0, %v1947_v56  ;;  %v1958_v56 = vor.u32 1.1754944e-38, %v1957_v50  ;;  %v1977_v50 = vand.u32 2147483648, %v5277_v15 }
 0x358   :  { %v3931_v25 = vpop.eup %3930  ;;  %v1930_v9 = vmul.f32 %v3927_v5, %v1929_v51 }
 0x359   :  { %v1949_v26 = vmul.f32 %v3929_v12, %v1948_v53  ;;  %v1922_v24 = vmul.f32 %v3931_v25, %v1916_v13  ;;  %v1978_v13 = vor.u32 1.1754944e-38, %v1977_v50  ;;  %v6088_v50 = vld [vmem:[#allocation51_spill] sm:$0xff] }
 0x35a   :  { %v3933_v59 = vpop.eup %3932  ;;  %v1931_v20 = vadd.f32 %v3927_v5, %v1930_v9  ;;  %v5318_v9 = vpop.permute.xlu1 %1996 }
 0x35b   :  { %v1950_v57 = vadd.f32 %v3929_v12, %v1949_v26  ;;  %v1967_v41 = vmul.f32 %v3933_v59, %v5277_v15  ;;  %v5301_v1 = vsel %vm1991_vm3, %v1922_v24, %v5173_v54  ;;  %v2006_v7 = vpack.c.bf16 %v1922_v24, %v1922_v24  ;;  %v3935_v51 = vpop.eup %3934 }
 0x35c   :  { %v1935_v63 = vsel %vm1934_vm13, %v3927_v5, %v1931_v20  ;;  %vm1972_vm4 = vweird.f32 %v3933_v59  ;;  %vm1998_vm11 = vcmp.eq.s32.totalorder %v5318_v9, 1  ;;  %v6072_v20 = vld [vmem:[#allocation43_spill] sm:$0xff] }
 0x35d   :  { %v1940_v36 = vsel %vm1937_vm0, %v1939_v10, %v1935_v63  ;;  %v1954_v6 = vsel %vm1953_vm15, %v3929_v12, %v1950_v57  ;;  %v1968_v19 = vsub.f32 1.0, %v1967_v41  ;;  %2015 = vmatmul.bf16.vlgmr.msra.gmra.mxu0 %v2006_v7  ;;  %2028 = vmatmul.bf16.vlgmr.msra.gmra.mxu1 %v2006_v7  ;;  %vm1973_vm7 = vmor %vm1971_vm6, %vm1972_vm4  ;;  %v6073_v10 = vld [vmem:[#allocation44_spill] sm:$0xff]  ;;  %v6074_v57 = vld [vmem:[#allocation27_spill] sm:$0xff] }
 0x35e   :  { %v1959_v8 = vsel %vm1956_vm2, %v1958_v56, %v1954_v6  ;;  %v1982_v53 = vmul.f32 %v3935_v51, %v1940_v36  ;;  %2041 = vmatmul.bf16.vlgmr.msrb.gmra.mxu2 %v2006_v7  ;;  %2054 = vmatmul.bf16.vlgmr.msrb.gmra.mxu3 %v2006_v7  ;;  %v6075_v41 = vld [vmem:[#allocation28_spill] sm:$0xff]  ;;  %v6076_v7 = vld [vmem:[#allocation45_spill] sm:$0xff]  ;;  %v6077_v56 = vld [vmem:[#allocation46_spill] sm:$0xff] }
 0x35f   :  { %v1981_v25 = vmul.f32 %v1959_v8, %v5180_v48  ;;  %v1969_v54 = vmul.f32 %v3933_v59, %v1968_v19  ;;  %2261 = vmatpush.bf16.msra.mxu0 %v5929_v23  ;;  %2274 = vmatpush.bf16.msra.mxu1 %v5930_v44  ;;  %v1975_v48 = vand.u32 2147483647, %v5277_v15  ;;  %v6078_v63 = vld [vmem:[#allocation29_spill] sm:$0xff]  ;;  %v6079_v51 = vld [vmem:[#allocation30_spill] sm:$0xff]  ;;  %v6080_v36 = vld [vmem:[#allocation47_spill] sm:$0xff] }
 0x360   :  { %2287 = vmatpush.bf16.msrb.mxu2 %v4355_v34  ;;  %2300 = vmatpush.bf16.msrb.mxu3 %v4340_v17  ;;  %v6081_v6 = vld [vmem:[#allocation48_spill] sm:$0xff]  ;;  %v6082_v19 = vld [vmem:[#allocation31_spill] sm:$0xff] }
 0x361   :  { %v5308_v5 = vadd.f32 %v1982_v53, %v1981_v25  ;;  %v1970_v12 = vadd.f32 %v3933_v59, %v1969_v54  ;;  %vm1976_vm8 = vcmp.eq.f32.partialorder %v1975_v48, 8.507059e+37  ;;  %v6083_v8 = vld [vmem:[#allocation32_spill] sm:$0xff]  ;;  %v6084_v53 = vld [vmem:[#allocation49_spill] sm:$0xff]  ;;  %v6085_v25 = vld [vmem:[#allocation50_spill] sm:$0xff] }
 0x362   :  { %v6086_v54 = vld [vmem:[#allocation33_spill] sm:$0xff]  ;;  %v6089_v48 = vld [vmem:[#allocation52_spill] sm:$0xff] }
 0x363   :  { %3936 = vtanh.f32 %v5308_v5  ;;  %2262 = vmatpush.bf16.msra.mxu0 %v5931_v62  ;;  %2275 = vmatpush.bf16.msra.mxu1 %v5932_v31  ;;  %v1974_v35 = vsel %vm1973_vm7, %v3933_v59, %v1970_v12  ;;  %v6087_v12 = vld [vmem:[#allocation34_spill] sm:$0xff] }
 0x364   :  { %2288 = vmatpush.bf16.msrb.mxu2 %v4389_v2  ;;  %2301 = vmatpush.bf16.msrb.mxu3 %v4347_v29  ;;  %v1979_v15 = vsel %vm1976_vm8, %v1978_v13, %v1974_v35  ;;  %v6090_v35 = vld [vmem:[#allocation35_spill] sm:$0xff]  ;;  %v6091_v13 = vld [vmem:[#allocation36_spill] sm:$0xff] }
 0x367   :  { %2263 = vmatpush.bf16.msra.mxu0 %v4319_v4  ;;  %2276 = vmatpush.bf16.msra.mxu1 %v5933_v16 }
 0x368   :  { %2289 = vmatpush.bf16.msrb.mxu2 %v4405_v27  ;;  %2302 = vmatpush.bf16.msrb.mxu3 %v4385_v60 }
 0x369   :  { %v3937_v26 = vpop.eup %3936 }
 0x36a   :  { %v1985_v46 = vmul.f32 %v3937_v26, %v1979_v15  ;;  %v6092_v26 = vld [vmem:[#allocation53_spill] sm:$0xff]  ;;  %v6093_v15 = vld [vmem:[#allocation54_spill] sm:$0xff] }
 0x36b   :  { %2264 = vmatpush.bf16.msra.mxu0 %v5934_v52  ;;  %2277 = vmatpush.bf16.msra.mxu1 %v5935_v11 }
 0x36c   :  { %v5330_v24 = vsel %vm1998_vm11, %v1985_v46, %v5202_v55  ;;  %v2069_v59 = vpack.c.bf16 %v1985_v46, %v1985_v46  ;;  %2290 = vmatpush.bf16.msrb.mxu2 %v4417_v42  ;;  %2303 = vmatpush.bf16.msrb.mxu3 %v4397_v18  ;;  %v6071_v55 = vld [vmem:[#allocation26_spill] sm:$0xff]  ;;  %v6094_v46 = vld [vmem:[#allocation37_spill] sm:$0xff] }
 0x36e   :  { %2078 = vmatmul.bf16.vlgmr.msrb.gmra.mxu0 %v2069_v59  ;;  %2091 = vmatmul.bf16.vlgmr.msrb.gmra.mxu1 %v2069_v59 }
 0x36f   :  { %2104 = vmatmul.bf16.vlgmr.msra.gmra.mxu2 %v2069_v59  ;;  %2117 = vmatmul.bf16.vlgmr.msra.gmra.mxu3 %v2069_v59  ;;  %v6095_v59 = vld [vmem:[#allocation38_spill] sm:$0xff] }
 0x370   :  { %2265 = vmatpush.bf16.msra.mxu0 %v4342_v21  ;;  %2278 = vmatpush.bf16.msra.mxu1 %v4344_v22 }
 0x371   :  { %2291 = vmatpush.bf16.msrb.mxu2 %v4437_v14  ;;  %2304 = vmatpush.bf16.msrb.mxu3 %v4432_v61 }
 0x374   :  { %2266 = vmatpush.bf16.msra.mxu0 %v4351_v32  ;;  %2279 = vmatpush.bf16.msra.mxu1 %v4353_v33 }
 0x375   :  { %2292 = vmatpush.bf16.msrb.mxu2 %v4449_v38  ;;  %2305 = vmatpush.bf16.msrb.mxu3 %v4445_v28 }
 0x378   :  { %2267 = vmatpush.bf16.msra.mxu0 %v4361_v39  ;;  %2280 = vmatpush.bf16.msra.mxu1 %v4363_v40 }
 0x379   :  { %2293 = vmatpush.bf16.msrb.mxu2 %v4461_v0  ;;  %2306 = vmatpush.bf16.msrb.mxu3 %v4458_v58 }
 0x37c   :  { %2268 = vmatpush.bf16.msra.mxu0 %v4367_v45  ;;  %2281 = vmatpush.bf16.msra.mxu1 %v4373_v49 }
 0x37d   :  { %2294 = vmatpush.bf16.msrb.mxu2 %v4473_v30  ;;  %2307 = vmatpush.bf16.msrb.mxu3 %v4479_v43 }
 0x380   :  { %2324 = vmatpush.bf16.msrb.mxu0 %v5978_v37  ;;  %2337 = vmatpush.bf16.msrb.mxu1 %v6071_v55 }
 0x381   :  { %2350 = vmatpush.bf16.msra.mxu2 %v6072_v20  ;;  %2363 = vmatpush.bf16.msra.mxu3 %v6073_v10 }
 0x384   :  { %2325 = vmatpush.bf16.msrb.mxu0 %v6074_v57  ;;  %2338 = vmatpush.bf16.msrb.mxu1 %v6075_v41 }
 0x385   :  { %2351 = vmatpush.bf16.msra.mxu2 %v6076_v7  ;;  %2364 = vmatpush.bf16.msra.mxu3 %v6077_v56 }
 0x388   :  { %2326 = vmatpush.bf16.msrb.mxu0 %v6078_v63  ;;  %2339 = vmatpush.bf16.msrb.mxu1 %v6079_v51 }
 0x389   :  { %2352 = vmatpush.bf16.msra.mxu2 %v6080_v36  ;;  %2365 = vmatpush.bf16.msra.mxu3 %v6081_v6  ;;  %v6104_v6 = vld [vmem:[#allocation88_spill] sm:$0xff] }
 0x38c   :  { %2327 = vmatpush.bf16.msrb.mxu0 %v6082_v19  ;;  %2340 = vmatpush.bf16.msrb.mxu1 %v6083_v8  ;;  %v6103_v8 = vld [vmem:[#allocation74_spill] sm:$0xff] }
 0x38d   :  { %2353 = vmatpush.bf16.msra.mxu2 %v6084_v53  ;;  %2366 = vmatpush.bf16.msra.mxu3 %v6085_v25  ;;  %v6096_v25 = vld [vmem:[#allocation55_spill] sm:$0xff]  ;;  %v6102_v53 = vld [vmem:[#allocation73_spill] sm:$0xff] }
 0x390   :  { %2328 = vmatpush.bf16.msrb.mxu0 %v6086_v54  ;;  %2341 = vmatpush.bf16.msrb.mxu1 %v6087_v12  ;;  %v6097_v54 = vld [vmem:[#allocation56_spill] sm:$0xff]  ;;  %v6098_v12 = vld [vmem:[#allocation39_spill] sm:$0xff] }
 0x391   :  { %2354 = vmatpush.bf16.msra.mxu2 %v6088_v50  ;;  %2367 = vmatpush.bf16.msra.mxu3 %v6089_v48  ;;  %v6099_v50 = vld [vmem:[#allocation40_spill] sm:$0xff]  ;;  %v6100_v48 = vld [vmem:[#allocation57_spill] sm:$0xff] }
 0x394   :  { %2329 = vmatpush.bf16.msrb.mxu0 %v6090_v35  ;;  %2342 = vmatpush.bf16.msrb.mxu1 %v6091_v13  ;;  %v6101_v35 = vld [vmem:[#allocation58_spill] sm:$0xff] }
 0x395   :  { %2355 = vmatpush.bf16.msra.mxu2 %v6092_v26  ;;  %2368 = vmatpush.bf16.msra.mxu3 %v6093_v15 }
 0x398   :  { %2330 = vmatpush.bf16.msrb.mxu0 %v6094_v46  ;;  %2343 = vmatpush.bf16.msrb.mxu1 %v6095_v59 }
 0x399   :  { %2356 = vmatpush.bf16.msra.mxu2 %v6096_v25  ;;  %2369 = vmatpush.bf16.msra.mxu3 %v6097_v54 }
 0x39c   :  { %2331 = vmatpush.bf16.msrb.mxu0 %v6098_v12  ;;  %2344 = vmatpush.bf16.msrb.mxu1 %v6099_v50 }
 0x39d   :  { %2357 = vmatpush.bf16.msra.mxu2 %v6100_v48  ;;  %2370 = vmatpush.bf16.msra.mxu3 %v6101_v35 }
 0x3da   :  { %v2016_v13 = vpop.f32.mrf.mxu0  ;;  %v2029_v26 = vpop.f32.mrf.mxu1 }
 0x3db   :  { %v2059_v15 = vadd.f32 %v2016_v13, %v6102_v53  ;;  %v2060_v46 = vadd.f32 %v2029_v26, %v6103_v8  ;;  %v6105_v13 = vld [vmem:[#allocation81_spill] sm:$0xff] }
 0x3dc   :  { %v6106_v26 = vld [vmem:[#allocation97_spill] sm:$0xff] }
 0x3dd   :  { %v3602_v19 = vmul.f32 -1.442695, %v2059_v15  ;;  %v3603_v59 = vmul.f32 -1.442695, %v2060_v46  ;;  %v6107_v15 = vld [vmem:[#allocation83_spill] sm:$0xff]  ;;  %v6108_v46 = vld [vmem:[#allocation98_spill] sm:$0xff] }
 0x3df   :  { %3938 = vpow2.f32 %v3602_v19  ;;  %v382_v19 = vadd.f32 %v6106_v26, %v6105_v13  ;;  %v6110_v13 = vld [vmem:[#allocation104_spill] sm:$0xff] }
 0x3e0   :  { %3940 = vpow2.f32 %v3603_v59  ;;  %v411_v59 = vadd.f32 %v6108_v46, %v6107_v15  ;;  %v6111_v46 = vld [vmem:[#allocation116_spill] sm:$0xff] }
 0x3e1   :  { %v2042_v25 = vpop.f32.mrf.mxu2  ;;  %v2055_v54 = vpop.f32.mrf.mxu3  ;;  %v469_v15 = vadd.f32 %v6111_v46, %v6110_v13 }
 0x3e2   :  { %v2062_v12 = vadd.f32 %v2055_v54, %v6104_v6  ;;  %v2018_v36 = vpop.f32.mrf.mxu0  ;;  %v2031_v50 = vpop.f32.mrf.mxu1  ;;  %v6109_v54 = vld [vmem:[#allocation87_spill] sm:$0xff] }
 0x3e4   :  { %v3604_v51 = vmul.f32 -1.442695, %v2062_v12  ;;  %v2061_v12 = vadd.f32 %v2042_v25, %v6109_v54 }
 0x3e5   :  { %v3939_v48 = vpop.eup %3938 }
 0x3e6   :  { %v3941_v63 = vpop.eup %3940  ;;  %v2129_v35 = vadd.f32 1.0, %v3939_v48  ;;  %3942 = vpow2.f32 %v3604_v51 }
 0x3e7   :  { %v2148_v56 = vadd.f32 1.0, %v3941_v63 }
 0x3e8   :  { %3944 = vrcp.f32 %v2129_v35  ;;  %v2139_v20 = vand.u32 2147483647, %v2129_v35  ;;  %vm2135_vm2 = vweird.f32 %v2129_v35 }
 0x3e9   :  { %3946 = vrcp.f32 %v2148_v56  ;;  %v2044_v53 = vpop.f32.mrf.mxu2  ;;  %v2057_v8 = vpop.f32.mrf.mxu3  ;;  %vm2154_vm0 = vweird.f32 %v2148_v56 }
 0x3ea   :  { %vm2140_vm6 = vcmp.eq.f32.partialorder %v2139_v20, 8.507059e+37 }
 0x3eb   :  { %v2079_v7 = vpop.f32.mrf.mxu0  ;;  %v2092_v6 = vpop.f32.mrf.mxu1 }
 0x3ec   :  { %v3943_v36 = vpop.eup %3942  ;;  %v2122_v50 = vadd.f32 %v2079_v7, %v382_v19  ;;  %v2123_v41 = vadd.f32 %v2092_v6, %v411_v59  ;;  %v2160_v7 = vand.u32 2147483648, %v2148_v56  ;;  %v2141_v19 = vand.u32 2147483648, %v2129_v35 }
 0x3ed   :  { %v5390_v48 = vadd.f32 1.0, %v3943_v36 }
 0x3ee   :  { %v3945_v63 = vpop.eup %3944  ;;  %v3605_v51 = vmul.f32 -1.442695, %v2122_v50  ;;  %v3606_v57 = vmul.f32 -1.442695, %v2123_v41  ;;  %v2158_v41 = vand.u32 2147483647, %v2148_v56 }
 0x3ef   :  { %v3947_v53 = vpop.eup %3946  ;;  %v2131_v8 = vmul.f32 %v3945_v63, %v2129_v35  ;;  %3948 = vrcp.f32 %v5390_v48  ;;  %vm2136_vm13 = vweird.f32 %v3945_v63  ;;  %v2161_v43 = vor.u32 1.1754944e-38, %v2160_v7  ;;  %v6112_v7 = vld [vmem:[#allocation103_spill] sm:$0xff] }
 0x3f0   :  { %v2150_v26 = vmul.f32 %v3947_v53, %v2148_v56  ;;  %3950 = vtanh.f32 %v2061_v12  ;;  %vm2155_vm15 = vweird.f32 %v3947_v53  ;;  %vm2137_vm4 = vmor %vm2135_vm2, %vm2136_vm13  ;;  %vm2159_vm8 = vcmp.eq.f32.partialorder %v2158_v41, 8.507059e+37  ;;  %v6113_v41 = vld [vmem:[#allocation115_spill] sm:$0xff] }
 0x3f1   :  { %v2132_v10 = vsub.f32 1.0, %v2131_v8  ;;  %3952 = vpow2.f32 %v3605_v51  ;;  %vm2156_vm7 = vmor %vm2154_vm0, %vm2155_vm15  ;;  %vm2174_vm15 = vweird.f32 %v5390_v48 }
 0x3f2   :  { %v2151_v25 = vsub.f32 1.0, %v2150_v26  ;;  %3954 = vpow2.f32 %v3606_v57  ;;  %v2105_v59 = vpop.f32.mrf.mxu2  ;;  %v2118_v6 = vpop.f32.mrf.mxu3  ;;  %v2142_v26 = vor.u32 1.1754944e-38, %v2141_v19 }
 0x3f3   :  { %v2133_v36 = vmul.f32 %v3945_v63, %v2132_v10  ;;  %v2125_v54 = vadd.f32 %v2118_v6, %v469_v15  ;;  %v2081_v50 = vpop.f32.mrf.mxu0  ;;  %v2094_v55 = vpop.f32.mrf.mxu1 }
 0x3f4   :  { %v2152_v37 = vmul.f32 %v3947_v53, %v2151_v25 }
 0x3f5   :  { %v3949_v12 = vpop.eup %3948  ;;  %v2134_v46 = vadd.f32 %v3945_v63, %v2133_v36  ;;  %v3607_v8 = vmul.f32 -1.442695, %v2125_v54 }
 0x3f6   :  { %v3951_v51 = vpop.eup %3950  ;;  %v2153_v57 = vadd.f32 %v3947_v53, %v2152_v37  ;;  %v2170_v13 = vmul.f32 %v3949_v12, %v5390_v48  ;;  %vm2175_vm13 = vweird.f32 %v3949_v12 }
 0x3f7   :  { %v3953_v10 = vpop.eup %3952  ;;  %v2138_v15 = vsel %vm2137_vm4, %v3945_v63, %v2134_v46  ;;  %3956 = vpow2.f32 %v3607_v8  ;;  %v440_v46 = vadd.f32 %v6113_v41, %v6112_v7  ;;  %vm2176_vm0 = vmor %vm2174_vm15, %vm2175_vm13  ;;  %v6144_v7 = vld [vmem:[#allocation56_spill] sm:$0xff] }
 0x3f8   :  { %v3955_v55 = vpop.eup %3954  ;;  %v2143_v25 = vsel %vm2140_vm6, %v2142_v26, %v2138_v15  ;;  %v2157_v6 = vsel %vm2156_vm7, %v3947_v53, %v2153_v57  ;;  %v2171_v56 = vsub.f32 1.0, %v2170_v13  ;;  %v2192_v36 = vadd.f32 1.0, %v3953_v10 }
 0x3f9   :  { %v2162_v35 = vsel %vm2159_vm8, %v2161_v43, %v2157_v6  ;;  %v2185_v54 = vmul.f32 %v3951_v51, %v2143_v25  ;;  %v2211_v50 = vadd.f32 1.0, %v3955_v55  ;;  %v2180_v43 = vand.u32 2147483648, %v5390_v48 }
 0x3fa   :  { %v2184_v20 = vmul.f32 %v2162_v35, %v5274_v3  ;;  %v2172_v19 = vmul.f32 %v3949_v12, %v2171_v56  ;;  %3958 = vrcp.f32 %v2192_v36  ;;  %v2107_v37 = vpop.f32.mrf.mxu2  ;;  %v2120_v30 = vpop.f32.mrf.mxu3  ;;  %v2178_v3 = vand.u32 2147483647, %v5390_v48 }
 0x3fb   :  { %3960 = vrcp.f32 %v2211_v50  ;;  %v2124_v30 = vadd.f32 %v2105_v59, %v440_v46  ;;  %v2181_v10 = vor.u32 1.1754944e-38, %v2180_v43  ;;  %v2223_v56 = vand.u32 2147483648, %v2211_v50 }
 0x3fc   :  { %v5397_v49 = vadd.f32 %v2185_v54, %v2184_v20  ;;  %v2173_v8 = vadd.f32 %v3949_v12, %v2172_v19  ;;  %vm2179_vm2 = vcmp.eq.f32.partialorder %v2178_v3, 8.507059e+37  ;;  %v2204_v35 = vand.u32 2147483648, %v2192_v36 }
 0x3fd   :  { %v3957_v63 = vpop.eup %3956  ;;  %v2202_v48 = vand.u32 2147483647, %v2192_v36  ;;  %vm2198_vm7 = vweird.f32 %v2192_v36  ;;  %vm2217_vm8 = vweird.f32 %v2211_v50 }
 0x3fe   :  { %3962 = vtanh.f32 %v5397_v49  ;;  %v5403_v13 = vadd.f32 1.0, %v3957_v63  ;;  %v2177_v57 = vsel %vm2176_vm0, %v3949_v12, %v2173_v8  ;;  %v2221_v63 = vand.u32 2147483647, %v2211_v50 }
 0x3ff   :  { %v2182_v54 = vsel %vm2179_vm2, %v2181_v10, %v2177_v57  ;;  %v2205_v8 = vor.u32 1.1754944e-38, %v2204_v35  ;;  %vm2203_vm0 = vcmp.eq.f32.partialorder %v2202_v48, 8.507059e+37 }
 0x400   :  { %v3959_v53 = vpop.eup %3958  ;;  %3964 = vrcp.f32 %v5403_v13  ;;  %vm2222_vm2 = vcmp.eq.f32.partialorder %v2221_v63, 8.507059e+37  ;;  %v6119_v63 = vld [vmem:[#allocation43_spill] sm:$0xff] }
 0x401   :  { %v3961_v51 = vpop.eup %3960  ;;  %v2194_v26 = vmul.f32 %v3959_v53, %v2192_v36  ;;  %3966 = vtanh.f32 %v2124_v30  ;;  %vm2199_vm4 = vweird.f32 %v3959_v53 }
 0x402   :  { %v2213_v15 = vmul.f32 %v3961_v51, %v2211_v50  ;;  %vm2218_vm6 = vweird.f32 %v3961_v51  ;;  %vm2200_vm13 = vmor %vm2198_vm7, %vm2199_vm4  ;;  %vm2237_vm4 = vweird.f32 %v5403_v13 }
 0x403   :  { %v2195_v55 = vsub.f32 1.0, %v2194_v26  ;;  %vm2219_vm15 = vmor %vm2217_vm8, %vm2218_vm6  ;;  %v2224_v26 = vor.u32 1.1754944e-38, %v2223_v56 }
 0x404   :  { %v3963_v25 = vpop.eup %3962  ;;  %v2214_v6 = vsub.f32 1.0, %v2213_v15 }
 0x405   :  { %v2196_v20 = vmul.f32 %v3959_v53, %v2195_v55  ;;  %v2188_v59 = vmul.f32 %v3963_v25, %v2182_v54  ;;  %v2243_v25 = vand.u32 2147483648, %v5403_v13 }
 0x406   :  { %v3965_v19 = vpop.eup %3964  ;;  %v2215_v37 = vmul.f32 %v3961_v51, %v2214_v6 }
 0x407   :  { %v2197_v41 = vadd.f32 %v3959_v53, %v2196_v20  ;;  %v2233_v12 = vmul.f32 %v3965_v19, %v5403_v13  ;;  %v5412_v46 = vsel %vm1998_vm11, %v2188_v59, %v5301_v1  ;;  %v2260_v3 = vpack.c.bf16 %v2188_v59, %v2188_v59  ;;  %v3967_v30 = vpop.eup %3966  ;;  %v6116_v59 = vld [vmem:[#allocation42_spill] sm:$0xff] }
 0x408   :  { %v2216_v43 = vadd.f32 %v3961_v51, %v2215_v37  ;;  %vm2238_vm11 = vweird.f32 %v3965_v19  ;;  %v2244_v56 = vor.u32 1.1754944e-38, %v2243_v25  ;;  %v6118_v37 = vld [vmem:[#allocation26_spill] sm:$0xff]  ;;  %v6136_v25 = vld [vmem:[#allocation52_spill] sm:$0xff] }
 0x409   :  { %v2201_v57 = vsel %vm2200_vm13, %v3959_v53, %v2197_v41  ;;  %v2234_v10 = vsub.f32 1.0, %v2233_v12  ;;  %2269 = vmatmul.bf16.vlgmr.msra.gmra.mxu0 %v2260_v3  ;;  %2282 = vmatmul.bf16.vlgmr.msra.gmra.mxu1 %v2260_v3  ;;  %vm2239_vm6 = vmor %vm2237_vm4, %vm2238_vm11  ;;  %v6120_v41 = vld [vmem:[#allocation44_spill] sm:$0xff]  ;;  %v6121_v12 = vld [vmem:[#allocation27_spill] sm:$0xff] }
 0x40a   :  { %v2206_v15 = vsel %vm2203_vm0, %v2205_v8, %v2201_v57  ;;  %v2220_v36 = vsel %vm2219_vm15, %v3961_v51, %v2216_v43  ;;  %2295 = vmatmul.bf16.vlgmr.msrb.gmra.mxu2 %v2260_v3  ;;  %2308 = vmatmul.bf16.vlgmr.msrb.gmra.mxu3 %v2260_v3  ;;  %v6122_v8 = vld [vmem:[#allocation28_spill] sm:$0xff]  ;;  %v6123_v43 = vld [vmem:[#allocation45_spill] sm:$0xff]  ;;  %v6124_v3 = vld [vmem:[#allocation46_spill] sm:$0xff] }
 0x40b   :  { %v2225_v55 = vsel %vm2222_vm2, %v2224_v26, %v2220_v36  ;;  %v2248_v9 = vmul.f32 %v3967_v30, %v2206_v15  ;;  %v2235_v1 = vmul.f32 %v3965_v19, %v2234_v10  ;;  %2515 = vmatpush.bf16.msra.mxu0 %v5929_v23  ;;  %2528 = vmatpush.bf16.msra.mxu1 %v5930_v44  ;;  %v6125_v30 = vld [vmem:[#allocation29_spill] sm:$0xff]  ;;  %v6126_v26 = vld [vmem:[#allocation30_spill] sm:$0xff]  ;;  %v6127_v57 = vld [vmem:[#allocation47_spill] sm:$0xff] }
 0x40c   :  { %v2247_v50 = vmul.f32 %v2225_v55, %v5308_v5  ;;  %2541 = vmatpush.bf16.msrb.mxu2 %v4355_v34  ;;  %2554 = vmatpush.bf16.msrb.mxu3 %v4340_v17  ;;  %v2241_v5 = vand.u32 2147483647, %v5403_v13  ;;  %v6128_v10 = vld [vmem:[#allocation48_spill] sm:$0xff]  ;;  %v6129_v15 = vld [vmem:[#allocation31_spill] sm:$0xff]  ;;  %v6131_v55 = vld [vmem:[#allocation49_spill] sm:$0xff] }
 0x40d   :  { %v2236_v51 = vadd.f32 %v3965_v19, %v2235_v1  ;;  %v6130_v36 = vld [vmem:[#allocation32_spill] sm:$0xff]  ;;  %v6133_v1 = vld [vmem:[#allocation33_spill] sm:$0xff] }
 0x40e   :  { %v5419_v53 = vadd.f32 %v2248_v9, %v2247_v50  ;;  %vm2242_vm7 = vcmp.eq.f32.partialorder %v2241_v5, 8.507059e+37  ;;  %v6132_v9 = vld [vmem:[#allocation50_spill] sm:$0xff]  ;;  %v6137_v5 = vld [vmem:[#allocation35_spill] sm:$0xff] }
 0x40f   :  { %2516 = vmatpush.bf16.msra.mxu0 %v5931_v62  ;;  %2529 = vmatpush.bf16.msra.mxu1 %v5932_v31  ;;  %v2240_v6 = vsel %vm2239_vm6, %v3965_v19, %v2236_v51  ;;  %v6117_v19 = vld [vmem:[#allocation25_spill] sm:$0xff]  ;;  %v6134_v50 = vld [vmem:[#allocation34_spill] sm:$0xff]  ;;  %v6135_v51 = vld [vmem:[#allocation51_spill] sm:$0xff] }
 0x410   :  { %3968 = vtanh.f32 %v5419_v53  ;;  %2542 = vmatpush.bf16.msrb.mxu2 %v4389_v2  ;;  %2555 = vmatpush.bf16.msrb.mxu3 %v4347_v29  ;;  %v2245_v54 = vsel %vm2242_vm7, %v2244_v56, %v2240_v6  ;;  %v6138_v6 = vld [vmem:[#allocation36_spill] sm:$0xff]  ;;  %v6139_v56 = vld [vmem:[#allocation53_spill] sm:$0xff] }
 0x413   :  { %2517 = vmatpush.bf16.msra.mxu0 %v4319_v4  ;;  %2530 = vmatpush.bf16.msra.mxu1 %v5933_v16 }
 0x414   :  { %2543 = vmatpush.bf16.msrb.mxu2 %v4405_v27  ;;  %2556 = vmatpush.bf16.msrb.mxu3 %v4385_v60 }
 0x416   :  { %v3969_v35 = vpop.eup %3968 }
 0x417   :  { %v2251_v20 = vmul.f32 %v3969_v35, %v2245_v54  ;;  %2518 = vmatpush.bf16.msra.mxu0 %v5934_v52  ;;  %2531 = vmatpush.bf16.msra.mxu1 %v5935_v11  ;;  %v6140_v35 = vld [vmem:[#allocation54_spill] sm:$0xff]  ;;  %v6141_v54 = vld [vmem:[#allocation37_spill] sm:$0xff] }
 0x418   :  { %2544 = vmatpush.bf16.msrb.mxu2 %v4417_v42  ;;  %2557 = vmatpush.bf16.msrb.mxu3 %v4397_v18 }
 0x419   :  { %v5438_v13 = vsel %vm1991_vm3, %v2251_v20, %v5330_v24  ;;  %v2323_v48 = vpack.c.bf16 %v2251_v20, %v2251_v20  ;;  %v6115_v24 = vld [vmem:[#allocation41_spill] sm:$0xff]  ;;  %v6142_v20 = vld [vmem:[#allocation38_spill] sm:$0xff] }
 0x41b   :  { %2332 = vmatmul.bf16.vlgmr.msrb.gmra.mxu0 %v2323_v48  ;;  %2345 = vmatmul.bf16.vlgmr.msrb.gmra.mxu1 %v2323_v48 }
 0x41c   :  { %2358 = vmatmul.bf16.vlgmr.msra.gmra.mxu2 %v2323_v48  ;;  %2371 = vmatmul.bf16.vlgmr.msra.gmra.mxu3 %v2323_v48  ;;  %v6143_v48 = vld [vmem:[#allocation55_spill] sm:$0xff] }
 0x41d   :  { %2519 = vmatpush.bf16.msra.mxu0 %v4342_v21  ;;  %2532 = vmatpush.bf16.msra.mxu1 %v4344_v22 }
 0x41e   :  { %2545 = vmatpush.bf16.msrb.mxu2 %v4437_v14  ;;  %2558 = vmatpush.bf16.msrb.mxu3 %v4432_v61 }
 0x421   :  { %2520 = vmatpush.bf16.msra.mxu0 %v4351_v32  ;;  %2533 = vmatpush.bf16.msra.mxu1 %v4353_v33 }
 0x422   :  { %2546 = vmatpush.bf16.msrb.mxu2 %v4449_v38  ;;  %2559 = vmatpush.bf16.msrb.mxu3 %v4445_v28 }
 0x425   :  { %2521 = vmatpush.bf16.msra.mxu0 %v4361_v39  ;;  %2534 = vmatpush.bf16.msra.mxu1 %v4363_v40 }
 0x426   :  { %2547 = vmatpush.bf16.msrb.mxu2 %v4461_v0  ;;  %2560 = vmatpush.bf16.msrb.mxu3 %v4458_v58 }
 0x429   :  { %2522 = vmatpush.bf16.msra.mxu0 %v4367_v45  ;;  %2535 = vmatpush.bf16.msra.mxu1 %v6114_v47 }
 0x42a   :  { %2548 = vmatpush.bf16.msrb.mxu2 %v6115_v24  ;;  %2561 = vmatpush.bf16.msrb.mxu3 %v6116_v59 }
 0x42d   :  { %2578 = vmatpush.bf16.msrb.mxu0 %v6117_v19  ;;  %2591 = vmatpush.bf16.msrb.mxu1 %v6118_v37 }
 0x42e   :  { %2604 = vmatpush.bf16.msra.mxu2 %v6119_v63  ;;  %2617 = vmatpush.bf16.msra.mxu3 %v6120_v41 }
 0x431   :  { %2579 = vmatpush.bf16.msrb.mxu0 %v6121_v12  ;;  %2592 = vmatpush.bf16.msrb.mxu1 %v6122_v8 }
 0x432   :  { %2605 = vmatpush.bf16.msra.mxu2 %v6123_v43  ;;  %2618 = vmatpush.bf16.msra.mxu3 %v6124_v3 }
 0x435   :  { %2580 = vmatpush.bf16.msrb.mxu0 %v6125_v30  ;;  %2593 = vmatpush.bf16.msrb.mxu1 %v6126_v26 }
 0x436   :  { %2606 = vmatpush.bf16.msra.mxu2 %v6127_v57  ;;  %2619 = vmatpush.bf16.msra.mxu3 %v6128_v10  ;;  %v6154_v10 = vld [vmem:[#allocation92_spill] sm:$0xff] }
 0x439   :  { %2581 = vmatpush.bf16.msrb.mxu0 %v6129_v15  ;;  %2594 = vmatpush.bf16.msrb.mxu1 %v6130_v36 }
 0x43a   :  { %2607 = vmatpush.bf16.msra.mxu2 %v6131_v55  ;;  %2620 = vmatpush.bf16.msra.mxu3 %v6132_v9  ;;  %v6152_v9 = vld [vmem:[#allocation80_spill] sm:$0xff] }
 0x43d   :  { %2582 = vmatpush.bf16.msrb.mxu0 %v6133_v1  ;;  %2595 = vmatpush.bf16.msrb.mxu1 %v6134_v50  ;;  %v6145_v50 = vld [vmem:[#allocation39_spill] sm:$0xff] }
 0x43e   :  { %2608 = vmatpush.bf16.msra.mxu2 %v6135_v51  ;;  %2621 = vmatpush.bf16.msra.mxu3 %v6136_v25  ;;  %v6146_v51 = vld [vmem:[#allocation40_spill] sm:$0xff]  ;;  %v6147_v25 = vld [vmem:[#allocation57_spill] sm:$0xff] }
 0x441   :  { %2583 = vmatpush.bf16.msrb.mxu0 %v6137_v5  ;;  %2596 = vmatpush.bf16.msrb.mxu1 %v6138_v6  ;;  %v6148_v5 = vld [vmem:[#allocation58_spill] sm:$0xff]  ;;  %v6149_v6 = vld [vmem:[#allocation59_spill] sm:$0xff] }
 0x442   :  { %2609 = vmatpush.bf16.msra.mxu2 %v6139_v56  ;;  %2622 = vmatpush.bf16.msra.mxu3 %v6140_v35  ;;  %v6150_v56 = vld [vmem:[#allocation79_spill] sm:$0xff]  ;;  %v6151_v35 = vld [vmem:[#allocation60_spill] sm:$0xff] }
 0x443   :  { %v271_v1 = vadd.f32 %v6150_v56, %v6149_v6 }
 0x445   :  { %2584 = vmatpush.bf16.msrb.mxu0 %v6141_v54  ;;  %2597 = vmatpush.bf16.msrb.mxu1 %v6142_v20  ;;  %v300_v54 = vadd.f32 %v6152_v9, %v6151_v35 }
 0x446   :  { %2610 = vmatpush.bf16.msra.mxu2 %v6143_v48  ;;  %2623 = vmatpush.bf16.msra.mxu3 %v6144_v7 }
 0x449   :  { %2585 = vmatpush.bf16.msrb.mxu0 %v6145_v50  ;;  %2598 = vmatpush.bf16.msrb.mxu1 %v6146_v51  ;;  %v6153_v50 = vld [vmem:[#allocation76_spill] sm:$0xff] }
 0x44a   :  { %2611 = vmatpush.bf16.msra.mxu2 %v6147_v25  ;;  %2624 = vmatpush.bf16.msra.mxu3 %v6148_v5  ;;  %v358_v51 = vadd.f32 %v6154_v10, %v6153_v50 }
 0x486   :  { %v2270_v55 = vpop.f32.mrf.mxu0  ;;  %v2283_v20 = vpop.f32.mrf.mxu1 }
 0x487   :  { %v2313_v36 = vadd.f32 %v2270_v55, %v271_v1  ;;  %v2314_v48 = vadd.f32 %v2283_v20, %v300_v54  ;;  %v6156_v1 = vld [vmem:[#allocation91_spill] sm:$0xff] }
 0x489   :  { %v3608_v15 = vmul.f32 -1.442695, %v2313_v36  ;;  %v3609_v7 = vmul.f32 -1.442695, %v2314_v48 }
 0x48b   :  { %3970 = vpow2.f32 %v3608_v15  ;;  %v6155_v15 = vld [vmem:[#allocation75_spill] sm:$0xff] }
 0x48c   :  { %3972 = vpow2.f32 %v3609_v7  ;;  %v329_v54 = vadd.f32 %v6156_v1, %v6155_v15 }
 0x48d   :  { %v2296_v25 = vpop.f32.mrf.mxu2  ;;  %v2309_v57 = vpop.f32.mrf.mxu3 }
 0x48e   :  { %v2316_v5 = vadd.f32 %v2309_v57, %v358_v51  ;;  %v2272_v26 = vpop.f32.mrf.mxu0  ;;  %v2285_v30 = vpop.f32.mrf.mxu1  ;;  %v2315_v48 = vadd.f32 %v2296_v25, %v329_v54  ;;  %v6157_v57 = vld [vmem:[#allocation93_spill] sm:$0xff] }
 0x48f   :  { %v6158_v30 = vld [vmem:[#allocation94_spill] sm:$0xff] }
 0x490   :  { %v3610_v56 = vmul.f32 -1.442695, %v2316_v5 }
 0x491   :  { %v3971_v6 = vpop.eup %3970 }
 0x492   :  { %v3973_v3 = vpop.eup %3972  ;;  %v2383_v9 = vadd.f32 1.0, %v3971_v6  ;;  %3974 = vpow2.f32 %v3610_v56 }
 0x493   :  { %v2402_v35 = vadd.f32 1.0, %v3973_v3 }
 0x494   :  { %3976 = vrcp.f32 %v2383_v9  ;;  %v2393_v1 = vand.u32 2147483647, %v2383_v9  ;;  %v2395_v54 = vand.u32 2147483648, %v2383_v9  ;;  %vm2389_vm15 = vweird.f32 %v2383_v9 }
 0x495   :  { %3978 = vrcp.f32 %v2402_v35  ;;  %v2298_v36 = vpop.f32.mrf.mxu2  ;;  %v2311_v55 = vpop.f32.mrf.mxu3  ;;  %v2414_v25 = vand.u32 2147483648, %v2402_v35  ;;  %vm2408_vm13 = vweird.f32 %v2402_v35 }
 0x496   :  { %vm2394_vm2 = vcmp.eq.f32.partialorder %v2393_v1, 8.507059e+37 }
 0x497   :  { %v2415_v37 = vor.u32 1.1754944e-38, %v2414_v25 }
 0x498   :  { %v2333_v10 = vpop.f32.mrf.mxu0  ;;  %v2346_v7 = vpop.f32.mrf.mxu1 }
 0x499   :  { %v3975_v20 = vpop.eup %3974  ;;  %v2376_v26 = vadd.f32 %v2333_v10, %v6157_v57  ;;  %v2377_v51 = vadd.f32 %v2346_v7, %v6158_v30  ;;  %v2412_v57 = vand.u32 2147483647, %v2402_v35 }
 0x49a   :  { %v5500_v5 = vadd.f32 1.0, %v3975_v20  ;;  %v3977_v6 = vpop.eup %3976 }
 0x49b   :  { %v3611_v56 = vmul.f32 -1.442695, %v2376_v26  ;;  %v3612_v3 = vmul.f32 -1.442695, %v2377_v51  ;;  %v3979_v50 = vpop.eup %3978  ;;  %v2385_v43 = vmul.f32 %v3977_v6, %v2383_v9  ;;  %vm2390_vm3 = vweird.f32 %v3977_v6  ;;  %v6159_v26 = vld [vmem:[#allocation114_spill] sm:$0xff] }
 0x49c   :  { %3980 = vrcp.f32 %v5500_v5  ;;  %v2404_v36 = vmul.f32 %v3979_v50, %v2402_v35  ;;  %vm2409_vm8 = vweird.f32 %v3979_v50  ;;  %vm2391_vm0 = vmor %vm2389_vm15, %vm2390_vm3  ;;  %vm2413_vm4 = vcmp.eq.f32.partialorder %v2412_v57, 8.507059e+37 }
 0x49d   :  { %3982 = vtanh.f32 %v2315_v48  ;;  %v2386_v55 = vsub.f32 1.0, %v2385_v43  ;;  %vm2410_vm11 = vmor %vm2408_vm13, %vm2409_vm8  ;;  %vm2428_vm7 = vweird.f32 %v5500_v5 }
 0x49e   :  { %3984 = vpow2.f32 %v3611_v56  ;;  %v2405_v15 = vsub.f32 1.0, %v2404_v36 }
 0x49f   :  { %3986 = vpow2.f32 %v3612_v3  ;;  %v2359_v10 = vpop.f32.mrf.mxu2  ;;  %v2372_v7 = vpop.f32.mrf.mxu3  ;;  %v2387_v20 = vmul.f32 %v3977_v6, %v2386_v55  ;;  %v2396_v3 = vor.u32 1.1754944e-38, %v2395_v54 }
 0x4a0   :  { %v2379_v30 = vadd.f32 %v2372_v7, %v6159_v26  ;;  %v2335_v51 = vpop.f32.mrf.mxu0  ;;  %v2348_v8 = vpop.f32.mrf.mxu1  ;;  %v2406_v12 = vmul.f32 %v3979_v50, %v2405_v15 }
 0x4a1   :  { %v2388_v43 = vadd.f32 %v3977_v6, %v2387_v20 }
 0x4a2   :  { %v3981_v41 = vpop.eup %3980  ;;  %v3613_v48 = vmul.f32 -1.442695, %v2379_v30  ;;  %v2407_v36 = vadd.f32 %v3979_v50, %v2406_v12 }
 0x4a3   :  { %v3983_v56 = vpop.eup %3982  ;;  %v2424_v55 = vmul.f32 %v3981_v41, %v5500_v5  ;;  %v2392_v7 = vsel %vm2391_vm0, %v3977_v6, %v2388_v43  ;;  %vm2429_vm6 = vweird.f32 %v3981_v41 }
 0x4a4   :  { %v3985_v63 = vpop.eup %3984  ;;  %3988 = vpow2.f32 %v3613_v48  ;;  %v2397_v15 = vsel %vm2394_vm2, %v2396_v3, %v2392_v7  ;;  %v2411_v26 = vsel %vm2410_vm11, %v3979_v50, %v2407_v36  ;;  %v2434_v50 = vand.u32 2147483648, %v5500_v5  ;;  %vm2430_vm3 = vmor %vm2428_vm7, %vm2429_vm6 }
 0x4a5   :  { %v3987_v8 = vpop.eup %3986  ;;  %v2425_v35 = vsub.f32 1.0, %v2424_v55  ;;  %v2446_v20 = vadd.f32 1.0, %v3985_v63  ;;  %v2416_v9 = vsel %vm2413_vm4, %v2415_v37, %v2411_v26  ;;  %v2439_v30 = vmul.f32 %v3983_v56, %v2397_v15  ;;  %v6160_v37 = vld [vmem:[#allocation113_spill] sm:$0xff] }
 0x4a6   :  { %v2465_v51 = vadd.f32 1.0, %v3987_v8  ;;  %v2438_v1 = vmul.f32 %v2416_v9, %v5397_v49  ;;  %v2432_v49 = vand.u32 2147483647, %v5500_v5  ;;  %v2378_v57 = vadd.f32 %v2359_v10, %v6160_v37 }
 0x4a7   :  { %v2426_v54 = vmul.f32 %v3981_v41, %v2425_v35  ;;  %3990 = vrcp.f32 %v2446_v20  ;;  %v2361_v12 = vpop.f32.mrf.mxu2  ;;  %v2374_v19 = vpop.f32.mrf.mxu3  ;;  %v2435_v3 = vor.u32 1.1754944e-38, %v2434_v50  ;;  %v2458_v26 = vand.u32 2147483648, %v2446_v20 }
 0x4a8   :  { %3992 = vrcp.f32 %v2465_v51  ;;  %v5506_v59 = vadd.f32 %v2439_v30, %v2438_v1  ;;  %vm2433_vm8 = vcmp.eq.f32.partialorder %v2432_v49, 8.507059e+37  ;;  %v2477_v15 = vand.u32 2147483648, %v2465_v51 }
 0x4a9   :  { %v2427_v25 = vadd.f32 %v3981_v41, %v2426_v54  ;;  %v2456_v10 = vand.u32 2147483647, %v2446_v20  ;;  %v2475_v54 = vand.u32 2147483647, %v2465_v51  ;;  %vm2452_vm0 = vweird.f32 %v2446_v20 }
 0x4aa   :  { %v3989_v6 = vpop.eup %3988  ;;  %3994 = vtanh.f32 %v5506_v59  ;;  %vm2471_vm2 = vweird.f32 %v2465_v51 }
 0x4ab   :  { %v5510_v63 = vadd.f32 1.0, %v3989_v6  ;;  %v2431_v56 = vsel %vm2430_vm3, %v3981_v41, %v2427_v25  ;;  %v2459_v25 = vor.u32 1.1754944e-38, %v2458_v26  ;;  %vm2457_vm6 = vcmp.eq.f32.partialorder %v2456_v10, 8.507059e+37  ;;  %v6189_v26 = vld [vmem:[#allocation38_spill] sm:$0xff]  ;;  %v6192_v10 = vld [vmem:[#allocation39_spill] sm:$0xff] }
 0x4ac   :  { %v2436_v35 = vsel %vm2433_vm8, %v2435_v3, %v2431_v56  ;;  %vm2476_vm7 = vcmp.eq.f32.partialorder %v2475_v54, 8.507059e+37 }
 0x4ad   :  { %v3991_v43 = vpop.eup %3990  ;;  %3996 = vrcp.f32 %v5510_v63  ;;  %vm2491_vm3 = vweird.f32 %v5510_v63 }
 0x4ae   :  { %v3993_v19 = vpop.eup %3992  ;;  %v2448_v48 = vmul.f32 %v3991_v43, %v2446_v20  ;;  %3998 = vtanh.f32 %v2378_v57  ;;  %vm2453_vm13 = vweird.f32 %v3991_v43 }
 0x4af   :  { %v2467_v36 = vmul.f32 %v3993_v19, %v2465_v51  ;;  %vm2472_vm15 = vweird.f32 %v3993_v19  ;;  %vm2454_vm11 = vmor %vm2452_vm0, %vm2453_vm13 }
 0x4b0   :  { %v2449_v55 = vsub.f32 1.0, %v2448_v48  ;;  %v3995_v7 = vpop.eup %3994  ;;  %vm2473_vm4 = vmor %vm2471_vm2, %vm2472_vm15  ;;  %v2478_v48 = vor.u32 1.1754944e-38, %v2477_v15  ;;  %v6188_v15 = vld [vmem:[#allocation37_spill] sm:$0xff] }
 0x4b1   :  { %v2468_v8 = vsub.f32 1.0, %v2467_v36  ;;  %v2442_v9 = vmul.f32 %v3995_v7, %v2436_v35  ;;  %v6190_v35 = vld [vmem:[#allocation55_spill] sm:$0xff] }
 0x4b2   :  { %v2450_v5 = vmul.f32 %v3991_v43, %v2449_v55 }
 0x4b3   :  { %v3997_v30 = vpop.eup %3996  ;;  %v2469_v1 = vmul.f32 %v3993_v19, %v2468_v8  ;;  %v2514_v6 = vpack.c.bf16 %v2442_v9, %v2442_v9  ;;  %v5520_v37 = vsel %vm1730_vm1, %v2442_v9, %v5412_v46  ;;  %v6193_v9 = vld [vmem:[#allocation40_spill] sm:$0xff] }
 0x4b4   :  { %v2451_v12 = vadd.f32 %v3991_v43, %v2450_v5  ;;  %v2487_v41 = vmul.f32 %v3997_v30, %v5510_v63  ;;  %v3999_v57 = vpop.eup %3998  ;;  %vm2492_vm1 = vweird.f32 %v3997_v30  ;;  %v6191_v5 = vld [vmem:[#allocation56_spill] sm:$0xff] }
 0x4b5   :  { %v2470_v50 = vadd.f32 %v3993_v19, %v2469_v1  ;;  %2523 = vmatmul.bf16.vlgmr.msra.gmra.mxu0 %v2514_v6  ;;  %2536 = vmatmul.bf16.vlgmr.msra.gmra.mxu1 %v2514_v6  ;;  %vm2493_vm8 = vmor %vm2491_vm3, %vm2492_vm1  ;;  %v6195_v1 = vld [vmem:[#allocation58_spill] sm:$0xff] }
 0x4b6   :  { %v2455_v56 = vsel %vm2454_vm11, %v3991_v43, %v2451_v12  ;;  %v2488_v3 = vsub.f32 1.0, %v2487_v41  ;;  %2549 = vmatmul.bf16.vlgmr.msrb.gmra.mxu2 %v2514_v6  ;;  %2562 = vmatmul.bf16.vlgmr.msrb.gmra.mxu3 %v2514_v6  ;;  %v6196_v41 = vld [vmem:[#allocation61_spill] sm:$0xff] }
 0x4b7   :  { %v2460_v20 = vsel %vm2457_vm6, %v2459_v25, %v2455_v56  ;;  %v2474_v36 = vsel %vm2473_vm4, %v3993_v19, %v2470_v50  ;;  %2769 = vmatpush.bf16.msra.mxu0 %v5929_v23  ;;  %2782 = vmatpush.bf16.msra.mxu1 %v5930_v44  ;;  %v2497_v23 = vand.u32 2147483648, %v5510_v63  ;;  %v6187_v19 = vld [vmem:[#allocation54_spill] sm:$0xff] }
 0x4b8   :  { %v2479_v51 = vsel %vm2476_vm7, %v2478_v48, %v2474_v36  ;;  %v2502_v55 = vmul.f32 %v3999_v57, %v2460_v20  ;;  %v2489_v7 = vmul.f32 %v3997_v30, %v2488_v3  ;;  %2795 = vmatpush.bf16.msrb.mxu2 %v4355_v34  ;;  %2808 = vmatpush.bf16.msrb.mxu3 %v4340_v17  ;;  %v2495_v17 = vand.u32 2147483647, %v5510_v63  ;;  %v6186_v63 = vld [vmem:[#allocation53_spill] sm:$0xff]  ;;  %v6197_v25 = vld [vmem:[#allocation62_spill] sm:$0xff]  ;;  %v6198_v3 = vld [vmem:[#allocation96_spill] sm:$0xff] }
 0x4b9   :  { %v2501_v46 = vmul.f32 %v2479_v51, %v5419_v53  ;;  %v2498_v44 = vor.u32 1.1754944e-38, %v2497_v23  ;;  %v6182_v53 = vld [vmem:[#allocation51_spill] sm:$0xff] }
 0x4ba   :  { %v2490_v8 = vadd.f32 %v3997_v30, %v2489_v7  ;;  %vm2496_vm13 = vcmp.eq.f32.partialorder %v2495_v17, 8.507059e+37 }
 0x4bb   :  { %v5527_v43 = vadd.f32 %v2502_v55, %v2501_v46  ;;  %2770 = vmatpush.bf16.msra.mxu0 %v5931_v62  ;;  %2783 = vmatpush.bf16.msra.mxu1 %v5932_v31 }
 0x4bc   :  { %2796 = vmatpush.bf16.msrb.mxu2 %v4389_v2  ;;  %2809 = vmatpush.bf16.msrb.mxu3 %v4347_v29  ;;  %v2494_v34 = vsel %vm2493_vm8, %v3997_v30, %v2490_v8  ;;  %v6194_v30 = vld [vmem:[#allocation57_spill] sm:$0xff] }
 0x4bd   :  { %4000 = vtanh.f32 %v5527_v43  ;;  %v2499_v2 = vsel %vm2496_vm13, %v2498_v44, %v2494_v34  ;;  %v6199_v44 = vld [vmem:[#allocation81_spill] sm:$0xff] }
 0x4bf   :  { %2771 = vmatpush.bf16.msra.mxu0 %v4319_v4  ;;  %2784 = vmatpush.bf16.msra.mxu1 %v5933_v16 }
 0x4c0   :  { %2797 = vmatpush.bf16.msrb.mxu2 %v4405_v27  ;;  %2810 = vmatpush.bf16.msrb.mxu3 %v4385_v60  ;;  %v6169_v60 = vld [vmem:[#allocation28_spill] sm:$0xff]  ;;  %v6172_v27 = vld [vmem:[#allocation29_spill] sm:$0xff] }
 0x4c3   :  { %v4001_v62 = vpop.eup %4000  ;;  %2772 = vmatpush.bf16.msra.mxu0 %v5934_v52  ;;  %2785 = vmatpush.bf16.msra.mxu1 %v5935_v11  ;;  %v6180_v52 = vld [vmem:[#allocation33_spill] sm:$0xff]  ;;  %v6181_v11 = vld [vmem:[#allocation34_spill] sm:$0xff] }
 0x4c4   :  { %v2505_v31 = vmul.f32 %v4001_v62, %v2499_v2  ;;  %2798 = vmatpush.bf16.msrb.mxu2 %v4417_v42  ;;  %2811 = vmatpush.bf16.msrb.mxu3 %v4397_v18  ;;  %v6170_v18 = vld [vmem:[#allocation45_spill] sm:$0xff]  ;;  %v6173_v42 = vld [vmem:[#allocation30_spill] sm:$0xff] }
 0x4c5   :  { %v6200_v62 = vld [vmem:[#allocation89_spill] sm:$0xff] }
 0x4c6   :  { %v2577_v4 = vpack.c.bf16 %v2505_v31, %v2505_v31  ;;  %v5548_v16 = vsel %vm1723_vm14, %v2505_v31, %v5438_v13  ;;  %v6183_v13 = vld [vmem:[#allocation52_spill] sm:$0xff]  ;;  %v377_v2 = vadd.f32 %v6200_v62, %v6199_v44  ;;  %v6201_v31 = vld [vmem:[#allocation83_spill] sm:$0xff] }
 0x4c7   :  { %2773 = vmatpush.bf16.msra.mxu0 %v4342_v21  ;;  %2786 = vmatpush.bf16.msra.mxu1 %v4344_v22  ;;  %v6163_v21 = vld [vmem:[#allocation42_spill] sm:$0xff]  ;;  %v6164_v22 = vld [vmem:[#allocation25_spill] sm:$0xff] }
 0x4c8   :  { %2586 = vmatmul.bf16.vlgmr.msrb.gmra.mxu0 %v2577_v4  ;;  %2599 = vmatmul.bf16.vlgmr.msrb.gmra.mxu1 %v2577_v4 }
 0x4c9   :  { %2612 = vmatmul.bf16.vlgmr.msra.gmra.mxu2 %v2577_v4  ;;  %2625 = vmatmul.bf16.vlgmr.msra.gmra.mxu3 %v2577_v4  ;;  %v6202_v4 = vld [vmem:[#allocation90_spill] sm:$0xff] }
 0x4ca   :  { %2799 = vmatpush.bf16.msrb.mxu2 %v4437_v14  ;;  %2812 = vmatpush.bf16.msrb.mxu3 %v4432_v61  ;;  %v6174_v61 = vld [vmem:[#allocation47_spill] sm:$0xff]  ;;  %v6175_v14 = vld [vmem:[#allocation48_spill] sm:$0xff]  ;;  %v406_v29 = vadd.f32 %v6202_v4, %v6201_v31  ;;  %v6207_v31 = vld [vmem:[#allocation109_spill] sm:$0xff] }
 0x4cb   :  { %2774 = vmatpush.bf16.msra.mxu0 %v4351_v32  ;;  %2787 = vmatpush.bf16.msra.mxu1 %v4353_v33  ;;  %v6165_v32 = vld [vmem:[#allocation26_spill] sm:$0xff]  ;;  %v6166_v33 = vld [vmem:[#allocation43_spill] sm:$0xff] }
 0x4ce   :  { %2800 = vmatpush.bf16.msrb.mxu2 %v4449_v38  ;;  %2813 = vmatpush.bf16.msrb.mxu3 %v4445_v28  ;;  %v6176_v28 = vld [vmem:[#allocation31_spill] sm:$0xff]  ;;  %v6177_v38 = vld [vmem:[#allocation32_spill] sm:$0xff] }
 0x4cf   :  { %2775 = vmatpush.bf16.msra.mxu0 %v4361_v39  ;;  %2788 = vmatpush.bf16.msra.mxu1 %v4363_v40  ;;  %v6167_v39 = vld [vmem:[#allocation44_spill] sm:$0xff]  ;;  %v6168_v40 = vld [vmem:[#allocation27_spill] sm:$0xff] }
 0x4d2   :  { %2801 = vmatpush.bf16.msrb.mxu2 %v4461_v0  ;;  %2814 = vmatpush.bf16.msrb.mxu3 %v4458_v58  ;;  %v6178_v58 = vld [vmem:[#allocation49_spill] sm:$0xff]  ;;  %v6179_v0 = vld [vmem:[#allocation50_spill] sm:$0xff] }
 0x4d3   :  { %2776 = vmatpush.bf16.msra.mxu0 %v4367_v45  ;;  %2789 = vmatpush.bf16.msra.mxu1 %v6114_v47  ;;  %v6171_v45 = vld [vmem:[#allocation46_spill] sm:$0xff]  ;;  %v6184_v47 = vld [vmem:[#allocation35_spill] sm:$0xff] }
 0x4d6   :  { %2802 = vmatpush.bf16.msrb.mxu2 %v6115_v24  ;;  %2815 = vmatpush.bf16.msrb.mxu3 %v6163_v21  ;;  %v6185_v24 = vld [vmem:[#allocation36_spill] sm:$0xff] }
 0x4d7   :  { %2832 = vmatpush.bf16.msrb.mxu0 %v6164_v22  ;;  %2845 = vmatpush.bf16.msrb.mxu1 %v6165_v32 }
 0x4da   :  { %2858 = vmatpush.bf16.msra.mxu2 %v6166_v33  ;;  %2871 = vmatpush.bf16.msra.mxu3 %v6167_v39  ;;  %v6203_v33 = vld [vmem:[#allocation95_spill] sm:$0xff] }
 0x4db   :  { %2833 = vmatpush.bf16.msrb.mxu0 %v6168_v40  ;;  %2846 = vmatpush.bf16.msrb.mxu1 %v6169_v60 }
 0x4de   :  { %2859 = vmatpush.bf16.msra.mxu2 %v6170_v18  ;;  %2872 = vmatpush.bf16.msra.mxu3 %v6171_v45 }
 0x4df   :  { %2834 = vmatpush.bf16.msrb.mxu0 %v6172_v27  ;;  %2847 = vmatpush.bf16.msrb.mxu1 %v6173_v42 }
 0x4e2   :  { %2860 = vmatpush.bf16.msra.mxu2 %v6174_v61  ;;  %2873 = vmatpush.bf16.msra.mxu3 %v6175_v14  ;;  %v6204_v61 = vld [vmem:[#allocation104_spill] sm:$0xff]  ;;  %v6205_v14 = vld [vmem:[#allocation110_spill] sm:$0xff] }
 0x4e3   :  { %2835 = vmatpush.bf16.msrb.mxu0 %v6176_v28  ;;  %2848 = vmatpush.bf16.msrb.mxu1 %v6177_v38  ;;  %v464_v28 = vadd.f32 %v6205_v14, %v6204_v61 }
 0x4e6   :  { %2861 = vmatpush.bf16.msra.mxu2 %v6178_v58  ;;  %2874 = vmatpush.bf16.msra.mxu3 %v6179_v0 }
 0x4e7   :  { %2836 = vmatpush.bf16.msrb.mxu0 %v6180_v52  ;;  %2849 = vmatpush.bf16.msrb.mxu1 %v6181_v11 }
 0x4ea   :  { %2862 = vmatpush.bf16.msra.mxu2 %v6182_v53  ;;  %2875 = vmatpush.bf16.msra.mxu3 %v6183_v13 }
 0x4eb   :  { %2837 = vmatpush.bf16.msrb.mxu0 %v6184_v47  ;;  %2850 = vmatpush.bf16.msrb.mxu1 %v6185_v24 }
 0x4ee   :  { %2863 = vmatpush.bf16.msra.mxu2 %v6186_v63  ;;  %2876 = vmatpush.bf16.msra.mxu3 %v6187_v19 }
 0x4ef   :  { %2838 = vmatpush.bf16.msrb.mxu0 %v6188_v15  ;;  %2851 = vmatpush.bf16.msrb.mxu1 %v6189_v26 }
 0x4f2   :  { %2864 = vmatpush.bf16.msra.mxu2 %v6190_v35  ;;  %2877 = vmatpush.bf16.msra.mxu3 %v6191_v5 }
 0x4f3   :  { %2839 = vmatpush.bf16.msrb.mxu0 %v6192_v10  ;;  %2852 = vmatpush.bf16.msrb.mxu1 %v6193_v9 }
 0x4f6   :  { %2865 = vmatpush.bf16.msra.mxu2 %v6194_v30  ;;  %2878 = vmatpush.bf16.msra.mxu3 %v6195_v1 }
 0x532   :  { %v2524_v54 = vpop.f32.mrf.mxu0  ;;  %v2537_v12 = vpop.f32.mrf.mxu1 }
 0x533   :  { %v2567_v6 = vadd.f32 %v2524_v54, %v6196_v41  ;;  %v2568_v50 = vadd.f32 %v2537_v12, %v6197_v25 }
 0x535   :  { %v3614_v49 = vmul.f32 -1.442695, %v2567_v6  ;;  %v3615_v57 = vmul.f32 -1.442695, %v2568_v50 }
 0x537   :  { %4002 = vpow2.f32 %v3614_v49 }
 0x538   :  { %4004 = vpow2.f32 %v3615_v57 }
 0x539   :  { %v2550_v48 = vpop.f32.mrf.mxu2  ;;  %v2563_v56 = vpop.f32.mrf.mxu3 }
 0x53a   :  { %v2570_v20 = vadd.f32 %v2563_v56, %v6198_v3  ;;  %v2526_v36 = vpop.f32.mrf.mxu0  ;;  %v2539_v51 = vpop.f32.mrf.mxu1  ;;  %v2569_v39 = vadd.f32 %v2550_v48, %v6203_v33 }
 0x53c   :  { %v3616_v55 = vmul.f32 -1.442695, %v2570_v20 }
 0x53d   :  { %v4003_v7 = vpop.eup %4002 }
 0x53e   :  { %v4005_v46 = vpop.eup %4004  ;;  %v2637_v8 = vadd.f32 1.0, %v4003_v7  ;;  %4006 = vpow2.f32 %v3616_v55 }
 0x53f   :  { %v2656_v23 = vadd.f32 1.0, %v4005_v46 }
 0x540   :  { %4008 = vrcp.f32 %v2637_v8  ;;  %v2647_v13 = vand.u32 2147483647, %v2637_v8  ;;  %v2649_v47 = vand.u32 2147483648, %v2637_v8  ;;  %vm2643_vm0 = vweird.f32 %v2637_v8 }
 0x541   :  { %4010 = vrcp.f32 %v2656_v23  ;;  %v2552_v17 = vpop.f32.mrf.mxu2  ;;  %v2565_v34 = vpop.f32.mrf.mxu3  ;;  %v2668_v53 = vand.u32 2147483648, %v2656_v23  ;;  %v2666_v63 = vand.u32 2147483647, %v2656_v23  ;;  %vm2662_vm2 = vweird.f32 %v2656_v23 }
 0x542   :  { %v2650_v1 = vor.u32 1.1754944e-38, %v2649_v47  ;;  %vm2648_vm6 = vcmp.eq.f32.partialorder %v2647_v13, 8.507059e+37 }
 0x543   :  { %v2669_v6 = vor.u32 1.1754944e-38, %v2668_v53  ;;  %vm2667_vm7 = vcmp.eq.f32.partialorder %v2666_v63, 8.507059e+37 }
 0x544   :  { %v4007_v21 = vpop.eup %4006 }
 0x545   :  { %v2587_v22 = vpop.f32.mrf.mxu0  ;;  %v2600_v32 = vpop.f32.mrf.mxu1  ;;  %v5606_v40 = vadd.f32 1.0, %v4007_v21 }
 0x546   :  { %v2630_v60 = vadd.f32 %v2587_v22, %v377_v2  ;;  %v2631_v18 = vadd.f32 %v2600_v32, %v406_v29  ;;  %v4009_v45 = vpop.eup %4008  ;;  %v6206_v2 = vld [vmem:[#allocation103_spill] sm:$0xff] }
 0x547   :  { %v4011_v27 = vpop.eup %4010  ;;  %v2639_v42 = vmul.f32 %v4009_v45, %v2637_v8  ;;  %4012 = vrcp.f32 %v5606_v40  ;;  %vm2644_vm14 = vweird.f32 %v4009_v45  ;;  %v2688_v44 = vand.u32 2147483648, %v5606_v40 }
 0x548   :  { %v2658_v38 = vmul.f32 %v4011_v27, %v2656_v23  ;;  %4014 = vtanh.f32 %v2569_v39  ;;  %v3617_v0 = vmul.f32 -1.442695, %v2630_v60  ;;  %v3618_v52 = vmul.f32 -1.442695, %v2631_v18  ;;  %vm2645_vm11 = vmor %vm2643_vm0, %vm2644_vm14 }
 0x549   :  { %v2640_v58 = vsub.f32 1.0, %v2639_v42  ;;  %vm2663_vm15 = vweird.f32 %v4011_v27  ;;  %v435_v4 = vadd.f32 %v6207_v31, %v6206_v2  ;;  %vm2682_vm3 = vweird.f32 %v5606_v40 }
 0x54a   :  { %v2659_v11 = vsub.f32 1.0, %v2658_v38  ;;  %4016 = vpow2.f32 %v3617_v0  ;;  %vm2664_vm4 = vmor %vm2662_vm2, %vm2663_vm15  ;;  %v2689_v33 = vor.u32 1.1754944e-38, %v2688_v44  ;;  %v6213_v44 = vld [vmem:[#allocation66_spill] sm:$0xff] }
 0x54b   :  { %v2641_v24 = vmul.f32 %v4009_v45, %v2640_v58  ;;  %4018 = vpow2.f32 %v3618_v52 }
 0x54c   :  { %v2613_v19 = vpop.f32.mrf.mxu2  ;;  %v2626_v15 = vpop.f32.mrf.mxu3  ;;  %v2660_v26 = vmul.f32 %v4011_v27, %v2659_v11 }
 0x54d   :  { %v2633_v35 = vadd.f32 %v2626_v15, %v464_v28  ;;  %v2589_v5 = vpop.f32.mrf.mxu0  ;;  %v2602_v10 = vpop.f32.mrf.mxu1  ;;  %v2642_v30 = vadd.f32 %v4009_v45, %v2641_v24  ;;  %v2632_v21 = vadd.f32 %v2613_v19, %v435_v4 }
 0x54e   :  { %v4013_v9 = vpop.eup %4012  ;;  %v2661_v54 = vadd.f32 %v4011_v27, %v2660_v26 }
 0x54f   :  { %v2678_v12 = vmul.f32 %v4013_v9, %v5606_v40  ;;  %v4015_v41 = vpop.eup %4014  ;;  %v2646_v25 = vsel %vm2645_vm11, %v4009_v45, %v2642_v30  ;;  %v3619_v50 = vmul.f32 -1.442695, %v2633_v35  ;;  %vm2683_vm1 = vweird.f32 %v4013_v9 }
 0x550   :  { %v2651_v49 = vsel %vm2648_vm6, %v2650_v1, %v2646_v25  ;;  %v2665_v57 = vsel %vm2664_vm4, %v4011_v27, %v2661_v54  ;;  %v4017_v56 = vpop.eup %4016  ;;  %vm2684_vm8 = vmor %vm2682_vm3, %vm2683_vm1 }
 0x551   :  { %v2679_v48 = vsub.f32 1.0, %v2678_v12  ;;  %v2670_v3 = vsel %vm2667_vm7, %v2669_v6, %v2665_v57  ;;  %v2693_v20 = vmul.f32 %v4015_v41, %v2651_v49  ;;  %4020 = vpow2.f32 %v3619_v50  ;;  %v4019_v36 = vpop.eup %4018 }
 0x552   :  { %v2692_v51 = vmul.f32 %v2670_v3, %v5506_v59  ;;  %v2700_v7 = vadd.f32 1.0, %v4017_v56  ;;  %v2719_v46 = vadd.f32 1.0, %v4019_v36  ;;  %v2686_v59 = vand.u32 2147483647, %v5606_v40 }
 0x553   :  { %v2680_v55 = vmul.f32 %v4013_v9, %v2679_v48 }
 0x554   :  { %v2615_v8 = vpop.f32.mrf.mxu2  ;;  %v2628_v23 = vpop.f32.mrf.mxu3  ;;  %v5614_v17 = vadd.f32 %v2693_v20, %v2692_v51  ;;  %4022 = vrcp.f32 %v2700_v7  ;;  %vm2687_vm13 = vcmp.eq.f32.partialorder %v2686_v59, 8.507059e+37  ;;  %v2731_v28 = vand.u32 2147483648, %v2719_v46  ;;  %v3781_v51 = vld [vmem:[#allocation10 + $0x38] sm:$0xff]  ;;  %v3778_v59 = vld [vmem:[#allocation10 + $0x20] sm:$0xff] }
 0x555   :  { %v2681_v34 = vadd.f32 %v4013_v9, %v2680_v55  ;;  %4024 = vrcp.f32 %v2719_v46  ;;  %v2710_v38 = vand.u32 2147483647, %v2700_v7  ;;  %v2712_v40 = vand.u32 2147483648, %v2700_v7  ;;  %v3780_v55 = vld [vmem:[#allocation10 + $0x30] sm:$0xff]  ;;  %v6211_v8 = vld [vmem:[#allocation65_spill] sm:$0xff] }
 0x556   :  { %4026 = vtanh.f32 %v5614_v17  ;;  %v2729_v47 = vand.u32 2147483647, %v2719_v46  ;;  %vm2706_vm0 = vweird.f32 %v2700_v7  ;;  %vm2725_vm2 = vweird.f32 %v2719_v46 }
 0x557   :  { %v4021_v62 = vpop.eup %4020  ;;  %v2685_v22 = vsel %vm2684_vm8, %v4013_v9, %v2681_v34  ;;  %v2713_v19 = vor.u32 1.1754944e-38, %v2712_v40  ;;  %v2732_v35 = vor.u32 1.1754944e-38, %v2731_v28  ;;  %v6212_v34 = vld [vmem:[#allocation60_spill] sm:$0xff]  ;;  %v3776_v28 = vld [vmem:[#allocation10 + $0x10] sm:$0xff] }
 0x558   :  { %v2739_v29 = vadd.f32 1.0, %v4021_v62  ;;  %v2690_v27 = vsel %vm2687_vm13, %v2689_v33, %v2685_v22  ;;  %vm2730_vm6 = vcmp.eq.f32.partialorder %v2729_v47, 8.507059e+37  ;;  %v305_v62 = vadd.f32 %v6213_v44, %v6212_v34  ;;  %v6214_v22 = vld [vmem:[#allocation76_spill] sm:$0xff]  ;;  %v3784_v34 = vld [vmem:[#allocation10 + $0x50] sm:$0xff] }
 0x55a   :  { %v4023_v32 = vpop.eup %4022  ;;  %4028 = vrcp.f32 %v2739_v29  ;;  %v2751_v25 = vand.u32 2147483648, %v2739_v29  ;;  %vm2745_vm1 = vweird.f32 %v2739_v29  ;;  %v2749_v50 = vand.u32 2147483647, %v2739_v29 }
 0x55b   :  { %v4025_v39 = vpop.eup %4024  ;;  %v2702_v60 = vmul.f32 %v4023_v32, %v2700_v7  ;;  %4030 = vtanh.f32 %v2632_v21  ;;  %vm2707_vm14 = vweird.f32 %v4023_v32  ;;  %v3779_v7 = vld [vmem:[#allocation10 + $0x28] sm:$0xff] }
 0x55c   :  { %v4027_v18 = vpop.eup %4026  ;;  %v2721_v45 = vmul.f32 %v4025_v39, %v2719_v46  ;;  %vm2726_vm15 = vweird.f32 %v4025_v39  ;;  %vm2708_vm11 = vmor %vm2706_vm0, %vm2707_vm14  ;;  %v2752_v57 = vor.u32 1.1754944e-38, %v2751_v25  ;;  %vm2750_vm8 = vcmp.eq.f32.partialorder %v2749_v50, 8.507059e+37  ;;  %v6210_v46 = vld [vmem:[#allocation59_spill] sm:$0xff] }
 0x55d   :  { %v2703_v42 = vsub.f32 1.0, %v2702_v60  ;;  %v2696_v61 = vmul.f32 %v4027_v18, %v2690_v27  ;;  %vm2727_vm4 = vmor %vm2725_vm2, %vm2726_vm15  ;;  %v276_v23 = vadd.f32 %v6211_v8, %v6210_v46  ;;  %v3789_v60 = vld [vmem:[#allocation10 + $0x78] sm:$0xff] }
 0x55e   :  { %v2722_v14 = vsub.f32 1.0, %v2721_v45  ;;  %v3785_v25 = vld [vmem:[#allocation10 + $0x58] sm:$0xff] }
 0x55f   :  { %v2704_v58 = vmul.f32 %v4023_v32, %v2703_v42  ;;  %v2768_v0 = vpack.c.bf16 %v2696_v61, %v2696_v61  ;;  %v5625_v11 = vsel %vm1462_vm12, %v2696_v61, %v5520_v37  ;;  %vm2711_vm12 = vcmp.eq.f32.partialorder %v2710_v38, 8.507059e+37  ;;  %v3788_v38 = vld [vmem:[#allocation10 + $0x70] sm:$0xff] }
 0x560   :  { %v4029_v53 = vpop.eup %4028  ;;  %v2723_v13 = vmul.f32 %v4025_v39, %v2722_v14 }
 0x561   :  { %v2705_v24 = vadd.f32 %v4023_v32, %v2704_v58  ;;  %v2741_v63 = vmul.f32 %v4029_v53, %v2739_v29  ;;  %2777 = vmatmul.bf16.vlgmr.msra.gmra.mxu0 %v2768_v0  ;;  %2790 = vmatmul.bf16.vlgmr.msra.gmra.mxu1 %v2768_v0  ;;  %v4031_v26 = vpop.eup %4030  ;;  %vm2746_vm7 = vweird.f32 %v4029_v53 }
 0x562   :  { %v2724_v15 = vadd.f32 %v4025_v39, %v2723_v13  ;;  %2803 = vmatmul.bf16.vlgmr.msrb.gmra.mxu2 %v2768_v0  ;;  %2816 = vmatmul.bf16.vlgmr.msrb.gmra.mxu3 %v2768_v0  ;;  %vm2747_vm3 = vmor %vm2745_vm1, %vm2746_vm7  ;;  %v3787_v13 = vld [vmem:[#allocation10 + $0x68] sm:$0xff] }
 0x563   :  { %v2709_v37 = vsel %vm2708_vm11, %v4023_v32, %v2705_v24  ;;  %v2742_v5 = vsub.f32 1.0, %v2741_v63  ;;  %3150 = vmatpush.bf16.msra.mxu0 %v3781_v51  ;;  %v6215_v32 = vld [vmem:[#allocation100_spill] sm:$0xff]  ;;  %3163 = vmatpush.bf16.msra.mxu1 %v3789_v60  ;;  %v6216_v63 = vld [vmem:[#allocation75_spill] sm:$0xff] }
 0x564   :  { %v2714_v10 = vsel %vm2711_vm12, %v2713_v19, %v2709_v37  ;;  %v2728_v9 = vsel %vm2727_vm4, %v4025_v39, %v2724_v15  ;;  %v363_v33 = vadd.f32 %v6215_v32, %v6214_v22  ;;  %v3777_v39 = vld [vmem:[#allocation10 + $0x18] sm:$0xff]  ;;  %v3786_v37 = vld [vmem:[#allocation10 + $0x60] sm:$0xff]  ;;  %v3783_v32 = vld [vmem:[#allocation10 + $0x48] sm:$0xff] }
 0x565   :  { %v2733_v30 = vsel %vm2730_vm6, %v2732_v35, %v2728_v9  ;;  %v2756_v1 = vmul.f32 %v4031_v26, %v2714_v10  ;;  %v2743_v54 = vmul.f32 %v4029_v53, %v2742_v5  ;;  %v6217_v19 = vld [vmem:[#allocation99_spill] sm:$0xff]  ;;  %v3774_v35 = vld [vmem:[#allocation10] sm:$0xff] }
 0x566   :  { %v2755_v12 = vmul.f32 %v2733_v30, %v5527_v43  ;;  %v334_v15 = vadd.f32 %v6217_v19, %v6216_v63 }
 0x567   :  { %v2744_v6 = vadd.f32 %v4029_v53, %v2743_v54  ;;  %3151 = vmatpush.bf16.msra.mxu0 %v3780_v55  ;;  %3164 = vmatpush.bf16.msra.mxu1 %v3788_v38 }
 0x568   :  { %v5628_v41 = vadd.f32 %v2756_v1, %v2755_v12 }
 0x569   :  { %v2748_v49 = vsel %vm2747_vm3, %v4029_v53, %v2744_v6  ;;  %v3775_v53 = vld [vmem:[#allocation10 + $0x8] sm:$0xff] }
 0x56a   :  { %4032 = vtanh.f32 %v5628_v41  ;;  %v2753_v56 = vsel %vm2750_vm8, %v2752_v57, %v2748_v49  ;;  %v6218_v49 = vld [vmem:[#allocation85_spill] sm:$0xff] }
 0x56b   :  { %3152 = vmatpush.bf16.msra.mxu0 %v3779_v7  ;;  %3165 = vmatpush.bf16.msra.mxu1 %v3787_v13 }
 0x56f   :  { %3153 = vmatpush.bf16.msra.mxu0 %v3778_v59  ;;  %3166 = vmatpush.bf16.msra.mxu1 %v3786_v37 }
 0x570   :  { %v4033_v48 = vpop.eup %4032 }
 0x571   :  { %v2759_v3 = vmul.f32 %v4033_v48, %v2753_v56  ;;  %v6219_v48 = vld [vmem:[#allocation86_spill] sm:$0xff] }
 0x573   :  { %v2831_v20 = vpack.c.bf16 %v2759_v3, %v2759_v3  ;;  %v5634_v43 = vsel %vm1455_vm10, %v2759_v3, %v5548_v16  ;;  %3154 = vmatpush.bf16.msra.mxu0 %v3777_v39  ;;  %3167 = vmatpush.bf16.msra.mxu1 %v3785_v25 }
 0x575   :  { %2840 = vmatmul.bf16.vlgmr.msrb.gmra.mxu0 %v2831_v20  ;;  %2853 = vmatmul.bf16.vlgmr.msrb.gmra.mxu1 %v2831_v20 }
 0x576   :  { %2866 = vmatmul.bf16.vlgmr.msra.gmra.mxu2 %v2831_v20  ;;  %2879 = vmatmul.bf16.vlgmr.msra.gmra.mxu3 %v2831_v20 }
 0x577   :  { %3155 = vmatpush.bf16.msra.mxu0 %v3776_v28  ;;  %3168 = vmatpush.bf16.msra.mxu1 %v3784_v34 }
 0x57b   :  { %3156 = vmatpush.bf16.msra.mxu0 %v3775_v53  ;;  %3169 = vmatpush.bf16.msra.mxu1 %v3783_v32 }
 0x57f   :  { %3157 = vmatpush.bf16.msra.mxu0 %v3774_v35 }
 0x5de   :  { %v2778_v2 = vpop.f32.mrf.mxu0  ;;  %v2791_v31 = vpop.f32.mrf.mxu1 }
 0x5df   :  { %v2821_v16 = vadd.f32 %v2778_v2, %v276_v23  ;;  %v2822_v4 = vadd.f32 %v2791_v31, %v305_v62 }
 0x5e1   :  { %v3620_v29 = vmul.f32 -1.442695, %v2821_v16  ;;  %v3621_v21 = vmul.f32 -1.442695, %v2822_v4 }
 0x5e3   :  { %4034 = vpow2.f32 %v3620_v29 }
 0x5e4   :  { %4036 = vpow2.f32 %v3621_v21 }
 0x5e5   :  { %v2804_v18 = vpop.f32.mrf.mxu2  ;;  %v2817_v45 = vpop.f32.mrf.mxu3 }
 0x5e6   :  { %v2824_v27 = vadd.f32 %v2817_v45, %v363_v33  ;;  %v2780_v42 = vpop.f32.mrf.mxu0  ;;  %v2793_v61 = vpop.f32.mrf.mxu1  ;;  %v2823_v5 = vadd.f32 %v2804_v18, %v334_v15  ;;  %v6222_v18 = vld [vmem:[#allocation106_spill] sm:$0xff] }
 0x5e8   :  { %v3622_v14 = vmul.f32 -1.442695, %v2824_v27 }
 0x5e9   :  { %v4035_v40 = vpop.eup %4034 }
 0x5ea   :  { %v4037_v58 = vpop.eup %4036  ;;  %v5642_v0 = vadd.f32 1.0, %v4035_v40  ;;  %4038 = vpow2.f32 %v3622_v14 }
 0x5eb   :  { %v5644_v52 = vadd.f32 1.0, %v4037_v58 }
 0x5ec   :  { %4040 = vrcp.f32 %v5642_v0  ;;  %v2901_v36 = vand.u32 2147483647, %v5642_v0  ;;  %v2903_v51 = vand.u32 2147483648, %v5642_v0  ;;  %vm2897_vm15 = vweird.f32 %v5642_v0 }
 0x5ed   :  { %4042 = vrcp.f32 %v5644_v52  ;;  %v2806_v47 = vpop.f32.mrf.mxu2  ;;  %v2819_v24 = vpop.f32.mrf.mxu3  ;;  %v2922_v20 = vand.u32 2147483648, %v5644_v52  ;;  %v2920_v23 = vand.u32 2147483647, %v5644_v52  ;;  %vm2916_vm14 = vweird.f32 %v5644_v52 }
 0x5ee   :  { %v2904_v4 = vor.u32 1.1754944e-38, %v2903_v51  ;;  %vm2902_vm11 = vcmp.eq.f32.partialorder %v2901_v36, 8.507059e+37 }
 0x5ef   :  { %v2923_v39 = vor.u32 1.1754944e-38, %v2922_v20  ;;  %vm2921_vm4 = vcmp.eq.f32.partialorder %v2920_v23, 8.507059e+37 }
 0x5f0   :  { %v4039_v26 = vpop.eup %4038 }
 0x5f1   :  { %v5650_v10 = vadd.f32 1.0, %v4039_v26 }
 0x5f2   :  { %v4041_v9 = vpop.eup %4040  ;;  %v2841_v30 = vpop.f32.mrf.mxu0 }
 0x5f3   :  { %v2854_v1 = vpop.f32.mrf.mxu1  ;;  %v4043_v54 = vpop.eup %4042  ;;  %v2893_v12 = vmul.f32 %v4041_v9, %v5642_v0  ;;  %4044 = vrcp.f32 %v5650_v10  ;;  %v2884_v57 = vadd.f32 %v2841_v30, %v6218_v49  ;;  %vm2898_vm10 = vweird.f32 %v4041_v9  ;;  %v3782_v0 = vld [vmem:[#allocation10 + $0x40] sm:$0xff] }
 0x5f4   :  { %v2912_v6 = vmul.f32 %v4043_v54, %v5644_v52  ;;  %4046 = vtanh.f32 %v2823_v5  ;;  %v2885_v56 = vadd.f32 %v2854_v1, %v6219_v48  ;;  %vm2917_vm13 = vweird.f32 %v4043_v54  ;;  %vm5663_vm0 = vmor %vm2897_vm15, %vm2898_vm10  ;;  %3170 = vmatpush.bf16.msra.mxu1 %v3782_v0 }
 0x5f5   :  { %v2894_v50 = vsub.f32 1.0, %v2893_v12  ;;  %v3623_v7 = vmul.f32 -1.442695, %v2884_v57  ;;  %vm2918_vm2 = vmor %vm2916_vm14, %vm2917_vm13  ;;  %v2942_v26 = vand.u32 2147483648, %v5650_v10  ;;  %vm2936_vm6 = vweird.f32 %v5650_v10  ;;  %v6223_v12 = vld [vmem:[#allocation105_spill] sm:$0xff] }
 0x5f6   :  { %v2913_v3 = vsub.f32 1.0, %v2912_v6  ;;  %v3624_v46 = vmul.f32 -1.442695, %v2885_v56 }
 0x5f7   :  { %v2895_v55 = vmul.f32 %v4041_v9, %v2894_v50  ;;  %4048 = vpow2.f32 %v3623_v7  ;;  %v2943_v5 = vor.u32 1.1754944e-38, %v2942_v26 }
 0x5f8   :  { %v2914_v8 = vmul.f32 %v4043_v54, %v2913_v3  ;;  %4050 = vpow2.f32 %v3624_v46 }
 0x5f9   :  { %v4045_v44 = vpop.eup %4044  ;;  %v2896_v62 = vadd.f32 %v4041_v9, %v2895_v55  ;;  %v2867_v2 = vpop.f32.mrf.mxu2 }
 0x5fa   :  { %v2880_v31 = vpop.f32.mrf.mxu3  ;;  %v2915_v59 = vadd.f32 %v4043_v54, %v2914_v8  ;;  %v2932_v29 = vmul.f32 %v4045_v44, %v5650_v10  ;;  %v2843_v21 = vpop.f32.mrf.mxu0  ;;  %vm2937_vm12 = vweird.f32 %v4045_v44  ;;  %v2886_v6 = vadd.f32 %v2867_v2, %v6223_v12 }
 0x5fb   :  { %v2856_v22 = vpop.f32.mrf.mxu1  ;;  %v4047_v33 = vpop.eup %4046  ;;  %v2900_v60 = vsel %vm5663_vm0, %v4041_v9, %v2896_v62  ;;  %v2887_v45 = vadd.f32 %v2880_v31, %v6222_v18  ;;  %vm2938_vm7 = vmor %vm2936_vm6, %vm2937_vm12 }
 0x5fc   :  { %v2905_v27 = vsel %vm2902_vm11, %v2904_v4, %v2900_v60  ;;  %v2919_v42 = vsel %vm2918_vm2, %v4043_v54, %v2915_v59  ;;  %v2933_v61 = vsub.f32 1.0, %v2932_v29 }
 0x5fd   :  { %v2924_v14 = vsel %vm2921_vm4, %v2923_v39, %v2919_v42  ;;  %v2947_v28 = vmul.f32 %v4047_v33, %v2905_v27  ;;  %v3625_v38 = vmul.f32 -1.442695, %v2887_v45  ;;  %v4049_v52 = vpop.eup %4048 }
 0x5fe   :  { %v2946_v40 = vmul.f32 %v2924_v14, %v5614_v17  ;;  %v2934_v58 = vmul.f32 %v4045_v44, %v2933_v61  ;;  %v4051_v53 = vpop.eup %4050  ;;  %v2954_v47 = vadd.f32 1.0, %v4049_v52  ;;  %v2940_v17 = vand.u32 2147483647, %v5650_v10  ;;  %v3809_v52 = vld [vmem:[%s5699_s7] ss:$0 sm:$0xff] }
 0x5ff   :  { %4052 = vpow2.f32 %v3625_v38  ;;  %v2973_v63 = vadd.f32 1.0, %v4051_v53 }
 0x600   :  { %v2948_v13 = vadd.f32 %v2947_v28, %v2946_v40  ;;  %v2935_v24 = vadd.f32 %v4045_v44, %v2934_v58  ;;  %vm2941_vm1 = vcmp.eq.f32.partialorder %v2940_v17, 8.507059e+37  ;;  %v2966_v36 = vand.u32 2147483648, %v2954_v47 }
 0x601   :  { %v2869_v19 = vpop.f32.mrf.mxu2  ;;  %v2985_v55 = vand.u32 2147483648, %v2973_v63  ;;  %v2964_v46 = vand.u32 2147483647, %v2954_v47  ;;  %v2983_v23 = vand.u32 2147483647, %v2973_v63  ;;  %vm2960_vm10 = vweird.f32 %v2954_v47 }
 0x602   :  { %v2882_v15 = vpop.f32.mrf.mxu3  ;;  %4054 = vtanh.f32 %v2948_v13  ;;  %v2939_v37 = vsel %vm2938_vm7, %v4045_v44, %v2935_v24  ;;  %vm2979_vm13 = vweird.f32 %v2973_v63 }
 0x603   :  { %4056 = vrcp.f32 %v2954_v47  ;;  %v2944_v1 = vsel %vm2941_vm1, %v2943_v5, %v2939_v37  ;;  %v2986_v31 = vor.u32 1.1754944e-38, %v2985_v55  ;;  %vm2965_vm15 = vcmp.eq.f32.partialorder %v2964_v46, 8.507059e+37 }
 0x604   :  { %4058 = vrcp.f32 %v2973_v63  ;;  %vm2984_vm0 = vcmp.eq.f32.partialorder %v2983_v23, 8.507059e+37 }
 0x605   :  { %v4053_v35 = vpop.eup %4052 }
 0x606   :  { %v2993_v9 = vadd.f32 1.0, %v4053_v35 }
 0x608   :  { %v4055_v30 = vpop.eup %4054  ;;  %4060 = vrcp.f32 %v2993_v9  ;;  %v3005_v18 = vand.u32 2147483648, %v2993_v9  ;;  %vm2999_vm11 = vweird.f32 %v2993_v9  ;;  %v3003_v45 = vand.u32 2147483647, %v2993_v9 }
 0x609   :  { %v4057_v54 = vpop.eup %4056  ;;  %v2950_v25 = vmul.f32 %v4055_v30, %v2944_v1  ;;  %4062 = vtanh.f32 %v2886_v6 }
 0x60a   :  { %v4059_v50 = vpop.eup %4058  ;;  %v2956_v49 = vmul.f32 %v4057_v54, %v2954_v47  ;;  %vm2961_vm3 = vweird.f32 %v4057_v54  ;;  %v3006_v42 = vor.u32 1.1754944e-38, %v3005_v18  ;;  %vm3004_vm12 = vcmp.eq.f32.partialorder %v3003_v45, 8.507059e+37 }
 0x60b   :  { %v2975_v57 = vmul.f32 %v4059_v50, %v2973_v63  ;;  %v3014_v48 = vsel %vm1194_vm9, %v2950_v25, %v5625_v11  ;;  %vm2980_vm8 = vweird.f32 %v4059_v50  ;;  %vm2962_vm14 = vmor %vm2960_vm10, %vm2961_vm3  ;;  %v2967_v11 = vor.u32 1.1754944e-38, %v2966_v36 }
 0x60c   :  { %v2957_v56 = vsub.f32 1.0, %v2956_v49  ;;  %v3016_v3 = vpack.c.bf16 %v3014_v48, %v3014_v48  ;;  %vm2981_vm9 = vmor %vm2979_vm13, %vm2980_vm8 }
 0x60d   :  { %v2976_v20 = vsub.f32 1.0, %v2975_v57 }
 0x60e   :  { %v4061_v51 = vpop.eup %4060  ;;  %v2958_v7 = vmul.f32 %v4057_v54, %v2957_v56  ;;  %3158 = vmatmul.bf16.vlgmr.msra.gmra.mxu0 %v3016_v3 }
 0x60f   :  { %v2977_v8 = vmul.f32 %v4059_v50, %v2976_v20  ;;  %v2995_v34 = vmul.f32 %v4061_v51, %v2993_v9  ;;  %v4063_v4 = vpop.eup %4062  ;;  %vm3000_vm2 = vweird.f32 %v4061_v51 }
 0x610   :  { %v2959_v44 = vadd.f32 %v4057_v54, %v2958_v7  ;;  %vm3001_vm4 = vmor %vm2999_vm11, %vm3000_vm2 }
 0x611   :  { %v2978_v62 = vadd.f32 %v4059_v50, %v2977_v8  ;;  %v2996_v2 = vsub.f32 1.0, %v2995_v34 }
 0x612   :  { %v2963_v16 = vsel %vm2962_vm14, %v4057_v54, %v2959_v44 }
 0x613   :  { %v2968_v59 = vsel %vm2965_vm15, %v2967_v11, %v2963_v16  ;;  %v2982_v29 = vsel %vm2981_vm9, %v4059_v50, %v2978_v62  ;;  %v2997_v32 = vmul.f32 %v4061_v51, %v2996_v2 }
 0x614   :  { %v2987_v21 = vsel %vm2984_vm0, %v2986_v31, %v2982_v29  ;;  %v3010_v22 = vmul.f32 %v4063_v4, %v2968_v59 }
 0x615   :  { %v3009_v33 = vmul.f32 %v2987_v21, %v5628_v41  ;;  %v2998_v60 = vadd.f32 %v4061_v51, %v2997_v32 }
 0x617   :  { %v3011_v39 = vadd.f32 %v3010_v22, %v3009_v33  ;;  %v3002_v27 = vsel %vm3001_vm4, %v4061_v51, %v2998_v60 }
 0x618   :  { %v3007_v14 = vsel %vm3004_vm12, %v3006_v42, %v3002_v27 }
 0x619   :  { %4064 = vtanh.f32 %v3011_v39 }
 0x61f   :  { %v4065_v61 = vpop.eup %4064 }
 0x620   :  { %v3013_v28 = vmul.f32 %v4065_v61, %v3007_v14 }
 0x622   :  { %v3015_v40 = vsel %vm1187_vm5, %v3013_v28, %v5634_v43 }
 0x623   :  { %v3017_v58 = vpack.c.bf16 %v3015_v40, %v3015_v40 }
 0x625   :  { %3171 = vmatmul.bf16.vlgmr.msra.gmra.mxu1 %v3017_v58 }
 0x68b   :  { %v3159_v41 = vpop.f32.mrf.mxu0 }
 0x68c   :  { %v3160_v53 = vadd.f32 %v3809_v52, %v3159_v41 }
 0x693   :  { %v3161_v0 = vpop.f32.mrf.mxu0 }
 0x6a2   :  { %v3172_v13 = vpop.f32.mrf.mxu1 }
 0x6a3   :  { %v3173_v47 = vadd.f32 %v3172_v13, %v3160_v53 }
 0x6a5   :  { %3176 = vst [vmem:[#allocation12] sm:$0xff] %v3173_v47 }
 0x6a6   :  { %3187 = dma.vmem_to_hbm [thread:$0]  %s3183_s4, 128, %s3185_s21, [#allocation6]  }
 0x6aa   :  { %v3174_v43 = vpop.f32.mrf.mxu1 }
 0x6ab   :  { %4193 = dma.done.wait [#allocation6], 128  }
 0x6ac   :  { %4194 = vsyncadd [#allocation6], 4294967168 }
 0x6ad   :  { %3192 = vsyncpa [#allocation5], 1 }
 0x6ae   :  { %3193 = vsyncpa [#allocation8], 1 }
 0x6af   :  { %3194 = vsyncpa [#allocation11], 1 }
 0x6b0   :  { %3195 = vsyncpa [#allocation6], 1 }

</bundles_post_ra>
